<compile_context>
chip_gen: v7x
topology: tpu7x:2x2x1
jax: 0.10.0
libtpu: 0.0.40
codegen_flags: <defaults>
</compile_context>

<pallas_src>
import jax
import jax.numpy as jnp
from jax.experimental import pallas as pl
from jax.experimental.pallas import tpu as pltpu
from functools import partial

EPS = 1e-5


def _ln_linear_kernel(x_ref, w_ref, b_ref, o_ref):
    # x_ref: (tm, C)  tile of flattened rows
    # w_ref: (C, F)   LN-affine-folded, pre-transposed weight
    # b_ref: (1, F)   LN-affine-folded bias
    # o_ref: (tm, F)
    x = x_ref[...].astype(jnp.float32)
    c = x.shape[-1]
    inv_c = 1.0 / c

    # Single-pass LayerNorm statistics (biased variance, like torch.nn.LayerNorm).
    s1 = jnp.sum(x, axis=-1, keepdims=True)
    s2 = jnp.sum(x * x, axis=-1, keepdims=True)
    mean = s1 * inv_c
    var = jnp.maximum(s2 * inv_c - mean * mean, 0.0)
    inv = jax.lax.rsqrt(var + EPS)
    xn = (x - mean) * inv

    # Affine + Linear were folded into (w_ref, b_ref):  out = xn @ W' + b'
    out = jnp.dot(xn.astype(w_ref.dtype), w_ref[...],
                  preferred_element_type=jnp.float32)
    out = out + b_ref[...].astype(jnp.float32)
    o_ref[...] = out.astype(o_ref.dtype)


@partial(jax.jit, static_argnames=("use_bf16_matmul",))
def layernorm_linear(x, gamma, beta, weight, bias, *, use_bf16_matmul=False):
    """x: [N, H, W, C]; weight: [F, C] (PyTorch layout); bias: [F]."""
    N, H, W, C = x.shape
    F = weight.shape[0]
    rows = N * H * W

    # Fold the LayerNorm affine into the linear (done once, ~0.6 MB of params):
    #   y = xn * gamma + beta ;  out = y @ W^T + b
    #   => out = xn @ (gamma[:,None] * W^T) + (beta @ W^T + b)
    w_folded = gamma.astype(jnp.float32)[:, None] * weight.astype(jnp.float32).T  # (C, F)
    b_folded = (beta.astype(jnp.float32) @ weight.astype(jnp.float32).T
                + bias.astype(jnp.float32)).reshape(1, F)
    if use_bf16_matmul:
        w_folded = w_folded.astype(jnp.bfloat16)

    x2 = x.reshape(rows, C)

    # Two balanced row tiles: one per TensorCore on v7x, only two pipeline steps
    # on single-TC chips. Pad rows so each tile is a multiple of 8 sublanes.
    num_tiles = 2 if rows >= 16 else 1
    pad_unit = 8 * num_tiles
    rows_p = ((rows + pad_unit - 1) // pad_unit) * pad_unit
    if rows_p != rows:
        x2 = jnp.pad(x2, ((0, rows_p - rows), (0, 0)))
    tm = rows_p // num_tiles

    out2 = pl.pallas_call(
        _ln_linear_kernel,
        out_shape=jax.ShapeDtypeStruct((rows_p, F), x.dtype),
        grid=(num_tiles,),
        in_specs=[
            pl.BlockSpec((tm, C), lambda i: (i, 0)),   # x tile
            pl.BlockSpec((C, F), lambda i: (0, 0)),    # folded weight (C, F)
            pl.BlockSpec((1, F), lambda i: (0, 0)),    # folded bias
        ],
        out_specs=pl.BlockSpec((tm, F), lambda i: (i, 0)),
        compiler_params=pltpu.CompilerParams(
            dimension_semantics=("parallel",)),
    )(x2, w_folded, b_folded)

    return out2[:rows].reshape(N, H, W, F)


def _reference(x, gamma, beta, weight, bias):
    xf = x.astype(jnp.float32)
    mean = jnp.mean(xf, axis=-1, keepdims=True)
    var = jnp.mean((xf - mean) ** 2, axis=-1, keepdims=True)
    xn = (xf - mean) * jax.lax.rsqrt(var + EPS)
    y = xn * gamma + beta
    return y @ weight.T + bias


if __name__ == "__main__":
    key = jax.random.PRNGKey(0)
    k_x, k_g, k_b, k_w, k_bias = jax.random.split(key, 5)

    N, H, W, C, F = 1, 28, 28, 192, 768

    x = jax.random.normal(k_x, (N, H, W, C), dtype=jnp.float32)
    gamma = jnp.ones((C,), jnp.float32) + 0.01 * jax.random.normal(k_g, (C,))
    beta = 0.01 * jax.random.normal(k_b, (C,), dtype=jnp.float32)
    weight = 0.05 * jax.random.normal(k_w, (F, C), dtype=jnp.float32)
    bias = 0.05 * jax.random.normal(k_bias, (F,), dtype=jnp.float32)

    out = layernorm_linear(x, gamma, beta, weight, bias)
    out = jax.block_until_ready(out)

    ref = _reference(x, gamma, beta, weight, bias)
    assert out.shape == (N, H, W, F), out.shape
    assert jnp.allclose(out, ref, atol=1e-4, rtol=1e-4), (
        float(jnp.max(jnp.abs(out - ref))))

    print("KERNEL_OK")
</pallas_src>

<mosaic_0001>
module attributes {stable_mosaic.version = 11 : i64} {
  func.func @_ln_linear_kernel(%arg0: i32, %arg1: memref<392x192xf32, #tpu.memory_space<vmem>>, %arg2: memref<192x768xf32, #tpu.memory_space<vmem>>, %arg3: memref<1x768xf32, #tpu.memory_space<vmem>>, %arg4: memref<392x768xf32, #tpu.memory_space<vmem>>) attributes {dimension_semantics = [#tpu.dimension_semantics<parallel>], iteration_bounds = array<i64: 2>, scalar_prefetch = 0 : i64, scratch_operands = 0 : i64, tpu.core_type = #tpu.core_type<tc>, window_params = [{transform_indices = @transform_0, window_bounds = array<i64: 392, 192>}, {pipeline_mode = #tpu.pipeline_mode<synchronous>, transform_indices = @transform_1, window_bounds = array<i64: 192, 768>}, {pipeline_mode = #tpu.pipeline_mode<synchronous>, transform_indices = @transform_2, window_bounds = array<i64: 1, 768>}, {transform_indices = @transform_3, window_bounds = array<i64: 392, 768>}]} {
    %c0 = arith.constant 0 : index
    %c0_0 = arith.constant 0 : index
    %0 = vector.load %arg1[%c0, %c0_0] : memref<392x192xf32, #tpu.memory_space<vmem>>, vector<392x192xf32>
    %cst = arith.constant dense<0.000000e+00> : vector<392xf32>
    %1 = vector.multi_reduction <add>, %0, %cst [1] : vector<392x192xf32> to vector<392xf32>
    %2 = vector.shape_cast %1 : vector<392xf32> to vector<392x1xf32>
    %3 = arith.mulf %0, %0 : vector<392x192xf32>
    %cst_1 = arith.constant dense<0.000000e+00> : vector<392xf32>
    %4 = vector.multi_reduction <add>, %3, %cst_1 [1] : vector<392x192xf32> to vector<392xf32>
    %5 = vector.shape_cast %4 : vector<392xf32> to vector<392x1xf32>
    %cst_2 = arith.constant 0.00520833349 : f32
    %6 = vector.broadcast %cst_2 : f32 to vector<392x1xf32>
    %7 = arith.mulf %2, %6 : vector<392x1xf32>
    %cst_3 = arith.constant 0.00520833349 : f32
    %8 = vector.broadcast %cst_3 : f32 to vector<392x1xf32>
    %9 = arith.mulf %5, %8 : vector<392x1xf32>
    %10 = arith.mulf %7, %7 : vector<392x1xf32>
    %11 = arith.subf %9, %10 : vector<392x1xf32>
    %cst_4 = arith.constant 0.000000e+00 : f32
    %12 = vector.broadcast %cst_4 : f32 to vector<392x1xf32>
    %13 = arith.maximumf %11, %12 : vector<392x1xf32>
    %cst_5 = arith.constant 9.99999974E-6 : f32
    %14 = vector.broadcast %cst_5 : f32 to vector<392x1xf32>
    %15 = arith.addf %13, %14 : vector<392x1xf32>
    %16 = math.rsqrt %15 : vector<392x1xf32>
    %17 = vector.broadcast %7 : vector<392x1xf32> to vector<392x192xf32>
    %18 = arith.subf %0, %17 : vector<392x192xf32>
    %19 = vector.broadcast %16 : vector<392x1xf32> to vector<392x192xf32>
    %20 = arith.mulf %18, %19 : vector<392x192xf32>
    %c0_6 = arith.constant 0 : index
    %c0_7 = arith.constant 0 : index
    %21 = vector.load %arg2[%c0_6, %c0_7] : memref<192x768xf32, #tpu.memory_space<vmem>>, vector<192x768xf32>
    %cst_8 = arith.constant dense<0.000000e+00> : vector<392x768xf32>
    %22 = tpu.matmul %20, %21, %cst_8 {dimension_numbers = #tpu.dot_dimension_numbers<[1], [0], [0], [1], [0, 0, 1, 1], [], []>} : vector<392x192xf32>, vector<192x768xf32>, vector<392x768xf32> -> vector<392x768xf32>
    %c0_9 = arith.constant 0 : index
    %c0_10 = arith.constant 0 : index
    %23 = vector.load %arg3[%c0_9, %c0_10] : memref<1x768xf32, #tpu.memory_space<vmem>>, vector<1x768xf32>
    %24 = vector.broadcast %23 : vector<1x768xf32> to vector<392x768xf32>
    %25 = arith.addf %22, %24 : vector<392x768xf32>
    %c0_11 = arith.constant 0 : index
    %c0_12 = arith.constant 0 : index
    %26 = vector.load %arg4[%c0_11, %c0_12] : memref<392x768xf32, #tpu.memory_space<vmem>>, vector<392x768xf32>
    tpu.vector_store %arg4[%c0_11, %c0_12], %25 {strides = array<i32>} : memref<392x768xf32, #tpu.memory_space<vmem>>, vector<392x768xf32>,
    return
  }
  func.func @transform_0(%arg0: i32) -> (i32, i32) {
    %c0_i32 = arith.constant 0 : i32
    %c0_i32_0 = arith.constant 0 : i32
    return %arg0, %c0_i32 : i32, i32
  }
  func.func @transform_1(%arg0: i32) -> (i32, i32) {
    %c0_i32 = arith.constant 0 : i32
    %c0_i32_0 = arith.constant 0 : i32
    %c0_i32_1 = arith.constant 0 : i32
    return %c0_i32, %c0_i32_0 : i32, i32
  }
  func.func @transform_2(%arg0: i32) -> (i32, i32) {
    %c0_i32 = arith.constant 0 : i32
    %c0_i32_0 = arith.constant 0 : i32
    %c0_i32_1 = arith.constant 0 : i32
    return %c0_i32, %c0_i32_0 : i32, i32
  }
  func.func @transform_3(%arg0: i32) -> (i32, i32) {
    %c0_i32 = arith.constant 0 : i32
    %c0_i32_0 = arith.constant 0 : i32
    return %arg0, %c0_i32 : i32, i32
  }
}

</mosaic_0001>

<bundles_post_ra>
// kernel: layernorm_linear.1
= control target key start
LH: loop header
LB: loop body
LE: loop exit
PB: predicated region body
PF: predicated region fallthrough
CT: control target
= control target key end

     0   :  { %s3618_s12 = smov 0   ;;  %s6077_s0 = inlined_call_operand.vmem [shape: f32[784,192], index: 0, kind: input, shape index: {}]   ;;  %s6078_s1 = inlined_call_operand.vmem [shape: f32[192,768], index: 1, kind: input, shape index: {}]   ;;  %s6079_s2 = inlined_call_operand.vmem [shape: f32[1,768], index: 2, kind: input, shape index: {}]   ;;  %s6080_s3 = inlined_call_operand.vmem [shape: f32[784,768], index: 3, kind: output, shape index: {}]  }
   0x1 LB: > { %s3059_s13 = sadd.s32 4294967295, %s3596_s12   ;;  %p3063_p0 = scmp.ge.s32.totalorder %s3596_s12, 1  ;;  %s3596_s12 = sphi %s3618_s12, %s13_s12  }
   0x2   : > { %p139_p1 = scmp.lt.s32.totalorder %s3596_s12, 3 }
   0x4   : > { %p140_p2 = pnand %p3063_p0, %p139_p1 }
   0x6   : > { %143 = sbr.rel (%p140_p2) target bundleno = 794 (0x31a), region = 32 }
   0xd   : > { %s165_s14 = smul.u32 49, %s3059_s13  ;;  %v1308_v0 = vld [vmem:[%s6078_s1 + $0x8] sm:$0xff]  ;;  %v1314_v1 = vld [vmem:[%s6078_s1 + $0x38] sm:$0xff]  ;;  %vm277_vm0 = vcmask 523264   ;;  %v1307_v3 = vld [vmem:[%s6078_s1] sm:$0xff] }
   0xe   : > { %v3217_v2 = vpack.c.bf16 %v1314_v1, %v1308_v0  ;;  %v1313_v4 = vld [vmem:[%s6078_s1 + $0x30] sm:$0xff] }
   0xf   : > { %p166_p3 = scmp.lt.s32.totalorder %s165_s14, 97  ;;  %v3219_v8 = vpack.c.bf16 %v1313_v4, %v1307_v3 }
  0x10   : > { %3218 = vmatprep.subr.bf16.mxu0 %v3217_v2  ;;  %3361 = vmatprep.subr.bf16.mxu1 %v3217_v2 }
  0x11   : > { %s6270_s14 = smov (!%p166_p3, %s165_s14), 97  ;;  %3220 = vmatpush1.bf16.msra.mxu0 %v3219_v8  ;;  %3373 = vmatpush1.bf16.msra.mxu1 %v3219_v8 }
  0x12   : > { %s3216_s19 = sshll.u32 %s6270_s14, 4 }
  0x13   : > { %s3638_s22 = scalar_lea.vmem %s6077_s0, %s3216_s19  ;;  %s3385_s19 = smul.u32 48, %s6270_s14 }
  0x14   : > { %v181_v5 = vld [vmem:[%s3638_s22 + $0x10] sm:$0xff]  ;;  %v182_v6 = vld [vmem:[%s3638_s22 + $0x18] sm:$0xff]  ;;  %v179_v7 = vld [vmem:[%s3638_s22] sm:$0xff] }
  0x15   : > { %v282_v9 = vsel %vm277_vm0, %v182_v6, 0.0  ;;  %v180_v10 = vld [vmem:[%s3638_s22 + $0x8] sm:$0xff]  ;;  %v229_v11 = vld [vmem:[%s3638_s22 + $0x190] sm:$0xff]  ;;  %v230_v12 = vld [vmem:[%s3638_s22 + $0x198] sm:$0xff]  ;;  %v474_v26 = vmul.f32 %v179_v7, %v179_v7  ;;  %v477_v29 = vmul.f32 %v182_v6, %v182_v6  ;;  %v476_v34 = vmul.f32 %v181_v5, %v181_v5  ;;  %s5214_s14 = scalar_lea.vmem %s6080_s3, %s3385_s19 }
  0x16   : > { %v283_v13 = vadd.f32 %v282_v9, %v181_v5  ;;  %v278_v14 = vsel %vm277_vm0, %v180_v10, 0.0  ;;  %v378_v15 = vsel %vm277_vm0, %v230_v12, 0.0  ;;  %v183_v16 = vld [vmem:[%s3638_s22 + $0x20] sm:$0xff]  ;;  %v184_v17 = vld [vmem:[%s3638_s22 + $0x28] sm:$0xff]  ;;  %v475_v18 = vmul.f32 %v180_v10, %v180_v10  ;;  %v234_v44 = vld [vmem:[%s3638_s22 + $0x1b8] sm:$0xff] }
  0x17   : > { %v279_v19 = vadd.f32 %v278_v14, %v179_v7  ;;  %v286_v20 = vsel %vm277_vm0, %v184_v17, 0.0  ;;  %v232_v21 = vld [vmem:[%s3638_s22 + $0x1a8] sm:$0xff]  ;;  %v379_v22 = vadd.f32 %v378_v15, %v229_v11  ;;  %v231_v24 = vld [vmem:[%s3638_s22 + $0x1a0] sm:$0xff]  ;;  %v525_v27 = vmul.f32 %v230_v12, %v230_v12  ;;  %v186_v45 = vld [vmem:[%s3638_s22 + $0x38] sm:$0xff] }
  0x18   : > { %284 = vadd.xlane.f32.xlu1 %v283_v13  ;;  %v287_v23 = vadd.f32 %v286_v20, %v183_v16  ;;  %v382_v25 = vsel %vm277_vm0, %v232_v21, 0.0  ;;  %v572_v28 = vsel %vm277_vm0, %v475_v18, 0.0  ;;  %v524_v31 = vmul.f32 %v229_v11, %v229_v11  ;;  %v233_v48 = vld [vmem:[%s3638_s22 + $0x1b0] sm:$0xff]  ;;  %v236_v60 = vld [vmem:[%s3638_s22 + $0x1c8] sm:$0xff]  ;;  %v235_v0 = vld [vmem:[%s3638_s22 + $0x1c0] sm:$0xff] }
  0x19   : > { %280 = vadd.xlane.f32.xlu0 %v279_v19  ;;  %v383_v30 = vadd.f32 %v382_v25, %v231_v24  ;;  %v573_v32 = vadd.f32 %v572_v28, %v474_v26  ;;  %v672_v33 = vsel %vm277_vm0, %v525_v27, 0.0  ;;  %v527_v35 = vmul.f32 %v232_v21, %v232_v21  ;;  %v185_v51 = vld [vmem:[%s3638_s22 + $0x30] sm:$0xff]  ;;  %v188_v61 = vld [vmem:[%s3638_s22 + $0x48] sm:$0xff]  ;;  %v187_v3 = vld [vmem:[%s3638_s22 + $0x40] sm:$0xff] }
  0x1a   : > { %v576_v36 = vsel %vm277_vm0, %v477_v29, 0.0  ;;  %v479_v37 = vmul.f32 %v184_v17, %v184_v17  ;;  %v673_v38 = vadd.f32 %v672_v33, %v524_v31  ;;  %v526_v39 = vmul.f32 %v231_v24, %v231_v24  ;;  %v238_v12 = vld [vmem:[%s3638_s22 + $0x1d8] sm:$0xff]  ;;  %v189_v19 = vld [vmem:[%s3638_s22 + $0x50] sm:$0xff]  ;;  %v240_v28 = vld [vmem:[%s3638_s22 + $0x1e8] sm:$0xff] }
  0x1b   : > { %v577_v40 = vadd.f32 %v576_v36, %v476_v34  ;;  %v676_v41 = vsel %vm277_vm0, %v527_v35, 0.0  ;;  %v478_v42 = vmul.f32 %v183_v16, %v183_v16  ;;  %v386_v49 = vsel %vm277_vm0, %v234_v44, 0.0  ;;  %v190_v13 = vld [vmem:[%s3638_s22 + $0x58] sm:$0xff]  ;;  %v237_v16 = vld [vmem:[%s3638_s22 + $0x1d0] sm:$0xff]  ;;  %v192_v29 = vld [vmem:[%s3638_s22 + $0x68] sm:$0xff] }
  0x1c   : > { %380 = vadd.xlane.f32.xlu1 %v379_v22  ;;  %v580_v43 = vsel %vm277_vm0, %v479_v37, 0.0  ;;  %v677_v46 = vadd.f32 %v676_v41, %v526_v39  ;;  %v529_v50 = vmul.f32 %v234_v44, %v234_v44  ;;  %v290_v52 = vsel %vm277_vm0, %v186_v45, 0.0  ;;  %v191_v35 = vld [vmem:[%s3638_s22 + $0x60] sm:$0xff]  ;;  %v1326_v41 = vld [vmem:[%s6078_s1 + $0x98] sm:$0xff] }
  0x1d   : > { %288 = vadd.xlane.f32.xlu0 %v287_v23  ;;  %v581_v47 = vadd.f32 %v580_v43, %v478_v42  ;;  %v481_v53 = vmul.f32 %v186_v45, %v186_v45  ;;  %v387_v54 = vadd.f32 %v386_v49, %v233_v48  ;;  %v528_v55 = vmul.f32 %v233_v48, %v233_v48  ;;  %v1319_v48 = vld [vmem:[%s6078_s1 + $0x60] sm:$0xff] }
  0x1e   : > { %v291_v56 = vadd.f32 %v290_v52, %v185_v51  ;;  %v680_v57 = vsel %vm277_vm0, %v529_v50, 0.0  ;;  %v480_v58 = vmul.f32 %v185_v51, %v185_v51  ;;  %v390_v1 = vsel %vm277_vm0, %v236_v60, 0.0  ;;  %v1325_v50 = vld [vmem:[%s6078_s1 + $0x90] sm:$0xff]  ;;  %v1332_v51 = vld [vmem:[%s6078_s1 + $0xc8] sm:$0xff]  ;;  %v1338_v52 = vld [vmem:[%s6078_s1 + $0xf8] sm:$0xff] }
  0x1f   : > { %v584_v59 = vsel %vm277_vm0, %v481_v53, 0.0  ;;  %v681_v62 = vadd.f32 %v680_v57, %v528_v55  ;;  %v531_v2 = vmul.f32 %v236_v60, %v236_v60  ;;  %v294_v4 = vsel %vm277_vm0, %v188_v61, 0.0  ;;  %v241_v55 = vld [vmem:[%s3638_s22 + $0x1f0] sm:$0xff] }
  0x20   : > { %384 = vadd.xlane.f32.xlu1 %v383_v30  ;;  %v585_v63 = vadd.f32 %v584_v59, %v480_v58  ;;  %v483_v5 = vmul.f32 %v188_v61, %v188_v61  ;;  %v391_v6 = vadd.f32 %v390_v1, %v235_v0  ;;  %v530_v7 = vmul.f32 %v235_v0, %v235_v0  ;;  %v1331_v58 = vld [vmem:[%s6078_s1 + $0xc0] sm:$0xff]  ;;  %v1337_v59 = vld [vmem:[%s6078_s1 + $0xf0] sm:$0xff]  ;;  %v1344_v1 = vld [vmem:[%s6078_s1 + $0x128] sm:$0xff] }
  0x21   : > { %574 = vadd.xlane.f32.xlu0 %v573_v32  ;;  %v295_v8 = vadd.f32 %v294_v4, %v187_v3  ;;  %v684_v9 = vsel %vm277_vm0, %v531_v2, 0.0  ;;  %v482_v10 = vmul.f32 %v187_v3, %v187_v3  ;;  %v394_v17 = vsel %vm277_vm0, %v238_v12, 0.0  ;;  %v239_v32 = vld [vmem:[%s3638_s22 + $0x1e0] sm:$0xff]  ;;  %v193_v60 = vld [vmem:[%s3638_s22 + $0x70] sm:$0xff]  ;;  %v1350_v2 = vld [vmem:[%s6078_s1 + $0x158] sm:$0xff] }
  0x22   : > { %v588_v11 = vsel %vm277_vm0, %v483_v5, 0.0  ;;  %v685_v14 = vadd.f32 %v684_v9, %v530_v7  ;;  %v533_v18 = vmul.f32 %v238_v12, %v238_v12  ;;  %v298_v20 = vsel %vm277_vm0, %v190_v13, 0.0 }
  0x23   : > { %v589_v15 = vadd.f32 %v588_v11, %v482_v10  ;;  %v485_v21 = vmul.f32 %v190_v13, %v190_v13  ;;  %v395_v22 = vadd.f32 %v394_v17, %v237_v16  ;;  %v532_v23 = vmul.f32 %v237_v16, %v237_v16  ;;  %v1343_v10 = vld [vmem:[%s6078_s1 + $0x120] sm:$0xff]  ;;  %v1349_v11 = vld [vmem:[%s6078_s1 + $0x150] sm:$0xff]  ;;  %v244_v13 = vld [vmem:[%s3638_s22 + $0x208] sm:$0xff] }
  0x24   : > { %674 = vadd.xlane.f32.xlu1 %v673_v38  ;;  %v299_v24 = vadd.f32 %v298_v20, %v189_v19  ;;  %v688_v25 = vsel %vm277_vm0, %v533_v18, 0.0  ;;  %v484_v26 = vmul.f32 %v189_v19, %v189_v19  ;;  %v398_v33 = vsel %vm277_vm0, %v240_v28, 0.0  ;;  %v196_v16 = vld [vmem:[%s3638_s22 + $0x88] sm:$0xff]  ;;  %v243_v20 = vld [vmem:[%s3638_s22 + $0x200] sm:$0xff] }
  0x25   : > { %578 = vadd.xlane.f32.xlu0 %v577_v40  ;;  %v592_v27 = vsel %vm277_vm0, %v485_v21, 0.0  ;;  %v689_v30 = vadd.f32 %v688_v25, %v532_v23  ;;  %v535_v34 = vmul.f32 %v240_v28, %v240_v28  ;;  %v302_v36 = vsel %vm277_vm0, %v192_v29, 0.0  ;;  %v1320_v40 = vld [vmem:[%s6078_s1 + $0x68] sm:$0xff]  ;;  %v1361_v25 = vld [vmem:[%s6078_s1 + $0x1b0] sm:$0xff] }
  0x26   : > { %v593_v31 = vadd.f32 %v592_v27, %v484_v26  ;;  %v487_v37 = vmul.f32 %v192_v29, %v192_v29  ;;  %v399_v38 = vadd.f32 %v398_v33, %v239_v32  ;;  %v534_v39 = vmul.f32 %v239_v32, %v239_v32  ;;  %v195_v26 = vld [vmem:[%s3638_s22 + $0x80] sm:$0xff]  ;;  %v1368_v29 = vld [vmem:[%s6078_s1 + $0x1e8] sm:$0xff] }
  0x27   : > { %v303_v42 = vadd.f32 %v302_v36, %v191_v35  ;;  %v692_v43 = vsel %vm277_vm0, %v535_v34, 0.0  ;;  %v486_v44 = vmul.f32 %v191_v35, %v191_v35  ;;  %v3221_v49 = vpack.c.bf16 %v1326_v41, %v1320_v40  ;;  %v246_v41 = vld [vmem:[%s3638_s22 + $0x218] sm:$0xff] }
  0x28   : > { %678 = vadd.xlane.f32.xlu1 %v677_v46  ;;  %v596_v45 = vsel %vm277_vm0, %v487_v37, 0.0  ;;  %v242_v46 = vld [vmem:[%s3638_s22 + $0x1f8] sm:$0xff]  ;;  %v693_v53 = vadd.f32 %v692_v43, %v534_v39  ;;  %v3225_v0 = vpack.c.bf16 %v1338_v52, %v1332_v51  ;;  %v536_v4 = vmul.f32 %v241_v55, %v241_v55  ;;  %v1373_v39 = vld [vmem:[%s6078_s1 + $0x210] sm:$0xff]  ;;  %v1379_v52 = vld [vmem:[%s6078_s1 + $0x240] sm:$0xff] }
  0x29   : > { %582 = vadd.xlane.f32.xlu0 %v581_v47  ;;  %v194_v47 = vld [vmem:[%s3638_s22 + $0x78] sm:$0xff]  ;;  %v537_v57 = vmul.f32 %v242_v46, %v242_v46  ;;  %3222 = vmatprep.subr.bf16.mxu0 %v3221_v49  ;;  %v3227_v5 = vpack.c.bf16 %v1337_v59, %v1331_v58  ;;  %v3229_v9 = vpack.c.bf16 %v1350_v2, %v1344_v1  ;;  %v406_v21 = vsel %vm277_vm0, %v244_v13, 0.0  ;;  %v1391_v2 = vld [vmem:[%s6078_s1 + $0x2a0] sm:$0xff] }
  0x2a   : > { %v306_v61 = vsel %vm277_vm0, %v194_v47, 0.0  ;;  %3362 = vmatprep.subr.bf16.mxu1 %v3221_v49  ;;  %v3231_v18 = vpack.c.bf16 %v1349_v11, %v1343_v10  ;;  %v310_v27 = vsel %vm277_vm0, %v196_v16, 0.0  ;;  %v491_v28 = vmul.f32 %v196_v16, %v196_v16  ;;  %v1386_v43 = vld [vmem:[%s6078_s1 + $0x278] sm:$0xff]  ;;  %v1403_v16 = vld [vmem:[%s6078_s1 + $0x300] sm:$0xff] }
  0x2b   : > { %v696_v7 = vsel %vm277_vm0, %v537_v57, 0.0  ;;  %v538_v32 = vmul.f32 %v243_v20, %v243_v20  ;;  %v311_v34 = vadd.f32 %v310_v27, %v195_v26  ;;  %v490_v36 = vmul.f32 %v195_v26, %v195_v26  ;;  %v1392_v57 = vld [vmem:[%s6078_s1 + $0x2a8] sm:$0xff]  ;;  %v1398_v58 = vld [vmem:[%s6078_s1 + $0x2d8] sm:$0xff] }
  0x2c   : > { %388 = vadd.xlane.f32.xlu1 %v387_v54  ;;  %v597_v54 = vadd.f32 %v596_v45, %v486_v44  ;;  %v697_v17 = vadd.f32 %v696_v7, %v536_v4  ;;  %v604_v40 = vsel %vm277_vm0, %v491_v28, 0.0  ;;  %v198_v44 = vld [vmem:[%s3638_s22 + $0x98] sm:$0xff]  ;;  %v410_v49 = vsel %vm277_vm0, %v246_v41, 0.0 }
  0x2d   : > { %292 = vadd.xlane.f32.xlu0 %v291_v56  ;;  %v402_v56 = vsel %vm277_vm0, %v242_v46, 0.0  ;;  %v3245_v1 = vpack.c.bf16 %v1398_v58, %v1392_v57  ;;  %v1410_v7 = vld [vmem:[%s6078_s1 + $0x338] sm:$0xff]  ;;  %v1439_v58 = vld [vmem:[%s6078_s1 + $0x420] sm:$0xff] }
  0x2e   : > { %v403_v3 = vadd.f32 %v402_v56, %v241_v55  ;;  %v314_v55 = vsel %vm277_vm0, %v198_v44, 0.0  ;;  %v493_v56 = vmul.f32 %v198_v44, %v198_v44  ;;  %v1427_v44 = vld [vmem:[%s6078_s1 + $0x3c0] sm:$0xff] }
  0x30   : > { %682 = vadd.xlane.f32.xlu1 %v681_v62  ;;  %v489_v62 = vmul.f32 %v194_v47, %v194_v47  ;;  %v605_v47 = vadd.f32 %v604_v40, %v490_v36  ;;  %v608_v4 = vsel %vm277_vm0, %v493_v56, 0.0  ;;  %v202_v36 = vld [vmem:[%s3638_s22 + $0xb8] sm:$0xff]  ;;  %v249_v40 = vld [vmem:[%s3638_s22 + $0x230] sm:$0xff] }
  0x31   : > { %586 = vadd.xlane.f32.xlu0 %v585_v63  ;;  %v3223_v63 = vpack.c.bf16 %v1325_v50, %v1319_v48  ;;  %v245_v48 = vld [vmem:[%s3638_s22 + $0x210] sm:$0xff]  ;;  %v541_v50 = vmul.f32 %v246_v41, %v246_v41 }
  0x32   : > { %v600_v12 = vsel %vm277_vm0, %v489_v62, 0.0  ;;  %v411_v59 = vadd.f32 %v410_v49, %v245_v48  ;;  %v1440_v49 = vld [vmem:[%s6078_s1 + $0x428] sm:$0xff] }
  0x33   : > { %3224 = vmatpush1.bf16.msra.mxu0 %v3223_v63  ;;  %3374 = vmatpush1.bf16.msra.mxu1 %v3223_v63  ;;  %v704_v63 = vsel %vm277_vm0, %v541_v50, 0.0  ;;  %v1446_v50 = vld [vmem:[%s6078_s1 + $0x458] sm:$0xff] }
  0x34   : > { %392 = vadd.xlane.f32.xlu1 %v391_v6  ;;  %v307_v6 = vadd.f32 %v306_v61, %v193_v60  ;;  %3226 = vmatprep.subr.bf16.mxu0 %v3225_v0  ;;  %v3261_v57 = vpack.c.bf16 %v1446_v50, %v1440_v49  ;;  %v257_v50 = vld [vmem:[%s3638_s22 + $0x270] sm:$0xff] }
  0x35   : > { %296 = vadd.xlane.f32.xlu0 %v295_v8  ;;  %v488_v8 = vmul.f32 %v193_v60, %v193_v60  ;;  %3363 = vmatprep.subr.bf16.mxu1 %v3225_v0  ;;  %v540_v60 = vmul.f32 %v245_v48, %v245_v48  ;;  %v497_v48 = vmul.f32 %v202_v36, %v202_v36 }
  0x37   : > { %3228 = vmatpush1.bf16.msra.mxu0 %v3227_v5  ;;  %v601_v19 = vadd.f32 %v600_v12, %v488_v8  ;;  %3375 = vmatpush1.bf16.msra.mxu1 %v3227_v5  ;;  %v248_v5 = vld [vmem:[%s3638_s22 + $0x228] sm:$0xff]  ;;  %v247_v12 = vld [vmem:[%s3638_s22 + $0x220] sm:$0xff] }
  0x38   : > { %686 = vadd.xlane.f32.xlu1 %v685_v14  ;;  %v1356_v14 = vld [vmem:[%s6078_s1 + $0x188] sm:$0xff]  ;;  %3230 = vmatprep.subr.bf16.mxu0 %v3229_v9 }
  0x39   : > { %590 = vadd.xlane.f32.xlu0 %v589_v15  ;;  %v1362_v15 = vld [vmem:[%s6078_s1 + $0x1b8] sm:$0xff]  ;;  %3364 = vmatprep.subr.bf16.mxu1 %v3229_v9  ;;  %v200_v8 = vld [vmem:[%s3638_s22 + $0xa8] sm:$0xff]  ;;  %v705_v9 = vadd.f32 %v704_v63, %v540_v60  ;;  %v616_v60 = vsel %vm277_vm0, %v497_v48, 0.0 }
  0x3a   : > { %v3233_v23 = vpack.c.bf16 %v1362_v15, %v1356_v14  ;;  %v543_v14 = vmul.f32 %v248_v5, %v248_v5 }
  0x3b   : > { %3232 = vmatpush1.bf16.msra.mxu0 %v3231_v18  ;;  %3376 = vmatpush1.bf16.msra.mxu1 %v3231_v18  ;;  %v199_v18 = vld [vmem:[%s3638_s22 + $0xa0] sm:$0xff] }
  0x3c   : > { %396 = vadd.xlane.f32.xlu1 %v395_v22  ;;  %v539_v22 = vmul.f32 %v244_v13, %v244_v13  ;;  %3234 = vmatprep.subr.bf16.mxu0 %v3233_v23  ;;  %v414_v13 = vsel %vm277_vm0, %v248_v5, 0.0  ;;  %v708_v27 = vsel %vm277_vm0, %v543_v14, 0.0  ;;  %v494_v28 = vmul.f32 %v199_v18, %v199_v18  ;;  %v203_v5 = vld [vmem:[%s3638_s22 + $0xc0] sm:$0xff]  ;;  %v254_v14 = vld [vmem:[%s3638_s22 + $0x258] sm:$0xff] }
  0x3d   : > { %300 = vadd.xlane.f32.xlu0 %v299_v24  ;;  %v1355_v24 = vld [vmem:[%s6078_s1 + $0x180] sm:$0xff]  ;;  %3365 = vmatprep.subr.bf16.mxu1 %v3233_v23  ;;  %v415_v23 = vadd.f32 %v414_v13, %v247_v12 }
  0x3e   : > { %v3235_v33 = vpack.c.bf16 %v1361_v25, %v1355_v24  ;;  %v700_v35 = vsel %vm277_vm0, %v539_v22, 0.0  ;;  %v1422_v22 = vld [vmem:[%s6078_s1 + $0x398] sm:$0xff]  ;;  %v542_v24 = vmul.f32 %v247_v12, %v247_v12  ;;  %v498_v12 = vmul.f32 %v203_v5, %v203_v5 }
  0x3f   : > { %v701_v45 = vadd.f32 %v700_v35, %v538_v32  ;;  %v1434_v35 = vld [vmem:[%s6078_s1 + $0x3f8] sm:$0xff] }
  0x40   : > { %690 = vadd.xlane.f32.xlu1 %v689_v30  ;;  %v1374_v30 = vld [vmem:[%s6078_s1 + $0x218] sm:$0xff]  ;;  %3236 = vmatpush1.bf16.msra.mxu0 %v3235_v33 }
  0x41   : > { %594 = vadd.xlane.f32.xlu0 %v593_v31  ;;  %v407_v31 = vadd.f32 %v406_v21, %v243_v20  ;;  %v3237_v37 = vpack.c.bf16 %v1374_v30, %v1368_v29  ;;  %3377 = vmatpush1.bf16.msra.mxu1 %v3235_v33  ;;  %v495_v20 = vmul.f32 %v200_v8, %v200_v8  ;;  %v1416_v21 = vld [vmem:[%s6078_s1 + $0x368] sm:$0xff]  ;;  %v1415_v30 = vld [vmem:[%s6078_s1 + $0x360] sm:$0xff]  ;;  %v250_v33 = vld [vmem:[%s3638_s22 + $0x238] sm:$0xff] }
  0x42   : > { %v3253_v29 = vpack.c.bf16 %v1422_v22, %v1416_v21  ;;  %v418_v41 = vsel %vm277_vm0, %v250_v33, 0.0  ;;  %v205_v21 = vld [vmem:[%s3638_s22 + $0xd0] sm:$0xff] }
  0x43   : > { %3238 = vmatprep.subr.bf16.mxu0 %v3237_v37  ;;  %3366 = vmatprep.subr.bf16.mxu1 %v3237_v37  ;;  %v612_v32 = vsel %vm277_vm0, %v495_v20, 0.0  ;;  %v709_v37 = vadd.f32 %v708_v27, %v542_v24  ;;  %v549_v20 = vmul.f32 %v254_v14, %v254_v14 }
  0x44   : > { %400 = vadd.xlane.f32.xlu1 %v399_v38  ;;  %v1367_v38 = vld [vmem:[%s6078_s1 + $0x1e0] sm:$0xff] }
  0x45   : > { %304 = vadd.xlane.f32.xlu0 %v303_v42  ;;  %v1380_v42 = vld [vmem:[%s6078_s1 + $0x248] sm:$0xff]  ;;  %v3239_v46 = vpack.c.bf16 %v1373_v39, %v1367_v38  ;;  %v613_v39 = vadd.f32 %v612_v32, %v494_v28  ;;  %v720_v27 = vsel %vm277_vm0, %v549_v20, 0.0  ;;  %v500_v28 = vmul.f32 %v205_v21, %v205_v21 }
  0x46   : > { %v3241_v51 = vpack.c.bf16 %v1386_v43, %v1380_v42  ;;  %v545_v42 = vmul.f32 %v250_v33, %v250_v33 }
  0x47   : > { %3240 = vmatpush1.bf16.msra.mxu0 %v3239_v46  ;;  %3378 = vmatpush1.bf16.msra.mxu1 %v3239_v46  ;;  %v201_v46 = vld [vmem:[%s3638_s22 + $0xb0] sm:$0xff] }
  0x48   : > { %694 = vadd.xlane.f32.xlu1 %v693_v53  ;;  %v1385_v53 = vld [vmem:[%s6078_s1 + $0x270] sm:$0xff]  ;;  %3242 = vmatprep.subr.bf16.mxu0 %v3241_v51  ;;  %v496_v56 = vmul.f32 %v201_v46, %v201_v46 }
  0x49   : > { %598 = vadd.xlane.f32.xlu0 %v597_v54  ;;  %v197_v54 = vld [vmem:[%s3638_s22 + $0x90] sm:$0xff]  ;;  %v3243_v61 = vpack.c.bf16 %v1385_v53, %v1379_v52  ;;  %3367 = vmatprep.subr.bf16.mxu1 %v3241_v51  ;;  %v419_v51 = vadd.f32 %v418_v41, %v249_v40  ;;  %v544_v52 = vmul.f32 %v249_v40, %v249_v40 }
  0x4a   : > { %v315_v62 = vadd.f32 %v314_v55, %v197_v54  ;;  %v492_v0 = vmul.f32 %v197_v54, %v197_v54  ;;  %v712_v55 = vsel %vm277_vm0, %v545_v42, 0.0 }
  0x4b   : > { %3244 = vmatpush1.bf16.msra.mxu0 %v3243_v61  ;;  %3379 = vmatpush1.bf16.msra.mxu1 %v3243_v61  ;;  %v252_v61 = vld [vmem:[%s3638_s22 + $0x248] sm:$0xff]  ;;  %v713_v63 = vadd.f32 %v712_v55, %v544_v52 }
  0x4c   : > { %404 = vadd.xlane.f32.xlu1 %v403_v3  ;;  %v1397_v3 = vld [vmem:[%s6078_s1 + $0x2d0] sm:$0xff]  ;;  %v609_v11 = vadd.f32 %v608_v4, %v492_v0  ;;  %3246 = vmatprep.subr.bf16.mxu0 %v3245_v1  ;;  %v547_v4 = vmul.f32 %v252_v61, %v252_v61 }
  0x4d   : > { %308 = vadd.xlane.f32.xlu0 %v307_v6  ;;  %v1404_v6 = vld [vmem:[%s6078_s1 + $0x308] sm:$0xff]  ;;  %v3247_v10 = vpack.c.bf16 %v1397_v3, %v1391_v2  ;;  %3368 = vmatprep.subr.bf16.mxu1 %v3245_v1  ;;  %v617_v1 = vadd.f32 %v616_v60, %v496_v56  ;;  %v251_v2 = vld [vmem:[%s3638_s22 + $0x240] sm:$0xff]  ;;  %v422_v3 = vsel %vm277_vm0, %v252_v61, 0.0 }
  0x4e   : > { %v3249_v15 = vpack.c.bf16 %v1410_v7, %v1404_v6 }
  0x4f   : > { %3248 = vmatpush1.bf16.msra.mxu0 %v3247_v10  ;;  %3380 = vmatpush1.bf16.msra.mxu1 %v3247_v10 }
  0x50   : > { %698 = vadd.xlane.f32.xlu1 %v697_v17  ;;  %v1409_v17 = vld [vmem:[%s6078_s1 + $0x330] sm:$0xff]  ;;  %3250 = vmatprep.subr.bf16.mxu0 %v3249_v15 }
  0x51   : > { %602 = vadd.xlane.f32.xlu0 %v601_v19  ;;  %v318_v19 = vsel %vm277_vm0, %v200_v8, 0.0  ;;  %v3251_v25 = vpack.c.bf16 %v1409_v17, %v1403_v16  ;;  %3369 = vmatprep.subr.bf16.mxu1 %v3249_v15  ;;  %v423_v8 = vadd.f32 %v422_v3, %v251_v2  ;;  %v206_v15 = vld [vmem:[%s3638_s22 + $0xd8] sm:$0xff] }
  0x52   : > { %v319_v26 = vadd.f32 %v318_v19, %v199_v18  ;;  %v253_v18 = vld [vmem:[%s3638_s22 + $0x250] sm:$0xff]  ;;  %v426_v19 = vsel %vm277_vm0, %v254_v14, 0.0  ;;  %v330_v22 = vsel %vm277_vm0, %v206_v15, 0.0  ;;  %v262_v14 = vld [vmem:[%s3638_s22 + $0x298] sm:$0xff] }
  0x53   : > { %3252 = vmatpush1.bf16.msra.mxu0 %v3251_v25  ;;  %3381 = vmatpush1.bf16.msra.mxu1 %v3251_v25  ;;  %v427_v24 = vadd.f32 %v426_v19, %v253_v18  ;;  %v548_v25 = vmul.f32 %v253_v18, %v253_v18  ;;  %v261_v18 = vld [vmem:[%s3638_s22 + $0x290] sm:$0xff]  ;;  %v442_v19 = vsel %vm277_vm0, %v262_v14, 0.0  ;;  %v557_v20 = vmul.f32 %v262_v14, %v262_v14 }
  0x54   : > { %408 = vadd.xlane.f32.xlu1 %v407_v31  ;;  %v1421_v31 = vld [vmem:[%s6078_s1 + $0x390] sm:$0xff]  ;;  %3254 = vmatprep.subr.bf16.mxu0 %v3253_v29 }
  0x55   : > { %312 = vadd.xlane.f32.xlu0 %v311_v34  ;;  %v1428_v34 = vld [vmem:[%s6078_s1 + $0x3c8] sm:$0xff]  ;;  %v3255_v38 = vpack.c.bf16 %v1421_v31, %v1415_v30  ;;  %3370 = vmatprep.subr.bf16.mxu1 %v3253_v29  ;;  %v721_v32 = vadd.f32 %v720_v27, %v548_v25  ;;  %v556_v25 = vmul.f32 %v261_v18, %v261_v18  ;;  %v736_v27 = vsel %vm277_vm0, %v557_v20, 0.0 }
  0x56   : > { %v3257_v43 = vpack.c.bf16 %v1434_v35, %v1428_v34  ;;  %v256_v30 = vld [vmem:[%s3638_s22 + $0x268] sm:$0xff]  ;;  %v255_v34 = vld [vmem:[%s3638_s22 + $0x260] sm:$0xff] }
  0x57   : > { %3256 = vmatpush1.bf16.msra.mxu0 %v3255_v38  ;;  %3382 = vmatpush1.bf16.msra.mxu1 %v3255_v38  ;;  %v208_v31 = vld [vmem:[%s3638_s22 + $0xe8] sm:$0xff]  ;;  %v430_v35 = vsel %vm277_vm0, %v256_v30, 0.0  ;;  %v550_v41 = vmul.f32 %v255_v34, %v255_v34 }
  0x58   : > { %702 = vadd.xlane.f32.xlu1 %v701_v45  ;;  %v1433_v45 = vld [vmem:[%s6078_s1 + $0x3f0] sm:$0xff]  ;;  %3258 = vmatprep.subr.bf16.mxu0 %v3257_v43  ;;  %v334_v38 = vsel %vm277_vm0, %v208_v31, 0.0  ;;  %v431_v40 = vadd.f32 %v430_v35, %v255_v34  ;;  %v263_v34 = vld [vmem:[%s3638_s22 + $0x2a0] sm:$0xff] }
  0x59   : > { %606 = vadd.xlane.f32.xlu0 %v605_v47  ;;  %v322_v47 = vsel %vm277_vm0, %v202_v36, 0.0  ;;  %v3259_v53 = vpack.c.bf16 %v1433_v45, %v1427_v44  ;;  %3371 = vmatprep.subr.bf16.mxu1 %v3257_v43  ;;  %v551_v36 = vmul.f32 %v256_v30, %v256_v30  ;;  %v264_v30 = vld [vmem:[%s3638_s22 + $0x2a8] sm:$0xff] }
  0x5a   : > { %v323_v54 = vadd.f32 %v322_v47, %v201_v46  ;;  %v258_v46 = vld [vmem:[%s3638_s22 + $0x278] sm:$0xff]  ;;  %v446_v35 = vsel %vm277_vm0, %v264_v30, 0.0 }
  0x5b   : > { %3260 = vmatpush1.bf16.msra.mxu0 %v3259_v53  ;;  %3383 = vmatpush1.bf16.msra.mxu1 %v3259_v53  ;;  %v724_v43 = vsel %vm277_vm0, %v551_v36, 0.0  ;;  %v210_v47 = vld [vmem:[%s3638_s22 + $0xf8] sm:$0xff]  ;;  %v553_v52 = vmul.f32 %v258_v46, %v258_v46  ;;  %v209_v53 = vld [vmem:[%s3638_s22 + $0xf0] sm:$0xff]  ;;  %v559_v36 = vmul.f32 %v264_v30, %v264_v30 }
  0x5c   : > { %412 = vadd.xlane.f32.xlu1 %v411_v59  ;;  %v1445_v59 = vld [vmem:[%s6078_s1 + $0x450] sm:$0xff]  ;;  %3262 = vmatprep.subr.bf16.mxu0 %v3261_v57  ;;  %v725_v48 = vadd.f32 %v724_v43, %v550_v41  ;;  %v505_v55 = vmul.f32 %v210_v47, %v210_v47  ;;  %v504_v60 = vmul.f32 %v209_v53, %v209_v53  ;;  %v1318_v41 = vld [vmem:[%s6078_s1 + $0x58] sm:$0xff] }
  0x5d   : > { %316 = vadd.xlane.f32.xlu0 %v315_v62  ;;  %v204_v62 = vld [vmem:[%s3638_s22 + $0xc8] sm:$0xff]  ;;  %v3263_v0 = vpack.c.bf16 %v1445_v59, %v1439_v58  ;;  %3372 = vmatprep.subr.bf16.mxu1 %v3261_v57  ;;  %v552_v57 = vmul.f32 %v257_v50, %v257_v50  ;;  %v728_v59 = vsel %vm277_vm0, %v553_v52, 0.0  ;;  %v558_v43 = vmul.f32 %v263_v34, %v263_v34  ;;  %v265_v52 = vld [vmem:[%s3638_s22 + $0x2b0] sm:$0xff] }
  0x5e   : > { %v326_v6 = vsel %vm277_vm0, %v204_v62, 0.0  ;;  %v499_v7 = vmul.f32 %v204_v62, %v204_v62  ;;  %v632_v61 = vsel %vm277_vm0, %v505_v55, 0.0  ;;  %v260_v62 = vld [vmem:[%s3638_s22 + $0x288] sm:$0xff] }
  0x5f   : > { %3264 = vmatpush1.bf16.msra.mxu0 %v3263_v0  ;;  %v327_v10 = vadd.f32 %v326_v6, %v203_v5  ;;  %3384 = vmatpush1.bf16.msra.mxu1 %v3263_v0  ;;  %v729_v0 = vadd.f32 %v728_v59, %v552_v57  ;;  %v438_v3 = vsel %vm277_vm0, %v260_v62, 0.0  ;;  %v211_v5 = vld [vmem:[%s3638_s22 + $0x100] sm:$0xff]  ;;  %v220_v59 = vld [vmem:[%s3638_s22 + $0x148] sm:$0xff] }
  0x60   : > { %706 = vadd.xlane.f32.xlu1 %v705_v9  ;;  %v546_v9 = vmul.f32 %v251_v2, %v251_v2  ;;  %v620_v13 = vsel %vm277_vm0, %v499_v7, 0.0  ;;  %v259_v2 = vld [vmem:[%s3638_s22 + $0x280] sm:$0xff] }
  0x61   : > { %610 = vadd.xlane.f32.xlu0 %v609_v11  ;;  %v716_v11 = vsel %vm277_vm0, %v547_v4, 0.0  ;;  %v621_v17 = vadd.f32 %v620_v13, %v498_v12  ;;  %v555_v4 = vmul.f32 %v260_v62, %v260_v62  ;;  %v506_v12 = vmul.f32 %v211_v5, %v211_v5  ;;  %v267_v62 = vld [vmem:[%s3638_s22 + $0x2c0] sm:$0xff] }
  0x62   : > { %v717_v16 = vadd.f32 %v716_v11, %v546_v9  ;;  %v554_v9 = vmul.f32 %v259_v2, %v259_v2 }
  0x63   : > { %v732_v11 = vsel %vm277_vm0, %v555_v4, 0.0  ;;  %v515_v4 = vmul.f32 %v220_v59, %v220_v59 }
  0x64   : > { %416 = vadd.xlane.f32.xlu1 %v415_v23  ;;  %v501_v23 = vmul.f32 %v206_v15, %v206_v15  ;;  %v214_v15 = vld [vmem:[%s3638_s22 + $0x118] sm:$0xff] }
  0x65   : > { %320 = vadd.xlane.f32.xlu0 %v319_v26  ;;  %v331_v26 = vadd.f32 %v330_v22, %v205_v21  ;;  %v213_v21 = vld [vmem:[%s3638_s22 + $0x110] sm:$0xff]  ;;  %v346_v22 = vsel %vm277_vm0, %v214_v15, 0.0 }
  0x66   : > { %v624_v29 = vsel %vm277_vm0, %v501_v23, 0.0  ;;  %v509_v23 = vmul.f32 %v214_v15, %v214_v15  ;;  %v562_v15 = vmul.f32 %v267_v62, %v267_v62 }
  0x67   : > { %v625_v33 = vadd.f32 %v624_v29, %v500_v28  ;;  %v508_v28 = vmul.f32 %v213_v21, %v213_v21 }
  0x68   : > { %710 = vadd.xlane.f32.xlu1 %v709_v37  ;;  %v207_v37 = vld [vmem:[%s3638_s22 + $0xe0] sm:$0xff]  ;;  %v640_v29 = vsel %vm277_vm0, %v509_v23, 0.0 }
  0x69   : > { %614 = vadd.xlane.f32.xlu0 %v613_v39  ;;  %v503_v39 = vmul.f32 %v208_v31, %v208_v31  ;;  %v335_v42 = vadd.f32 %v334_v38, %v207_v37  ;;  %v502_v44 = vmul.f32 %v207_v37, %v207_v37  ;;  %v216_v31 = vld [vmem:[%s3638_s22 + $0x128] sm:$0xff]  ;;  %v215_v37 = vld [vmem:[%s3638_s22 + $0x120] sm:$0xff] }
  0x6a   : > { %v350_v38 = vsel %vm277_vm0, %v216_v31, 0.0 }
  0x6b   : > { %v628_v45 = vsel %vm277_vm0, %v503_v39, 0.0  ;;  %v511_v39 = vmul.f32 %v216_v31, %v216_v31 }
  0x6c   : > { %420 = vadd.xlane.f32.xlu1 %v419_v51  ;;  %v629_v49 = vadd.f32 %v628_v45, %v502_v44  ;;  %v434_v51 = vsel %vm277_vm0, %v258_v46, 0.0  ;;  %v266_v44 = vld [vmem:[%s3638_s22 + $0x2b8] sm:$0xff]  ;;  %v351_v46 = vadd.f32 %v350_v38, %v215_v37 }
  0x6d   : > { %324 = vadd.xlane.f32.xlu0 %v323_v54  ;;  %v338_v54 = vsel %vm277_vm0, %v210_v47, 0.0  ;;  %v435_v56 = vadd.f32 %v434_v51, %v257_v50  ;;  %v740_v47 = vsel %vm277_vm0, %v559_v36, 0.0  ;;  %v644_v50 = vsel %vm277_vm0, %v511_v39, 0.0  ;;  %v268_v51 = vld [vmem:[%s3638_s22 + $0x2c8] sm:$0xff] }
  0x6e   : > { %v339_v58 = vadd.f32 %v338_v54, %v209_v53  ;;  %v450_v53 = vsel %vm277_vm0, %v266_v44, 0.0  ;;  %v561_v54 = vmul.f32 %v266_v44, %v266_v44  ;;  %v741_v55 = vadd.f32 %v740_v47, %v558_v43 }
  0x70   : > { %714 = vadd.xlane.f32.xlu1 %v713_v63  ;;  %v212_v63 = vld [vmem:[%s3638_s22 + $0x108] sm:$0xff] }
  0x71   : > { %618 = vadd.xlane.f32.xlu0 %v617_v1  ;;  %v633_v1 = vadd.f32 %v632_v61, %v504_v60  ;;  %v342_v6 = vsel %vm277_vm0, %v212_v63, 0.0  ;;  %v507_v7 = vmul.f32 %v212_v63, %v212_v63  ;;  %v454_v63 = vsel %vm277_vm0, %v268_v51, 0.0 }
  0x72   : > { %v3953_v14 = vadd.f32 %v454_v63, %v267_v62 }
  0x73   : > { %v636_v13 = vsel %vm277_vm0, %v507_v7, 0.0  ;;  %v744_v7 = vsel %vm277_vm0, %v561_v54, 0.0 }
  0x74   : > { %424 = vadd.xlane.f32.xlu1 %v423_v8  ;;  %v439_v8 = vadd.f32 %v438_v3, %v259_v2  ;;  %v451_v2 = vadd.f32 %v450_v53, %v265_v52  ;;  %v560_v3 = vmul.f32 %v265_v52, %v265_v52  ;;  %v274_v52 = vld [vmem:[%s3638_s22 + $0x2f8] sm:$0xff] }
  0x75   : > { %328 = vadd.xlane.f32.xlu0 %v327_v10  ;;  %v343_v10 = vadd.f32 %v342_v6, %v211_v5  ;;  %v270_v5 = vld [vmem:[%s3638_s22 + $0x2d8] sm:$0xff] }
  0x76   : > { %v458_v23 = vsel %vm277_vm0, %v270_v5, 0.0 }
  0x78   : > { %718 = vadd.xlane.f32.xlu1 %v717_v16  ;;  %v733_v16 = vadd.f32 %v732_v11, %v554_v9  ;;  %v219_v9 = vld [vmem:[%s3638_s22 + $0x140] sm:$0xff]  ;;  %v1310_v11 = vld [vmem:[%s6078_s1 + $0x18] sm:$0xff] }
  0x79   : > { %622 = vadd.xlane.f32.xlu0 %v621_v17  ;;  %v637_v17 = vadd.f32 %v636_v13, %v506_v12  ;;  %v1316_v12 = vld [vmem:[%s6078_s1 + $0x48] sm:$0xff] }
  0x7c   : > { %428 = vadd.xlane.f32.xlu1 %v427_v24  ;;  %v443_v24 = vadd.f32 %v442_v19, %v261_v18  ;;  %v3265_v18 = vpack.c.bf16 %v1316_v12, %v1310_v11 }
  0x7d   : > { %332 = vadd.xlane.f32.xlu0 %v331_v26  ;;  %v347_v26 = vadd.f32 %v346_v22, %v213_v21  ;;  %v514_v21 = vmul.f32 %v219_v9, %v219_v9  ;;  %v269_v22 = vld [vmem:[%s3638_s22 + $0x2d0] sm:$0xff] }
  0x7e   : > { %3266 = vmatprep.subr.bf16.mxu1 %v3265_v18  ;;  %v3970_v38 = vadd.f32 %v458_v23, %v269_v22  ;;  %v564_v39 = vmul.f32 %v269_v22, %v269_v22  ;;  %v569_v23 = vmul.f32 %v274_v52, %v274_v52 }
  0x80   : > { %722 = vadd.xlane.f32.xlu1 %v721_v32  ;;  %v737_v32 = vadd.f32 %v736_v27, %v556_v25  ;;  %v224_v25 = vld [vmem:[%s3638_s22 + $0x168] sm:$0xff]  ;;  %v745_v27 = vadd.f32 %v744_v7, %v560_v3  ;;  %v466_v3 = vsel %vm277_vm0, %v274_v52, 0.0  ;;  %v760_v52 = vsel %vm277_vm0, %v569_v23, 0.0 }
  0x81   : > { %626 = vadd.xlane.f32.xlu0 %v625_v33  ;;  %v641_v33 = vadd.f32 %v640_v29, %v508_v28  ;;  %v652_v29 = vsel %vm277_vm0, %v515_v4, 0.0  ;;  %v519_v62 = vmul.f32 %v224_v25, %v224_v25 }
  0x82   : > { %v3974_v43 = vadd.f32 %v652_v29, %v514_v21  ;;  %v276_v29 = vld [vmem:[%s3638_s22 + $0x308] sm:$0xff] }
  0x84   : > { %432 = vadd.xlane.f32.xlu1 %v431_v40  ;;  %v1312_v40 = vld [vmem:[%s6078_s1 + $0x28] sm:$0xff] }
  0x85   : > { %336 = vadd.xlane.f32.xlu0 %v335_v42  ;;  %v447_v42 = vadd.f32 %v446_v35, %v263_v34  ;;  %v3313_v45 = vpack.c.bf16 %v1318_v41, %v1312_v40  ;;  %v271_v35 = vld [vmem:[%s3638_s22 + $0x2e0] sm:$0xff]  ;;  %v366_v41 = vsel %vm277_vm0, %v224_v25, 0.0 }
  0x86   : > { %v223_v40 = vld [vmem:[%s3638_s22 + $0x160] sm:$0xff] }
  0x87   : > { %3314 = vmatprep.subr.bf16.mxu0 %v3313_v45 }
  0x88   : > { %726 = vadd.xlane.f32.xlu1 %v725_v48  ;;  %v510_v48 = vmul.f32 %v215_v37, %v215_v37 }
  0x89   : > { %630 = vadd.xlane.f32.xlu0 %v629_v49  ;;  %v218_v49 = vld [vmem:[%s3638_s22 + $0x138] sm:$0xff] }
  0x8a   : > { %v354_v57 = vsel %vm277_vm0, %v218_v49, 0.0  ;;  %v645_v61 = vadd.f32 %v644_v50, %v510_v48 }
  0x8c   : > { %436 = vadd.xlane.f32.xlu1 %v435_v56  ;;  %v217_v56 = vld [vmem:[%s3638_s22 + $0x130] sm:$0xff] }
  0x8d   : > { %340 = vadd.xlane.f32.xlu0 %v339_v58  ;;  %v513_v58 = vmul.f32 %v218_v49, %v218_v49  ;;  %v355_v6 = vadd.f32 %v354_v57, %v217_v56  ;;  %v226_v57 = vld [vmem:[%s3638_s22 + $0x178] sm:$0xff] }
  0x8f   : > { %v648_v13 = vsel %vm277_vm0, %v513_v58, 0.0 }
  0x90   : > { %730 = vadd.xlane.f32.xlu1 %v729_v0  ;;  %v563_v0 = vmul.f32 %v268_v51, %v268_v51 }
  0x91   : > { %634 = vadd.xlane.f32.xlu0 %v633_v1 }
  0x92   : > { %v748_v20 = vsel %vm277_vm0, %v563_v0, 0.0 }
  0x93   : > { %v3968_v37 = vadd.f32 %v748_v20, %v562_v15 }
  0x94   : > { %440 = vadd.xlane.f32.xlu1 %v439_v8  ;;  %v512_v8 = vmul.f32 %v217_v56, %v217_v56  ;;  %v3989_v56 = vadd.f32 %v366_v41, %v223_v40 }
  0x95   : > { %344 = vadd.xlane.f32.xlu0 %v343_v10  ;;  %v358_v10 = vsel %vm277_vm0, %v220_v59, 0.0  ;;  %v566_v59 = vmul.f32 %v271_v35, %v271_v35 }
  0x96   : > { %v359_v28 = vadd.f32 %v358_v10, %v219_v9  ;;  %v370_v9 = vsel %vm277_vm0, %v226_v57, 0.0 }
  0x98   : > { %734 = vadd.xlane.f32.xlu1 %v733_v16  ;;  %v222_v16 = vld [vmem:[%s3638_s22 + $0x158] sm:$0xff] }
  0x99   : > { %638 = vadd.xlane.f32.xlu0 %v637_v17  ;;  %v272_v17 = vld [vmem:[%s3638_s22 + $0x2e8] sm:$0xff]  ;;  %v517_v30 = vmul.f32 %v222_v16, %v222_v16  ;;  %v362_v34 = vsel %vm277_vm0, %v222_v16, 0.0 }
  0x9a   : > { %v462_v36 = vsel %vm277_vm0, %v272_v17, 0.0 }
  0x9b   : > { %v656_v50 = vsel %vm277_vm0, %v517_v30, 0.0  ;;  %v3982_v51 = vadd.f32 %v462_v36, %v271_v35  ;;  %v4023_v30 = vld [vmem:[%s3638_s22 + $0x188] sm:$0xff] }
  0x9c   : > { %444 = vadd.xlane.f32.xlu1 %v443_v24  ;;  %v565_v24 = vmul.f32 %v270_v5, %v270_v5 }
  0x9d   : > { %348 = vadd.xlane.f32.xlu0 %v347_v26 }
  0x9e   : > { %v752_v44 = vsel %vm277_vm0, %v565_v24, 0.0 }
  0x9f   : > { %v3992_v58 = vadd.f32 %v752_v44, %v564_v39  ;;  %v470_v44 = vsel %vm277_vm0, %v276_v29, 0.0 }
  0xa0   : > { %738 = vadd.xlane.f32.xlu1 %v737_v32  ;;  %v649_v32 = vadd.f32 %v648_v13, %v512_v8  ;;  %v225_v8 = vld [vmem:[%s3638_s22 + $0x170] sm:$0xff] }
  0xa1   : > { %642 = vadd.xlane.f32.xlu0 %v641_v33  ;;  %v221_v33 = vld [vmem:[%s3638_s22 + $0x150] sm:$0xff]  ;;  %v4017_v22 = vadd.f32 %v370_v9, %v225_v8  ;;  %v520_v39 = vmul.f32 %v225_v8, %v225_v8 }
  0xa2   : > { %v516_v45 = vmul.f32 %v221_v33, %v221_v33  ;;  %v3979_v49 = vadd.f32 %v362_v34, %v221_v33 }
  0xa4   : > { %448 = vadd.xlane.f32.xlu1 %v447_v42 }
  0xa5   : > { %352 = vadd.xlane.f32.xlu0 %v351_v46  ;;  %v285_v60 = vpop.xlane.xlu1 %284  ;;  %v567_v46 = vmul.f32 %v272_v17, %v272_v17  ;;  %v660_v17 = vsel %vm277_vm0, %v519_v62, 0.0 }
  0xa6   : > { %v281_v1 = vpop.xlane.xlu0 %280  ;;  %v3985_v53 = vmul.f32 0.0052083335, %v285_v60  ;;  %v3996_v60 = vadd.f32 %v656_v50, %v516_v45  ;;  %v374_v45 = vsel %vm277_vm0, %v4023_v30, 0.0 }
  0xa7   : > { %v3962_v31 = vmul.f32 0.0052083335, %v281_v1  ;;  %v756_v1 = vsel %vm277_vm0, %v567_v46, 0.0 }
  0xa8   : > { %742 = vadd.xlane.f32.xlu1 %v741_v55  ;;  %v867_v12 = vmul.f32 %v3985_v53, %v3985_v53  ;;  %v4012_v16 = vadd.f32 %v756_v1, %v566_v59 }
  0xa9   : > { %646 = vadd.xlane.f32.xlu0 %v645_v61  ;;  %v381_v19 = vpop.xlane.xlu1 %380  ;;  %v866_v54 = vmul.f32 %v3962_v31, %v3962_v31  ;;  %v3994_v61 = vmul.f32 %v223_v40, %v223_v40 }
  0xaa   : > { %v289_v26 = vpop.xlane.xlu0 %288  ;;  %v3977_v47 = vmul.f32 0.0052083335, %v381_v19 }
  0xab   : > { %v4007_v10 = vmul.f32 0.0052083335, %v289_v26  ;;  %v4042_v62 = vadd.f32 %v660_v17, %v3994_v61  ;;  %v4063_v61 = vld [vmem:[%s6078_s1 + $0x50] sm:$0xff] }
  0xac   : > { %452 = vadd.xlane.f32.xlu1 %v451_v2  ;;  %v273_v2 = vld [vmem:[%s3638_s22 + $0x2f0] sm:$0xff]  ;;  %v891_v5 = vmul.f32 %v3977_v47, %v3977_v47 }
  0xad   : > { %356 = vadd.xlane.f32.xlu0 %v355_v6  ;;  %v385_v42 = vpop.xlane.xlu1 %384  ;;  %v4015_v18 = vadd.f32 %v466_v3, %v273_v2  ;;  %v868_v33 = vmul.f32 %v4007_v10, %v4007_v10  ;;  %v568_v36 = vmul.f32 %v273_v2, %v273_v2 }
  0xae   : > { %v575_v48 = vpop.xlane.xlu0 %574  ;;  %v4001_v4 = vmul.f32 0.0052083335, %v385_v42 }
  0xaf   : > { %v817_v55 = vmul.f32 0.0052083335, %v575_v48  ;;  %v4049_v3 = vadd.f32 %v760_v52, %v568_v36 }
  0xb0   : > { %746 = vadd.xlane.f32.xlu1 %v745_v27  ;;  %v892_v25 = vmul.f32 %v4001_v4, %v4001_v4  ;;  %v521_v27 = vmul.f32 %v226_v57, %v226_v57 }
  0xb1   : > { %v915_v63 = vsub.f32 %v817_v55, %v866_v54  ;;  %650 = vadd.xlane.f32.xlu0 %v649_v32  ;;  %v675_v0 = vpop.xlane.xlu1 %674  ;;  %v227_v54 = vld [vmem:[%s3638_s22 + $0x180] sm:$0xff] }
  0xb2   : > { %v842_v6 = vmul.f32 0.0052083335, %v675_v0  ;;  %v579_v7 = vpop.xlane.xlu0 %578  ;;  %v4046_v0 = vmul.f32 %v276_v29, %v276_v29  ;;  %v4081_v17 = vmul.f32 %v227_v54, %v227_v54  ;;  %v3494_v29 = vld [vmem:[%s3638_s22 + $0x10] sm:$0xff] }
  0xb3   : > { %v964_v11 = vmax.f32 %v915_v63, 0.0  ;;  %v818_v13 = vmul.f32 0.0052083335, %v579_v7 }
  0xb4   : > { %v940_v15 = vsub.f32 %v842_v6, %v891_v5  ;;  %456 = vadd.xlane.f32.xlu1 %v3953_v14  ;;  %v4053_v6 = vadd.f32 %v374_v45, %v227_v54 }
  0xb5   : > { %v1013_v19 = vadd.f32 1e-05, %v964_v11  ;;  %v916_v20 = vsub.f32 %v818_v13, %v867_v12  ;;  %360 = vadd.xlane.f32.xlu0 %v359_v28  ;;  %v679_v21 = vpop.xlane.xlu1 %678  ;;  %v4072_v11 = vld [vmem:[%s6078_s1 + $0x10] sm:$0xff]  ;;  %v4077_v12 = vld [vmem:[%s6078_s1 + $0x40] sm:$0xff] }
  0xb6   : > { %v989_v24 = vmax.f32 %v940_v15, 0.0  ;;  %v843_v26 = vmul.f32 0.0052083335, %v679_v21  ;;  %v583_v14 = vpop.xlane.xlu0 %582  ;;  %v3493_v21 = vld [vmem:[%s3638_s22 + $0x8] sm:$0xff] }
  0xb7   : > { %3394 = vrsqrt.f32 %v1013_v19  ;;  %v965_v32 = vmax.f32 %v916_v20, 0.0  ;;  %v819_v28 = vmul.f32 0.0052083335, %v583_v14  ;;  %v3492_v19 = vld [vmem:[%s3638_s22] sm:$0xff]  ;;  %v1112_v23 = vsub.f32 %v3493_v21, %v3962_v31  ;;  %v1330_v14 = vld [vmem:[%s6078_s1 + $0xb8] sm:$0xff] }
  0xb8   : > { %v1038_v34 = vadd.f32 1e-05, %v989_v24  ;;  %v941_v35 = vsub.f32 %v843_v26, %v892_v25  ;;  %750 = vadd.xlane.f32.xlu1 %v3968_v37  ;;  %v275_v37 = vld [vmem:[%s3638_s22 + $0x300] sm:$0xff]  ;;  %v1111_v20 = vsub.f32 %v3492_v19, %v3962_v31  ;;  %v1324_v26 = vld [vmem:[%s6078_s1 + $0x88] sm:$0xff]  ;;  %v3495_v31 = vld [vmem:[%s3638_s22 + $0x18] sm:$0xff] }
  0xb9   : > { %v1014_v40 = vadd.f32 1e-05, %v965_v32  ;;  %v917_v41 = vsub.f32 %v819_v28, %v868_v33  ;;  %654 = vadd.xlane.f32.xlu0 %v3974_v43  ;;  %v389_v42 = vpop.xlane.xlu1 %388  ;;  %v664_v43 = vsel %vm277_vm0, %v521_v27, 0.0  ;;  %v4044_v63 = vmul.f32 %v275_v37, %v275_v37  ;;  %v4143_v19 = vld [vmem:[%s6078_s1 + $0x78] sm:$0xff] }
  0xba   : > { %3396 = vrsqrt.f32 %v1038_v34  ;;  %v990_v46 = vmax.f32 %v941_v35, 0.0  ;;  %v4032_v48 = vmul.f32 0.0052083335, %v389_v42  ;;  %v293_v50 = vpop.xlane.xlu0 %292  ;;  %v4051_v5 = vadd.f32 %v470_v44, %v275_v37  ;;  %v3496_v42 = vld [vmem:[%s3638_s22 + $0x190] sm:$0xff]  ;;  %v3498_v37 = vld [vmem:[%s3638_s22 + $0x20] sm:$0xff] }
  0xbb   : > { %3398 = vrsqrt.f32 %v1014_v40  ;;  %v966_v55 = vmax.f32 %v917_v41, 0.0  ;;  %v4037_v57 = vmul.f32 0.0052083335, %v293_v50  ;;  %v4067_v9 = vadd.f32 %v664_v43, %v520_v39  ;;  %v3497_v50 = vld [vmem:[%s3638_s22 + $0x198] sm:$0xff] }
  0xbc   : > { %v1039_v59 = vadd.f32 1e-05, %v990_v46  ;;  %460 = vadd.xlane.f32.xlu1 %v3970_v38  ;;  %v4058_v38 = vld [vmem:[%s6078_s1 + $0x20] sm:$0xff]  ;;  %v1113_v32 = vsub.f32 %v3494_v29, %v3985_v53  ;;  %v1114_v33 = vsub.f32 %v3495_v31, %v3985_v53  ;;  %v3267_v34 = vpack.c.bf16 %v4077_v12, %v4072_v11  ;;  %v3501_v29 = vld [vmem:[%s3638_s22 + $0x28] sm:$0xff] }
  0xbd   : > { %v1015_v1 = vadd.f32 1e-05, %v966_v55  ;;  %364 = vadd.xlane.f32.xlu0 %v3979_v49  ;;  %v683_v2 = vpop.xlane.xlu1 %682  ;;  %v893_v49 = vmul.f32 %v4032_v48, %v4032_v48  ;;  %v869_v13 = vmul.f32 %v4037_v57, %v4037_v57  ;;  %v3315_v25 = vpack.c.bf16 %v4063_v61, %v4058_v38  ;;  %v3499_v55 = vld [vmem:[%s3638_s22 + $0x1a0] sm:$0xff] }
  0xbe   : > { %3400 = vrsqrt.f32 %v1039_v59  ;;  %v844_v7 = vmul.f32 0.0052083335, %v683_v2  ;;  %v587_v8 = vpop.xlane.xlu0 %586  ;;  %v1161_v53 = vsub.f32 %v3496_v42, %v3977_v47  ;;  %v3317_v45 = vpack.c.bf16 %v1330_v14, %v1324_v26  ;;  %v3500_v2 = vld [vmem:[%s3638_s22 + $0x1a8] sm:$0xff]  ;;  %v4162_v26 = vld [vmem:[%s6078_s1 + $0xa0] sm:$0xff] }
  0xbf   : > { %3402 = vrsqrt.f32 %v1015_v1  ;;  %v820_v15 = vmul.f32 0.0052083335, %v587_v8  ;;  %v1162_v52 = vsub.f32 %v3497_v50, %v3977_v47  ;;  %v1115_v54 = vsub.f32 %v3498_v37, %v4007_v10  ;;  %v4167_v14 = vld [vmem:[%s6078_s1 + $0xe8] sm:$0xff] }
  0xc0   : > { %v942_v24 = vsub.f32 %v844_v7, %v893_v49  ;;  %754 = vadd.xlane.f32.xlu1 %v3992_v58  ;;  %v1163_v43 = vsub.f32 %v3499_v55, %v4001_v4  ;;  %v1164_v38 = vsub.f32 %v3500_v2, %v4001_v4  ;;  %v1329_v4 = vld [vmem:[%s6078_s1 + $0xb0] sm:$0xff] }
  0xc1   : > { %v3395_v27 = vpop.eup %3394  ;;  %v918_v58 = vsub.f32 %v820_v15, %v869_v13  ;;  %658 = vadd.xlane.f32.xlu0 %v3996_v60  ;;  %v393_v28 = vpop.xlane.xlu1 %392 }
  0xc2   : > { %v991_v35 = vmax.f32 %v942_v24, 0.0  ;;  %v4103_v36 = vmul.f32 0.0052083335, %v393_v28  ;;  %v297_v39 = vpop.xlane.xlu0 %296  ;;  %v4105_v40 = vmul.f32 %v3395_v27, %v1112_v23  ;;  %v4107_v41 = vmul.f32 %v3395_v27, %v1111_v20  ;;  %v4148_v20 = vld [vmem:[%s6078_s1 + $0xa8] sm:$0xff]  ;;  %v4181_v28 = vld [vmem:[%s6078_s1 + $0xe0] sm:$0xff] }
  0xc3   : > { %v967_v44 = vmax.f32 %v918_v58, 0.0  ;;  %v4111_v60 = vmul.f32 0.0052083335, %v297_v39  ;;  %v1342_v58 = vld [vmem:[%s6078_s1 + $0x118] sm:$0xff] }
  0xc4   : > { %v3397_v46 = vpop.eup %3396  ;;  %v1040_v59 = vadd.f32 1e-05, %v991_v35  ;;  %3067 = vmatprep.mubr.msk.f32.mxu0 %vm277_vm0, %v4105_v40  ;;  %464 = vadd.xlane.f32.xlu1 %v3982_v51  ;;  %v894_v47 = vmul.f32 %v4103_v36, %v4103_v36  ;;  %v1323_v51 = vld [vmem:[%s6078_s1 + $0x80] sm:$0xff] }
  0xc5   : > { %v3399_v1 = vpop.eup %3398  ;;  %v1016_v61 = vadd.f32 1e-05, %v967_v44  ;;  %368 = vadd.xlane.f32.xlu0 %v3989_v56  ;;  %1695 = vmatmul.mubr.f32.vlgmr.msra.gmra.mrb[0].mxu0 %v4107_v41  ;;  %v687_v49 = vpop.xlane.xlu1 %686  ;;  %v870_v7 = vmul.f32 %v4111_v60, %v4111_v60  ;;  %v4138_v15 = vmul.f32 %v3397_v46, %v1162_v52  ;;  %v4150_v23 = vmul.f32 %v3397_v46, %v1161_v53  ;;  %v4202_v46 = vld [vmem:[%s6078_s1 + $0x108] sm:$0xff] }
  0xc6   : > { %3404 = vrsqrt.f32 %v1040_v59  ;;  %v845_v8 = vmul.f32 0.0052083335, %v687_v49  ;;  %v591_v56 = vpop.xlane.xlu0 %590  ;;  %v4136_v13 = vmul.f32 %v3399_v1, %v1114_v33  ;;  %3316 = vmatpush1.bf16.msra.mxu0 %v3315_v25  ;;  %v4152_v24 = vmul.f32 %v3399_v1, %v1113_v32  ;;  %v4157_v25 = vld [vmem:[%s6078_s1 + $0x70] sm:$0xff]  ;;  %v4220_v59 = vld [vmem:[%s6078_s1 + $0x100] sm:$0xff]  ;;  %v4225_v1 = vld [vmem:[%s6078_s1 + $0x148] sm:$0xff] }
  0xc7   : > { %6175 = vst [vmem:[#allocation2_spill] sm:$0xff] %v4138_v15  ;;  %3406 = vrsqrt.f32 %v1016_v61  ;;  %v821_v21 = vmul.f32 0.0052083335, %v591_v56  ;;  %6176 = vst [vmem:[#allocation3_spill] sm:$0xff] %v4150_v23  ;;  %3318 = vmatprep.subr.bf16.mxu0 %v3317_v45  ;;  %v1116_v32 = vsub.f32 %v3501_v29, %v4007_v10  ;;  %3092 = vmatprep.mubr.msk.f32.mxu1 %vm277_vm0, %v4138_v15  ;;  %v4186_v10 = vld [vmem:[%s6078_s1 + $0x110] sm:$0xff]  ;;  %v4197_v45 = vld [vmem:[%s6078_s1 + $0xd8] sm:$0xff] }
  0xc8   : > { %v3401_v27 = vpop.eup %3400  ;;  %v943_v31 = vsub.f32 %v845_v8, %v894_v47  ;;  %3068 = vmatprep.mubr.msk.f32.mxu0 %vm277_vm0, %v4136_v13  ;;  %v3319_v33 = vpack.c.bf16 %v1329_v4, %v1323_v51  ;;  %758 = vadd.xlane.f32.xlu1 %v4012_v16  ;;  %v4207_v16 = vld [vmem:[%s6078_s1 + $0xd0] sm:$0xff]  ;;  %v3321_v61 = vpack.c.bf16 %v1342_v58, %v4167_v14  ;;  %v764_v58 = vsel %vm277_vm0, %v4046_v0, 0.0 }
  0xc9   : > { %v3403_v35 = vpop.eup %3402  ;;  %v919_v39 = vsub.f32 %v821_v21, %v870_v7  ;;  %1845 = vmatmul.mubr.f32.vlgmr.msra.gmra.mrb[0].mxu1 %v4150_v23  ;;  %v397_v42 = vpop.xlane.xlu1 %396  ;;  %v4190_v53 = vmul.f32 %v3401_v27, %v1164_v38  ;;  %v4192_v44 = vmul.f32 %v3401_v27, %v1163_v43  ;;  %662 = vadd.xlane.f32.xlu0 %v4042_v62  ;;  %v4230_v62 = vld [vmem:[%s6078_s1 + $0x178] sm:$0xff]  ;;  %v3502_v8 = vld [vmem:[%s3638_s22 + $0x1b0] sm:$0xff] }
  0xca   : > { %v992_v50 = vmax.f32 %v943_v31, 0.0  ;;  %1701 = vmatmul.mubr.f32.gmra.mrb[2].mxu0 %v4152_v24  ;;  %v4211_v52 = vmul.f32 0.0052083335, %v397_v42  ;;  %v301_v37 = vpop.xlane.xlu0 %300  ;;  %v4213_v55 = vmul.f32 %v3403_v35, %v1116_v32  ;;  %v4215_v43 = vmul.f32 %v3403_v35, %v1115_v54  ;;  %3268 = vmatpush1.bf16.msra.mxu1 %v3267_v34  ;;  %v3503_v21 = vld [vmem:[%s3638_s22 + $0x1b8] sm:$0xff]  ;;  %v3504_v29 = vld [vmem:[%s3638_s22 + $0x30] sm:$0xff]  ;;  %v1352_v35 = vld [vmem:[%s6078_s1 + $0x168] sm:$0xff] }
  0xcb   : > { %6177 = vst [vmem:[#allocation4_spill] sm:$0xff] %v4190_v53  ;;  %6178 = vst [vmem:[#allocation5_spill] sm:$0xff] %v4192_v44  ;;  %v968_v2 = vmax.f32 %v919_v39, 0.0  ;;  %v4232_v38 = vmul.f32 0.0052083335, %v301_v37  ;;  %3093 = vmatprep.mubr.msk.f32.mxu1 %vm277_vm0, %v4190_v53  ;;  %v3269_v54 = vpack.c.bf16 %v4148_v20, %v4143_v19  ;;  %v523_v49 = vmul.f32 %v4023_v30, %v4023_v30  ;;  %v3505_v31 = vld [vmem:[%s3638_s22 + $0x38] sm:$0xff] }
  0xcc   : > { %v1041_v47 = vadd.f32 1e-05, %v992_v50  ;;  %3069 = vmatprep.mubr.msk.f32.mxu0 %vm277_vm0, %v4213_v55  ;;  %3320 = vmatpush1.bf16.msra.mxu0 %v3319_v33  ;;  %v3271_v7 = vpack.c.bf16 %v4162_v26, %v4157_v25  ;;  %v3323_v11 = vpack.c.bf16 %v4186_v10, %v4181_v28  ;;  %v3273_v51 = vpack.c.bf16 %v4202_v46, %v4197_v45  ;;  %v1353_v28 = vld [vmem:[%s6078_s1 + $0x170] sm:$0xff]  ;;  %v1346_v10 = vld [vmem:[%s6078_s1 + $0x138] sm:$0xff]  ;;  %v1360_v50 = vld [vmem:[%s6078_s1 + $0x1a8] sm:$0xff] }
  0xcd   : > { %v1017_v12 = vadd.f32 1e-05, %v968_v2  ;;  %468 = vadd.xlane.f32.xlu1 %v4015_v18  ;;  %1851 = vmatmul.mubr.f32.gmra.mrb[2].mxu1 %v4192_v44  ;;  %v691_v34 = vpop.xlane.xlu1 %690  ;;  %v3275_v30 = vpack.c.bf16 %v4220_v59, %v4207_v16  ;;  %v3325_v4 = vpack.c.bf16 %v4230_v62, %v4225_v1  ;;  %v1165_v56 = vsub.f32 %v3502_v8, %v4032_v48  ;;  %v1366_v37 = vld [vmem:[%s6078_s1 + $0x1d8] sm:$0xff]  ;;  %v1359_v8 = vld [vmem:[%s6078_s1 + $0x1a0] sm:$0xff] }
  0xce   : > { %3408 = vrsqrt.f32 %v1041_v47  ;;  %372 = vadd.xlane.f32.xlu0 %v4017_v22  ;;  %1707 = vmatmul.mubr.f32.gmra.mrb[4].mxu0 %v4215_v43  ;;  %v895_v18 = vmul.f32 %v4211_v52, %v4211_v52  ;;  %v846_v19 = vmul.f32 0.0052083335, %v691_v34  ;;  %v595_v20 = vpop.xlane.xlu0 %594  ;;  %v1166_v25 = vsub.f32 %v3503_v21, %v4032_v48  ;;  %v4271_v22 = vld [vmem:[%s6078_s1 + $0x140] sm:$0xff] }
  0xcf   : > { %3410 = vrsqrt.f32 %v1017_v12  ;;  %v871_v26 = vmul.f32 %v4232_v38, %v4232_v38  ;;  %v822_v14 = vmul.f32 0.0052083335, %v595_v20  ;;  %3270 = vmatprep.subr.bf16.mxu1 %v3269_v54  ;;  %3322 = vmatprep.subr.bf16.mxu0 %v3321_v61  ;;  %v1117_v32 = vsub.f32 %v3504_v29, %v4037_v57  ;;  %v4310_v61 = vld [vmem:[%s6078_s1 + $0x130] sm:$0xff]  ;;  %v4315_v47 = vld [vmem:[%s6078_s1 + $0x160] sm:$0xff]  ;;  %v3507_v20 = vld [vmem:[%s3638_s22 + $0x1c8] sm:$0xff] }
  0xd0   : > { %v3405_v27 = vpop.eup %3404  ;;  %v1118_v33 = vsub.f32 %v3505_v31, %v4037_v57  ;;  %v944_v48 = vsub.f32 %v846_v19, %v895_v18  ;;  %3272 = vmatpush1.bf16.msra.mxu1 %v3271_v7  ;;  %3324 = vmatpush1.bf16.msra.mxu0 %v3323_v11  ;;  %v668_v46 = vsel %vm277_vm0, %v523_v49, 0.0  ;;  %v3327_v7 = vpack.c.bf16 %v1353_v28, %v4271_v22  ;;  %v4336_v18 = vld [vmem:[%s6078_s1 + $0x198] sm:$0xff]  ;;  %v3506_v19 = vld [vmem:[%s3638_s22 + $0x1c0] sm:$0xff]  ;;  %v4354_v22 = vld [vmem:[%s6078_s1 + $0x190] sm:$0xff] }
  0xd1   : > { %v3407_v39 = vpop.eup %3406  ;;  %v920_v57 = vsub.f32 %v822_v14, %v871_v26  ;;  %762 = vadd.xlane.f32.xlu1 %v4049_v3  ;;  %v401_v42 = vpop.xlane.xlu1 %400  ;;  %v4289_v0 = vmul.f32 %v3405_v27, %v1166_v25  ;;  %v4291_v45 = vmul.f32 %v3405_v27, %v1165_v56  ;;  %3274 = vmatprep.subr.bf16.mxu1 %v3273_v51  ;;  %v1365_v56 = vld [vmem:[%s6078_s1 + $0x1d0] sm:$0xff]  ;;  %v4349_v14 = vld [vmem:[%s6078_s1 + $0x1c8] sm:$0xff]  ;;  %v4384_v16 = vld [vmem:[%s6078_s1 + $0x200] sm:$0xff] }
  0xd2   : > { %v993_v1 = vmax.f32 %v944_v48, 0.0  ;;  %666 = vadd.xlane.f32.xlu0 %v4067_v9  ;;  %v4301_v3 = vmul.f32 0.0052083335, %v401_v42  ;;  %v305_v62 = vpop.xlane.xlu0 %304  ;;  %v4303_v2 = vmul.f32 %v3407_v39, %v1118_v33  ;;  %v4305_v54 = vmul.f32 %v3407_v39, %v1117_v32  ;;  %3326 = vmatprep.subr.bf16.mxu0 %v3325_v4  ;;  %v4372_v33 = vld [vmem:[%s6078_s1 + $0x208] sm:$0xff]  ;;  %v4377_v48 = vld [vmem:[%s6078_s1 + $0x238] sm:$0xff]  ;;  %v1377_v42 = vld [vmem:[%s6078_s1 + $0x230] sm:$0xff] }
  0xd3   : > { %6179 = vst [vmem:[#allocation6_spill] sm:$0xff] %v4289_v0  ;;  %6180 = vst [vmem:[#allocation7_spill] sm:$0xff] %v4291_v45  ;;  %v969_v9 = vmax.f32 %v920_v57, 0.0  ;;  %v4317_v49 = vmul.f32 0.0052083335, %v305_v62  ;;  %3094 = vmatprep.mubr.msk.f32.mxu1 %vm277_vm0, %v4289_v0  ;;  %v3277_v11 = vpack.c.bf16 %v1352_v35, %v1346_v10  ;;  %v765_v34 = vadd.f32 %v764_v58, %v4044_v63 }
  0xd4   : > { %v1042_v12 = vadd.f32 1e-05, %v993_v1  ;;  %3070 = vmatprep.mubr.msk.f32.mxu0 %vm277_vm0, %v4303_v2  ;;  %1857 = vmatmul.mubr.f32.gmra.mrb[4].mxu1 %v4291_v45  ;;  %v669_v51 = vadd.f32 %v668_v46, %v4081_v17  ;;  %v3329_v4 = vpack.c.bf16 %v1366_v37, %v1360_v50  ;;  %v1167_v63 = vsub.f32 %v3506_v19, %v4103_v36  ;;  %v1370_v46 = vld [vmem:[%s6078_s1 + $0x1f8] sm:$0xff] }
  0xd5   : > { %v1168_v17 = vsub.f32 %v3507_v20, %v4103_v36  ;;  %v1018_v21 = vadd.f32 1e-05, %v969_v9  ;;  %472 = vadd.xlane.f32.xlu1 %v4051_v5  ;;  %1713 = vmatmul.mubr.f32.gmra.mrb[6].mxu0 %v4305_v54  ;;  %v695_v25 = vpop.xlane.xlu1 %694  ;;  %v3279_v26 = vpack.c.bf16 %v4315_v47, %v4310_v61  ;;  %v4359_v5 = vld [vmem:[%s6078_s1 + $0x1c0] sm:$0xff]  ;;  %v896_v29 = vmul.f32 %v4301_v3, %v4301_v3  ;;  %v1384_v9 = vld [vmem:[%s6078_s1 + $0x268] sm:$0xff] }
  0xd6   : > { %v3508_v36 = vld [vmem:[%s3638_s22 + $0x40] sm:$0xff]  ;;  %3412 = vrsqrt.f32 %v1042_v12  ;;  %376 = vadd.xlane.f32.xlu0 %v4053_v6  ;;  %v847_v32 = vmul.f32 0.0052083335, %v695_v25  ;;  %v599_v31 = vpop.xlane.xlu0 %598  ;;  %3276 = vmatpush1.bf16.msra.mxu1 %v3275_v30  ;;  %v872_v6 = vmul.f32 %v4317_v49, %v4317_v49  ;;  %v3331_v28 = vpack.c.bf16 %v1365_v56, %v1359_v8  ;;  %v3509_v30 = vld [vmem:[%s3638_s22 + $0x48] sm:$0xff] }
  0xd7   : > { %v1119_v27 = vsub.f32 %v3508_v36, %v4111_v60  ;;  %3414 = vrsqrt.f32 %v1018_v21  ;;  %v823_v58 = vmul.f32 0.0052083335, %v599_v31  ;;  %3328 = vmatpush1.bf16.msra.mxu0 %v3327_v7  ;;  %3278 = vmatprep.subr.bf16.mxu1 %v3277_v11  ;;  %v1120_v10 = vsub.f32 %v3509_v30, %v4111_v60  ;;  %v1376_v60 = vld [vmem:[%s6078_s1 + $0x228] sm:$0xff]  ;;  %v1390_v7 = vld [vmem:[%s6078_s1 + $0x298] sm:$0xff]  ;;  %v1375_v20 = vld [vmem:[%s6078_s1 + $0x220] sm:$0xff] }
  0xd8   : > { %v3409_v59 = vpop.eup %3408  ;;  %v945_v35 = vsub.f32 %v847_v32, %v896_v29  ;;  %3330 = vmatprep.subr.bf16.mxu0 %v3329_v4  ;;  %v3281_v39 = vpack.c.bf16 %v4349_v14, %v4336_v18  ;;  %v3283_v57 = vpack.c.bf16 %v4359_v5, %v4354_v22  ;;  %v3333_v47 = vpack.c.bf16 %v4377_v48, %v4372_v33  ;;  %v1383_v25 = vld [vmem:[%s6078_s1 + $0x260] sm:$0xff]  ;;  %v4442_v14 = vld [vmem:[%s6078_s1 + $0x258] sm:$0xff]  ;;  %v3510_v22 = vld [vmem:[%s3638_s22 + $0x1d0] sm:$0xff] }
  0xd9   : > { %v3411_v50 = vpop.eup %3410  ;;  %v921_v37 = vsub.f32 %v823_v58, %v872_v6  ;;  %766 = vadd.xlane.f32.xlu1 %v765_v34  ;;  %v405_v1 = vpop.xlane.xlu1 %404  ;;  %v4401_v62 = vmul.f32 %v3409_v59, %v1168_v17  ;;  %v4403_v61 = vmul.f32 %v3409_v59, %v1167_v63  ;;  %v3285_v19 = vpack.c.bf16 %v1376_v60, %v1370_v46  ;;  %v1369_v63 = vld [vmem:[%s6078_s1 + $0x1f0] sm:$0xff]  ;;  %v3511_v36 = vld [vmem:[%s3638_s22 + $0x1d8] sm:$0xff]  ;;  %v1388_v48 = vld [vmem:[%s6078_s1 + $0x288] sm:$0xff] }
  0xda   : > { %v994_v11 = vmax.f32 %v945_v35, 0.0  ;;  %670 = vadd.xlane.f32.xlu0 %v669_v51  ;;  %v4413_v12 = vmul.f32 0.0052083335, %v405_v1  ;;  %v309_v34 = vpop.xlane.xlu0 %308  ;;  %v4415_v4 = vmul.f32 %v3411_v50, %v1120_v10  ;;  %v4417_v8 = vmul.f32 %v3411_v50, %v1119_v27  ;;  %3280 = vmatpush1.bf16.msra.mxu1 %v3279_v26  ;;  %v1389_v26 = vld [vmem:[%s6078_s1 + $0x290] sm:$0xff]  ;;  %v1402_v1 = vld [vmem:[%s6078_s1 + $0x2f8] sm:$0xff] }
  0xdb   : > { %6181 = vst [vmem:[#allocation8_spill] sm:$0xff] %v4401_v62  ;;  %6182 = vst [vmem:[#allocation9_spill] sm:$0xff] %v4403_v61  ;;  %v970_v56 = vmax.f32 %v921_v37, 0.0  ;;  %v4419_v18 = vmul.f32 0.0052083335, %v309_v34  ;;  %3095 = vmatprep.mubr.msk.f32.mxu1 %vm277_vm0, %v4401_v62  ;;  %3332 = vmatpush1.bf16.msra.mxu0 %v3331_v28  ;;  %v3335_v51 = vpack.c.bf16 %v1377_v42, %v4384_v16  ;;  %v3512_v29 = vld [vmem:[%s3638_s22 + $0x50] sm:$0xff] }
  0xdc   : > { %v1043_v17 = vadd.f32 1e-05, %v994_v11  ;;  %3071 = vmatprep.mubr.msk.f32.mxu0 %vm277_vm0, %v4415_v4  ;;  %1863 = vmatmul.mubr.f32.gmra.mrb[6].mxu1 %v4403_v61  ;;  %v3337_v21 = vpack.c.bf16 %v1390_v7, %v1384_v9  ;;  %v1169_v5 = vsub.f32 %v3510_v22, %v4211_v52  ;;  %v1170_v27 = vsub.f32 %v3511_v36, %v4211_v52  ;;  %v1381_v6 = vld [vmem:[%s6078_s1 + $0x250] sm:$0xff]  ;;  %v1387_v52 = vld [vmem:[%s6078_s1 + $0x280] sm:$0xff]  ;;  %v3513_v42 = vld [vmem:[%s3638_s22 + $0x58] sm:$0xff] }
  0xdd   : > { %v1121_v32 = vsub.f32 %v3512_v29, %v4232_v38  ;;  %v1019_v31 = vadd.f32 1e-05, %v970_v56  ;;  %1719 = vmatmul.mubr.f32.gmra.mrb[8].mxu0 %v4417_v8  ;;  %v699_v33 = vpop.xlane.xlu1 %698  ;;  %3282 = vmatprep.subr.bf16.mxu1 %v3281_v39  ;;  %v897_v58 = vmul.f32 %v4413_v12, %v4413_v12  ;;  %v3287_v59 = vpack.c.bf16 %v1375_v20, %v1369_v63  ;;  %v1401_v63 = vld [vmem:[%s6078_s1 + $0x2f0] sm:$0xff]  ;;  %v1399_v29 = vld [vmem:[%s6078_s1 + $0x2e0] sm:$0xff] }
  0xde   : > { %3416 = vrsqrt.f32 %v1043_v17  ;;  %v848_v28 = vmul.f32 0.0052083335, %v699_v33  ;;  %v603_v16 = vpop.xlane.xlu0 %602  ;;  %3284 = vmatpush1.bf16.msra.mxu1 %v3283_v57  ;;  %3334 = vmatprep.subr.bf16.mxu0 %v3333_v47  ;;  %v873_v30 = vmul.f32 %v4419_v18, %v4419_v18  ;;  %v3339_v35 = vpack.c.bf16 %v1389_v26, %v1383_v25  ;;  %v1396_v57 = vld [vmem:[%s6078_s1 + $0x2c8] sm:$0xff]  ;;  %v1394_v47 = vld [vmem:[%s6078_s1 + $0x2b8] sm:$0xff] }
  0xdf   : > { %3418 = vrsqrt.f32 %v1019_v31  ;;  %v824_v10 = vmul.f32 0.0052083335, %v603_v16  ;;  %3336 = vmatpush1.bf16.msra.mxu0 %v3335_v51  ;;  %3286 = vmatprep.subr.bf16.mxu1 %v3285_v19  ;;  %v1122_v46 = vsub.f32 %v3513_v42, %v4232_v38  ;;  %v3289_v50 = vpack.c.bf16 %v1388_v48, %v4442_v14  ;;  %v1400_v51 = vld [vmem:[%s6078_s1 + $0x2e8] sm:$0xff]  ;;  %v1395_v19 = vld [vmem:[%s6078_s1 + $0x2c0] sm:$0xff] }
  0xe0   : > { %v3413_v39 = vpop.eup %3412  ;;  %v946_v60 = vsub.f32 %v848_v28, %v897_v58  ;;  %3338 = vmatprep.subr.bf16.mxu0 %v3337_v21  ;;  %v3291_v37 = vpack.c.bf16 %v1387_v52, %v1381_v6  ;;  %v3341_v56 = vpack.c.bf16 %v1402_v1, %v1396_v57  ;;  %v3343_v36 = vpack.c.bf16 %v1401_v63, %v1395_v19  ;;  %v3514_v31 = vld [vmem:[%s3638_s22 + $0x1e0] sm:$0xff]  ;;  %v1408_v57 = vld [vmem:[%s6078_s1 + $0x328] sm:$0xff]  ;;  %v1406_v1 = vld [vmem:[%s6078_s1 + $0x318] sm:$0xff] }
  0xe1   : > { %v3415_v9 = vpop.eup %3414  ;;  %v922_v7 = vsub.f32 %v824_v10, %v873_v30  ;;  %v409_v38 = vpop.xlane.xlu1 %408  ;;  %v4476_v11 = vmul.f32 %v3413_v39, %v1170_v27  ;;  %v4478_v34 = vmul.f32 %v3413_v39, %v1169_v5  ;;  %v3293_v5 = vpack.c.bf16 %v1400_v51, %v1394_v47  ;;  %v1393_v27 = vld [vmem:[%s6078_s1 + $0x2b0] sm:$0xff]  ;;  %v3516_v42 = vld [vmem:[%s3638_s22 + $0x60] sm:$0xff]  ;;  %v1412_v51 = vld [vmem:[%s6078_s1 + $0x348] sm:$0xff] }
  0xe2   : > { %v995_v20 = vmax.f32 %v946_v60, 0.0  ;;  %v4489_v17 = vmul.f32 0.0052083335, %v409_v38  ;;  %v313_v21 = vpop.xlane.xlu0 %312  ;;  %v4491_v25 = vmul.f32 %v3415_v9, %v1122_v46  ;;  %v4493_v26 = vmul.f32 %v3415_v9, %v1121_v32  ;;  %3288 = vmatpush1.bf16.msra.mxu1 %v3287_v59  ;;  %v3515_v59 = vld [vmem:[%s3638_s22 + $0x1e8] sm:$0xff]  ;;  %v1407_v19 = vld [vmem:[%s6078_s1 + $0x320] sm:$0xff]  ;;  %v1413_v63 = vld [vmem:[%s6078_s1 + $0x350] sm:$0xff] }
  0xe3   : > { %6183 = vst [vmem:[#allocation10_spill] sm:$0xff] %v4476_v11  ;;  %6184 = vst [vmem:[#allocation11_spill] sm:$0xff] %v4478_v34  ;;  %v971_v14 = vmax.f32 %v922_v7, 0.0  ;;  %v4495_v22 = vmul.f32 0.0052083335, %v313_v21  ;;  %3096 = vmatprep.mubr.msk.f32.mxu1 %vm277_vm0, %v4476_v11  ;;  %3340 = vmatpush1.bf16.msra.mxu0 %v3339_v35  ;;  %v1171_v33 = vsub.f32 %v3514_v31, %v4301_v3  ;;  %v3517_v60 = vld [vmem:[%s3638_s22 + $0x68] sm:$0xff] }
  0xe4   : > { %v1044_v32 = vadd.f32 1e-05, %v995_v20  ;;  %3072 = vmatprep.mubr.msk.f32.mxu0 %vm277_vm0, %v4491_v25  ;;  %1869 = vmatmul.mubr.f32.gmra.mrb[8].mxu1 %v4478_v34  ;;  %v898_v52 = vmul.f32 %v4489_v17, %v4489_v17  ;;  %v3295_v16 = vpack.c.bf16 %v1399_v29, %v1393_v27  ;;  %v1172_v30 = vsub.f32 %v3515_v59, %v4301_v3  ;;  %v1414_v3 = vld [vmem:[%s6078_s1 + $0x358] sm:$0xff] }
  0xe5   : > { %v1020_v48 = vadd.f32 1e-05, %v971_v14  ;;  %1725 = vmatmul.mubr.f32.gmra.mrb[10].mxu0 %v4493_v26  ;;  %v703_v6 = vpop.xlane.xlu1 %702  ;;  %3290 = vmatprep.subr.bf16.mxu1 %v3289_v50  ;;  %v874_v10 = vmul.f32 %v4495_v22, %v4495_v22  ;;  %v1123_v46 = vsub.f32 %v3516_v42, %v4317_v49  ;;  %v1124_v50 = vsub.f32 %v3517_v60, %v4317_v49 }
  0xe6   : > { %3420 = vrsqrt.f32 %v1044_v32  ;;  %v849_v58 = vmul.f32 0.0052083335, %v703_v6  ;;  %v607_v28 = vpop.xlane.xlu0 %606  ;;  %3292 = vmatpush1.bf16.msra.mxu1 %v3291_v37  ;;  %3342 = vmatprep.subr.bf16.mxu0 %v3341_v56  ;;  %v3345_v49 = vpack.c.bf16 %v1414_v3, %v1408_v57  ;;  %v3297_v32 = vpack.c.bf16 %v1412_v51, %v1406_v1  ;;  %v3521_v3 = vld [vmem:[%s3638_s22 + $0x78] sm:$0xff] }
  0xe7   : > { %3422 = vrsqrt.f32 %v1020_v48  ;;  %v825_v35 = vmul.f32 0.0052083335, %v607_v28  ;;  %3294 = vmatprep.subr.bf16.mxu1 %v3293_v5  ;;  %3344 = vmatpush1.bf16.msra.mxu0 %v3343_v36  ;;  %v3347_v31 = vpack.c.bf16 %v1413_v63, %v1407_v19  ;;  %v1411_v48 = vld [vmem:[%s6078_s1 + $0x340] sm:$0xff]  ;;  %v1126_v1 = vsub.f32 %v3521_v3, %v4419_v18 }
  0xe8   : > { %v3417_v39 = vpop.eup %3416  ;;  %v947_v37 = vsub.f32 %v849_v58, %v898_v52  ;;  %3346 = vmatprep.subr.bf16.mxu0 %v3345_v49  ;;  %v3518_v52 = vld [vmem:[%s3638_s22 + $0x1f0] sm:$0xff] }
  0xe9   : > { %v3419_v47 = vpop.eup %3418  ;;  %v923_v9 = vsub.f32 %v825_v35, %v874_v10  ;;  %v413_v7 = vpop.xlane.xlu1 %412  ;;  %v4530_v38 = vmul.f32 %v3417_v39, %v1172_v30  ;;  %v4532_v56 = vmul.f32 %v3417_v39, %v1171_v33  ;;  %v1405_v33 = vld [vmem:[%s6078_s1 + $0x310] sm:$0xff]  ;;  %v1173_v58 = vsub.f32 %v3518_v52, %v4413_v12  ;;  %v3519_v39 = vld [vmem:[%s3638_s22 + $0x1f8] sm:$0xff] }
  0xea   : > { %v996_v20 = vmax.f32 %v947_v37, 0.0  ;;  %v4543_v21 = vmul.f32 0.0052083335, %v413_v7  ;;  %v317_v14 = vpop.xlane.xlu0 %316  ;;  %v4545_v5 = vmul.f32 %v3419_v47, %v1124_v50  ;;  %v4547_v36 = vmul.f32 %v3419_v47, %v1123_v46  ;;  %3296 = vmatpush1.bf16.msra.mxu1 %v3295_v16  ;;  %v3520_v37 = vld [vmem:[%s3638_s22 + $0x70] sm:$0xff]  ;;  %v1418_v7 = vld [vmem:[%s6078_s1 + $0x378] sm:$0xff] }
  0xeb   : > { %6185 = vst [vmem:[#allocation12_spill] sm:$0xff] %v4530_v38  ;;  %6186 = vst [vmem:[#allocation13_spill] sm:$0xff] %v4532_v56  ;;  %v972_v27 = vmax.f32 %v923_v9, 0.0  ;;  %v4549_v29 = vmul.f32 0.0052083335, %v317_v14  ;;  %3097 = vmatprep.mubr.msk.f32.mxu1 %vm277_vm0, %v4530_v38  ;;  %3298 = vmatprep.subr.bf16.mxu1 %v3297_v32  ;;  %v3299_v35 = vpack.c.bf16 %v1411_v48, %v1405_v33  ;;  %v1420_v9 = vld [vmem:[%s6078_s1 + $0x388] sm:$0xff] }
  0xec   : > { %v1045_v6 = vadd.f32 1e-05, %v996_v20  ;;  %3073 = vmatprep.mubr.msk.f32.mxu0 %vm277_vm0, %v4545_v5  ;;  %1875 = vmatmul.mubr.f32.gmra.mrb[10].mxu1 %v4532_v56  ;;  %v899_v59 = vmul.f32 %v4543_v21, %v4543_v21  ;;  %v1174_v42 = vsub.f32 %v3519_v39, %v4413_v12  ;;  %v1125_v57 = vsub.f32 %v3520_v37, %v4419_v18  ;;  %v1426_v12 = vld [vmem:[%s6078_s1 + $0x3b8] sm:$0xff]  ;;  %v1424_v14 = vld [vmem:[%s6078_s1 + $0x3a8] sm:$0xff]  ;;  %v1425_v32 = vld [vmem:[%s6078_s1 + $0x3b0] sm:$0xff] }
  0xed   : > { %v1021_v28 = vadd.f32 1e-05, %v972_v27  ;;  %1731 = vmatmul.mubr.f32.gmra.mrb[12].mxu0 %v4547_v36  ;;  %v707_v16 = vpop.xlane.xlu1 %706  ;;  %v875_v46 = vmul.f32 %v4549_v29, %v4549_v29  ;;  %v3349_v20 = vpack.c.bf16 %v1426_v12, %v1420_v9  ;;  %v1419_v27 = vld [vmem:[%s6078_s1 + $0x380] sm:$0xff]  ;;  %v1436_v39 = vld [vmem:[%s6078_s1 + $0x408] sm:$0xff]  ;;  %v1429_v9 = vld [vmem:[%s6078_s1 + $0x3d0] sm:$0xff] }
  0xee   : > { %3424 = vrsqrt.f32 %v1045_v6  ;;  %v850_v30 = vmul.f32 0.0052083335, %v707_v16  ;;  %v611_v10 = vpop.xlane.xlu0 %610  ;;  %3348 = vmatpush1.bf16.msra.mxu0 %v3347_v31  ;;  %3300 = vmatpush1.bf16.msra.mxu1 %v3299_v35  ;;  %v1430_v35 = vld [vmem:[%s6078_s1 + $0x3d8] sm:$0xff]  ;;  %v3525_v12 = vld [vmem:[%s3638_s22 + $0x88] sm:$0xff] }
  0xef   : > { %3426 = vrsqrt.f32 %v1021_v28  ;;  %v826_v60 = vmul.f32 0.0052083335, %v611_v10  ;;  %v1423_v28 = vld [vmem:[%s6078_s1 + $0x3a0] sm:$0xff]  ;;  %3350 = vmatprep.subr.bf16.mxu0 %v3349_v20  ;;  %v3351_v10 = vpack.c.bf16 %v1425_v32, %v1419_v27  ;;  %v1437_v27 = vld [vmem:[%s6078_s1 + $0x410] sm:$0xff] }
  0xf0   : > { %v3421_v50 = vpop.eup %3420  ;;  %v948_v47 = vsub.f32 %v850_v30, %v899_v59  ;;  %v3301_v30 = vpack.c.bf16 %v1424_v14, %v1418_v7  ;;  %v1128_v7 = vsub.f32 %v3525_v12, %v4495_v22  ;;  %v1431_v14 = vld [vmem:[%s6078_s1 + $0x3e0] sm:$0xff] }
  0xf1   : > { %v3423_v49 = vpop.eup %3422  ;;  %v924_v51 = vsub.f32 %v826_v60, %v875_v46  ;;  %v417_v19 = vpop.xlane.xlu1 %416  ;;  %v4584_v63 = vmul.f32 %v3421_v50, %v1174_v42  ;;  %v4586_v18 = vmul.f32 %v3421_v50, %v1173_v58  ;;  %v1417_v58 = vld [vmem:[%s6078_s1 + $0x370] sm:$0xff]  ;;  %v1432_v42 = vld [vmem:[%s6078_s1 + $0x3e8] sm:$0xff]  ;;  %v3522_v46 = vld [vmem:[%s3638_s22 + $0x200] sm:$0xff] }
  0xf2   : > { %v997_v31 = vmax.f32 %v948_v47, 0.0  ;;  %v4597_v33 = vmul.f32 0.0052083335, %v417_v19  ;;  %v321_v48 = vpop.xlane.xlu0 %320  ;;  %v4599_v6 = vmul.f32 %v3423_v49, %v1126_v1  ;;  %v4601_v52 = vmul.f32 %v3423_v49, %v1125_v57  ;;  %v3523_v50 = vld [vmem:[%s3638_s22 + $0x208] sm:$0xff]  ;;  %v3524_v57 = vld [vmem:[%s3638_s22 + $0x80] sm:$0xff]  ;;  %v1438_v47 = vld [vmem:[%s6078_s1 + $0x418] sm:$0xff]  ;;  %3302 = vmatprep.subr.bf16.mxu1 %v3301_v30  ;;  %3352 = vmatpush1.bf16.msra.mxu0 %v3351_v10 }
  0xf3   : > { %6187 = vst [vmem:[#allocation14_spill] sm:$0xff] %v4584_v63  ;;  %6188 = vst [vmem:[#allocation15_spill] sm:$0xff] %v4586_v18  ;;  %v973_v16 = vmax.f32 %v924_v51, 0.0  ;;  %v4609_v59 = vmul.f32 0.0052083335, %v321_v48  ;;  %3098 = vmatprep.mubr.msk.f32.mxu1 %vm277_vm0, %v4584_v63  ;;  %v1175_v60 = vsub.f32 %v3522_v46, %v4489_v17  ;;  %v1176_v37 = vsub.f32 %v3523_v50, %v4489_v17  ;;  %v1435_v17 = vld [vmem:[%s6078_s1 + $0x400] sm:$0xff] }
  0xf4   : > { %v1127_v3 = vsub.f32 %v3524_v57, %v4495_v22  ;;  %v1046_v1 = vadd.f32 1e-05, %v997_v31  ;;  %3074 = vmatprep.mubr.msk.f32.mxu0 %vm277_vm0, %v4599_v6  ;;  %1881 = vmatmul.mubr.f32.gmra.mrb[12].mxu1 %v4586_v18  ;;  %v900_v51 = vmul.f32 %v4597_v33, %v4597_v33  ;;  %v3303_v31 = vpack.c.bf16 %v1423_v28, %v1417_v58  ;;  %v1448_v30 = vld [vmem:[%s6078_s1 + $0x468] sm:$0xff]  ;;  %v1450_v58 = vld [vmem:[%s6078_s1 + $0x478] sm:$0xff] }
  0xf5   : > { %v1022_v49 = vadd.f32 1e-05, %v973_v16  ;;  %1737 = vmatmul.mubr.f32.gmra.mrb[14].mxu0 %v4601_v52  ;;  %v711_v19 = vpop.xlane.xlu1 %710  ;;  %v876_v20 = vmul.f32 %v4609_v59, %v4609_v59  ;;  %v3305_v48 = vpack.c.bf16 %v1436_v39, %v1430_v35  ;;  %v1442_v16 = vld [vmem:[%s6078_s1 + $0x438] sm:$0xff]  ;;  %v1444_v46 = vld [vmem:[%s6078_s1 + $0x448] sm:$0xff]  ;;  %v3353_v57 = vpack.c.bf16 %v1438_v47, %v1432_v42 }
  0xf6   : > { %3428 = vrsqrt.f32 %v1046_v1  ;;  %v851_v22 = vmul.f32 0.0052083335, %v711_v19  ;;  %v615_v32 = vpop.xlane.xlu0 %614  ;;  %v3307_v1 = vpack.c.bf16 %v1435_v17, %v1429_v9  ;;  %3304 = vmatpush1.bf16.msra.mxu1 %v3303_v31  ;;  %v3355_v35 = vpack.c.bf16 %v1437_v27, %v1431_v14  ;;  %v1443_v19 = vld [vmem:[%s6078_s1 + $0x440] sm:$0xff] }
  0xf7   : > { %3430 = vrsqrt.f32 %v1022_v49  ;;  %v827_v50 = vmul.f32 0.0052083335, %v615_v32  ;;  %v3309_v39 = vpack.c.bf16 %v1448_v30, %v1442_v16  ;;  %v3357_v12 = vpack.c.bf16 %v1450_v58, %v1444_v46  ;;  %v1449_v49 = vld [vmem:[%s6078_s1 + $0x470] sm:$0xff]  ;;  %3306 = vmatprep.subr.bf16.mxu1 %v3305_v48  ;;  %3354 = vmatprep.subr.bf16.mxu0 %v3353_v57 }
  0xf8   : > { %v3425_v28 = vpop.eup %3424  ;;  %v949_v10 = vsub.f32 %v851_v22, %v900_v51  ;;  %3356 = vmatpush1.bf16.msra.mxu0 %v3355_v35  ;;  %v3527_v35 = vld [vmem:[%s3638_s22 + $0x218] sm:$0xff] }
  0xf9   : > { %v3427_v42 = vpop.eup %3426  ;;  %v925_v47 = vsub.f32 %v827_v50, %v876_v20  ;;  %v421_v9 = vpop.xlane.xlu1 %420  ;;  %v4671_v17 = vmul.f32 %v3425_v28, %v1176_v37  ;;  %v4673_v32 = vmul.f32 %v3425_v28, %v1175_v60  ;;  %v1441_v20 = vld [vmem:[%s6078_s1 + $0x430] sm:$0xff]  ;;  %v1447_v60 = vld [vmem:[%s6078_s1 + $0x460] sm:$0xff]  ;;  %3358 = vmatprep.subr.bf16.mxu0 %v3357_v12  ;;  %v1178_v12 = vsub.f32 %v3527_v35, %v4543_v21 }
  0xfa   : > { %v998_v51 = vmax.f32 %v949_v10, 0.0  ;;  %v4675_v14 = vmul.f32 0.0052083335, %v421_v9  ;;  %v325_v27 = vpop.xlane.xlu0 %324  ;;  %v4677_v22 = vmul.f32 %v3427_v42, %v1128_v7  ;;  %v4679_v31 = vmul.f32 %v3427_v42, %v1127_v3  ;;  %3308 = vmatpush1.bf16.msra.mxu1 %v3307_v1  ;;  %v3526_v50 = vld [vmem:[%s3638_s22 + $0x210] sm:$0xff]  ;;  %v3529_v9 = vld [vmem:[%s3638_s22 + $0x98] sm:$0xff] }
  0xfb   : > { %6189 = vst [vmem:[#allocation16_spill] sm:$0xff] %v4671_v17  ;;  %6190 = vst [vmem:[#allocation17_spill] sm:$0xff] %v4673_v32  ;;  %v974_v37 = vmax.f32 %v925_v47, 0.0  ;;  %v4687_v48 = vmul.f32 0.0052083335, %v325_v27  ;;  %3099 = vmatprep.mubr.msk.f32.mxu1 %vm277_vm0, %v4671_v17  ;;  %v3359_v7 = vpack.c.bf16 %v1449_v49, %v1443_v19  ;;  %v3311_v46 = vpack.c.bf16 %v1447_v60, %v1441_v20  ;;  %v3528_v42 = vld [vmem:[%s3638_s22 + $0x90] sm:$0xff] }
  0xfc   : > { %v1047_v3 = vadd.f32 1e-05, %v998_v51  ;;  %3075 = vmatprep.mubr.msk.f32.mxu0 %vm277_vm0, %v4677_v22  ;;  %1887 = vmatmul.mubr.f32.gmra.mrb[14].mxu1 %v4673_v32  ;;  %v1177_v57 = vsub.f32 %v3526_v50, %v4543_v21  ;;  %v901_v58 = vmul.f32 %v4675_v14, %v4675_v14  ;;  %v1129_v47 = vsub.f32 %v3528_v42, %v4549_v29 }
  0xfd   : > { %v1023_v16 = vadd.f32 1e-05, %v974_v37  ;;  %1743 = vmatmul.mubr.f32.gmra.mrb[16].mxu0 %v4679_v31  ;;  %v715_v30 = vpop.xlane.xlu1 %714  ;;  %3310 = vmatprep.subr.bf16.mxu1 %v3309_v39  ;;  %v877_v1 = vmul.f32 %v4687_v48, %v4687_v48  ;;  %v1130_v51 = vsub.f32 %v3529_v9, %v4549_v29 }
  0xfe   : > { %3432 = vrsqrt.f32 %v1047_v3  ;;  %v852_v28 = vmul.f32 0.0052083335, %v715_v30  ;;  %v619_v10 = vpop.xlane.xlu0 %618  ;;  %3360 = vmatpush1.bf16.msra.mxu0 %v3359_v7  ;;  %3312 = vmatpush1.bf16.msra.mxu1 %v3311_v46 }
  0xff   : > { %3434 = vrsqrt.f32 %v1023_v16  ;;  %v828_v19 = vmul.f32 0.0052083335, %v619_v10  ;;  %v3530_v10 = vld [vmem:[%s3638_s22 + $0x220] sm:$0xff] }
 0x100   : > { %v3429_v49 = vpop.eup %3428  ;;  %v950_v27 = vsub.f32 %v852_v28, %v901_v58  ;;  %v1179_v35 = vsub.f32 %v3530_v10, %v4597_v33 }
 0x101   : > { %v3431_v20 = vpop.eup %3430  ;;  %v926_v60 = vsub.f32 %v828_v19, %v877_v1  ;;  %v425_v39 = vpop.xlane.xlu1 %424  ;;  %v4707_v37 = vmul.f32 %v3429_v49, %v1178_v12  ;;  %v4709_v7 = vmul.f32 %v3429_v49, %v1177_v57  ;;  %v3531_v49 = vld [vmem:[%s3638_s22 + $0x228] sm:$0xff] }
 0x102   : > { %v999_v21 = vmax.f32 %v950_v27, 0.0  ;;  %v4711_v3 = vmul.f32 0.0052083335, %v425_v39  ;;  %v329_v16 = vpop.xlane.xlu0 %328  ;;  %v4713_v30 = vmul.f32 %v3431_v20, %v1130_v51  ;;  %v4715_v50 = vmul.f32 %v3431_v20, %v1129_v47  ;;  %v3532_v27 = vld [vmem:[%s3638_s22 + $0xa0] sm:$0xff] }
 0x103   : > { %6191 = vst [vmem:[#allocation18_spill] sm:$0xff] %v4707_v37  ;;  %6192 = vst [vmem:[#allocation19_spill] sm:$0xff] %v4709_v7  ;;  %v975_v29 = vmax.f32 %v926_v60, 0.0  ;;  %v4717_v58 = vmul.f32 0.0052083335, %v329_v16  ;;  %3100 = vmatprep.mubr.msk.f32.mxu1 %vm277_vm0, %v4707_v37  ;;  %v1180_v42 = vsub.f32 %v3531_v49, %v4597_v33  ;;  %v1131_v20 = vsub.f32 %v3532_v27, %v4609_v59  ;;  %v3533_v60 = vld [vmem:[%s3638_s22 + $0xa8] sm:$0xff] }
 0x104   : > { %v1048_v28 = vadd.f32 1e-05, %v999_v21  ;;  %3076 = vmatprep.mubr.msk.f32.mxu0 %vm277_vm0, %v4713_v30  ;;  %1893 = vmatmul.mubr.f32.gmra.mrb[16].mxu1 %v4709_v7  ;;  %v902_v12 = vmul.f32 %v4711_v3, %v4711_v3  ;;  %v1132_v39 = vsub.f32 %v3533_v60, %v4609_v59  ;;  %v3535_v60 = vld [vmem:[%s3638_s22 + $0x238] sm:$0xff] }
 0x105   : > { %v1024_v46 = vadd.f32 1e-05, %v975_v29  ;;  %1749 = vmatmul.mubr.f32.gmra.mrb[18].mxu0 %v4715_v50  ;;  %v719_v57 = vpop.xlane.xlu1 %718  ;;  %v878_v47 = vmul.f32 %v4717_v58, %v4717_v58 }
 0x106   : > { %3436 = vrsqrt.f32 %v1048_v28  ;;  %v853_v1 = vmul.f32 0.0052083335, %v719_v57  ;;  %v623_v19 = vpop.xlane.xlu0 %622 }
 0x107   : > { %3438 = vrsqrt.f32 %v1024_v46  ;;  %v829_v9 = vmul.f32 0.0052083335, %v623_v19 }
 0x108   : > { %v3433_v51 = vpop.eup %3432  ;;  %v951_v21 = vsub.f32 %v853_v1, %v902_v12 }
 0x109   : > { %v3435_v16 = vpop.eup %3434  ;;  %v927_v29 = vsub.f32 %v829_v9, %v878_v47  ;;  %v429_v28 = vpop.xlane.xlu1 %428  ;;  %v4737_v57 = vmul.f32 %v3433_v51, %v1180_v42  ;;  %v4739_v33 = vmul.f32 %v3433_v51, %v1179_v35  ;;  %v3534_v42 = vld [vmem:[%s3638_s22 + $0x230] sm:$0xff] }
 0x10a   : > { %v1000_v46 = vmax.f32 %v951_v21, 0.0  ;;  %v4741_v10 = vmul.f32 0.0052083335, %v429_v28  ;;  %v333_v19 = vpop.xlane.xlu0 %332  ;;  %v4743_v49 = vmul.f32 %v3435_v16, %v1132_v39  ;;  %v4745_v7 = vmul.f32 %v3435_v16, %v1131_v20  ;;  %v3536_v28 = vld [vmem:[%s3638_s22 + $0xb0] sm:$0xff] }
 0x10b   : > { %6193 = vst [vmem:[#allocation20_spill] sm:$0xff] %v4737_v57  ;;  %6194 = vst [vmem:[#allocation21_spill] sm:$0xff] %v4739_v33  ;;  %v976_v27 = vmax.f32 %v927_v29, 0.0  ;;  %v4747_v59 = vmul.f32 0.0052083335, %v333_v19  ;;  %3101 = vmatprep.mubr.msk.f32.mxu1 %vm277_vm0, %v4737_v57  ;;  %v1181_v47 = vsub.f32 %v3534_v42, %v4675_v14  ;;  %v1182_v39 = vsub.f32 %v3535_v60, %v4675_v14  ;;  %v3537_v19 = vld [vmem:[%s3638_s22 + $0xb8] sm:$0xff] }
 0x10c   : > { %v1049_v12 = vadd.f32 1e-05, %v1000_v46  ;;  %3077 = vmatprep.mubr.msk.f32.mxu0 %vm277_vm0, %v4743_v49  ;;  %1899 = vmatmul.mubr.f32.gmra.mrb[18].mxu1 %v4739_v33  ;;  %v903_v9 = vmul.f32 %v4741_v10, %v4741_v10  ;;  %v1133_v46 = vsub.f32 %v3536_v28, %v4687_v48 }
 0x10d   : > { %v1025_v35 = vadd.f32 1e-05, %v976_v27  ;;  %1755 = vmatmul.mubr.f32.gmra.mrb[20].mxu0 %v4745_v7  ;;  %v723_v1 = vpop.xlane.xlu1 %722  ;;  %v879_v21 = vmul.f32 %v4747_v59, %v4747_v59  ;;  %v1134_v27 = vsub.f32 %v3537_v19, %v4687_v48 }
 0x10e   : > { %3440 = vrsqrt.f32 %v1049_v12  ;;  %v854_v51 = vmul.f32 0.0052083335, %v723_v1  ;;  %v627_v20 = vpop.xlane.xlu0 %626 }
 0x10f   : > { %3442 = vrsqrt.f32 %v1025_v35  ;;  %v830_v16 = vmul.f32 0.0052083335, %v627_v20 }
 0x110   : > { %v3437_v29 = vpop.eup %3436  ;;  %v952_v12 = vsub.f32 %v854_v51, %v903_v9 }
 0x111   : > { %v3439_v42 = vpop.eup %3438  ;;  %v928_v33 = vsub.f32 %v830_v16, %v879_v21  ;;  %v433_v1 = vpop.xlane.xlu1 %432  ;;  %v4767_v57 = vmul.f32 %v3437_v29, %v1182_v39  ;;  %v4769_v14 = vmul.f32 %v3437_v29, %v1181_v47  ;;  %v3538_v39 = vld [vmem:[%s3638_s22 + $0x240] sm:$0xff] }
 0x112   : > { %v1001_v35 = vmax.f32 %v952_v12, 0.0  ;;  %v4771_v60 = vmul.f32 0.0052083335, %v433_v1  ;;  %v337_v20 = vpop.xlane.xlu0 %336  ;;  %v4773_v37 = vmul.f32 %v3439_v42, %v1134_v27  ;;  %v4775_v32 = vmul.f32 %v3439_v42, %v1133_v46  ;;  %v3539_v46 = vld [vmem:[%s3638_s22 + $0x248] sm:$0xff]  ;;  %v3540_v1 = vld [vmem:[%s3638_s22 + $0xc0] sm:$0xff] }
 0x113   : > { %6195 = vst [vmem:[#allocation22_spill] sm:$0xff] %v4767_v57  ;;  %6196 = vst [vmem:[#allocation23_spill] sm:$0xff] %v4769_v14  ;;  %v977_v28 = vmax.f32 %v928_v33, 0.0  ;;  %v4777_v48 = vmul.f32 0.0052083335, %v337_v20  ;;  %3102 = vmatprep.mubr.msk.f32.mxu1 %vm277_vm0, %v4767_v57  ;;  %v1183_v33 = vsub.f32 %v3538_v39, %v4711_v3  ;;  %v1184_v19 = vsub.f32 %v3539_v46, %v4711_v3  ;;  %v3541_v20 = vld [vmem:[%s3638_s22 + $0xc8] sm:$0xff] }
 0x114   : > { %v1050_v9 = vadd.f32 1e-05, %v1001_v35  ;;  %3078 = vmatprep.mubr.msk.f32.mxu0 %vm277_vm0, %v4773_v37  ;;  %1905 = vmatmul.mubr.f32.gmra.mrb[20].mxu1 %v4769_v14  ;;  %v904_v21 = vmul.f32 %v4771_v60, %v4771_v60  ;;  %v1135_v35 = vsub.f32 %v3540_v1, %v4717_v58 }
 0x115   : > { %v1026_v47 = vadd.f32 1e-05, %v977_v28  ;;  %1761 = vmatmul.mubr.f32.gmra.mrb[22].mxu0 %v4775_v32  ;;  %v727_v51 = vpop.xlane.xlu1 %726  ;;  %v880_v27 = vmul.f32 %v4777_v48, %v4777_v48  ;;  %v1136_v28 = vsub.f32 %v3541_v20, %v4717_v58 }
 0x116   : > { %3444 = vrsqrt.f32 %v1050_v9  ;;  %v855_v16 = vmul.f32 0.0052083335, %v727_v51  ;;  %v631_v29 = vpop.xlane.xlu0 %630 }
 0x117   : > { %3446 = vrsqrt.f32 %v1026_v47  ;;  %v831_v12 = vmul.f32 0.0052083335, %v631_v29 }
 0x118   : > { %v3441_v42 = vpop.eup %3440  ;;  %v953_v9 = vsub.f32 %v855_v16, %v904_v21 }
 0x119   : > { %v3443_v39 = vpop.eup %3442  ;;  %v929_v14 = vsub.f32 %v831_v12, %v880_v27  ;;  %v437_v51 = vpop.xlane.xlu1 %436  ;;  %v4797_v57 = vmul.f32 %v3441_v42, %v1184_v19  ;;  %v4799_v3 = vmul.f32 %v3441_v42, %v1183_v33  ;;  %v3542_v19 = vld [vmem:[%s3638_s22 + $0x250] sm:$0xff] }
 0x11a   : > { %v1002_v47 = vmax.f32 %v953_v9, 0.0  ;;  %v4801_v46 = vmul.f32 0.0052083335, %v437_v51  ;;  %v341_v29 = vpop.xlane.xlu0 %340  ;;  %v4803_v17 = vmul.f32 %v3443_v39, %v1136_v28  ;;  %v4805_v18 = vmul.f32 %v3443_v39, %v1135_v35  ;;  %v3543_v35 = vld [vmem:[%s3638_s22 + $0x258] sm:$0xff]  ;;  %v3544_v51 = vld [vmem:[%s3638_s22 + $0xd0] sm:$0xff] }
 0x11b   : > { %6197 = vst [vmem:[#allocation24_spill] sm:$0xff] %v4797_v57  ;;  %6198 = vst [vmem:[#allocation25_spill] sm:$0xff] %v4799_v3  ;;  %v978_v1 = vmax.f32 %v929_v14, 0.0  ;;  %v4807_v58 = vmul.f32 0.0052083335, %v341_v29  ;;  %3103 = vmatprep.mubr.msk.f32.mxu1 %vm277_vm0, %v4797_v57  ;;  %v1185_v14 = vsub.f32 %v3542_v19, %v4741_v10  ;;  %v1186_v20 = vsub.f32 %v3543_v35, %v4741_v10  ;;  %v3545_v29 = vld [vmem:[%s3638_s22 + $0xd8] sm:$0xff] }
 0x11c   : > { %v1051_v21 = vadd.f32 1e-05, %v1002_v47  ;;  %3079 = vmatprep.mubr.msk.f32.mxu0 %vm277_vm0, %v4803_v17  ;;  %1911 = vmatmul.mubr.f32.gmra.mrb[22].mxu1 %v4799_v3  ;;  %v905_v27 = vmul.f32 %v4801_v46, %v4801_v46  ;;  %v1137_v47 = vsub.f32 %v3544_v51, %v4747_v59 }
 0x11d   : > { %v1027_v33 = vadd.f32 1e-05, %v978_v1  ;;  %1767 = vmatmul.mubr.f32.gmra.mrb[24].mxu0 %v4805_v18  ;;  %v731_v16 = vpop.xlane.xlu1 %730  ;;  %v881_v28 = vmul.f32 %v4807_v58, %v4807_v58  ;;  %v1138_v1 = vsub.f32 %v3545_v29, %v4747_v59 }
 0x11e   : > { %3448 = vrsqrt.f32 %v1051_v21  ;;  %v856_v12 = vmul.f32 0.0052083335, %v731_v16  ;;  %v635_v42 = vpop.xlane.xlu0 %634 }
 0x11f   : > { %3450 = vrsqrt.f32 %v1027_v33  ;;  %v832_v9 = vmul.f32 0.0052083335, %v635_v42 }
 0x120   : > { %v3445_v39 = vpop.eup %3444  ;;  %v954_v21 = vsub.f32 %v856_v12, %v905_v27 }
 0x121   : > { %v3447_v19 = vpop.eup %3446  ;;  %v930_v3 = vsub.f32 %v832_v9, %v881_v28  ;;  %v441_v16 = vpop.xlane.xlu1 %440  ;;  %v4827_v57 = vmul.f32 %v3445_v39, %v1186_v20  ;;  %v4829_v10 = vmul.f32 %v3445_v39, %v1185_v14  ;;  %v3546_v20 = vld [vmem:[%s3638_s22 + $0x260] sm:$0xff] }
 0x122   : > { %v1003_v33 = vmax.f32 %v954_v21, 0.0  ;;  %v4831_v35 = vmul.f32 0.0052083335, %v441_v16  ;;  %v345_v42 = vpop.xlane.xlu0 %344  ;;  %v4833_v63 = vmul.f32 %v3447_v19, %v1138_v1  ;;  %v4835_v56 = vmul.f32 %v3447_v19, %v1137_v47  ;;  %v3547_v47 = vld [vmem:[%s3638_s22 + $0x268] sm:$0xff]  ;;  %v3548_v16 = vld [vmem:[%s3638_s22 + $0xe0] sm:$0xff] }
 0x123   : > { %6199 = vst [vmem:[#allocation26_spill] sm:$0xff] %v4827_v57  ;;  %6200 = vst [vmem:[#allocation27_spill] sm:$0xff] %v4829_v10  ;;  %v979_v51 = vmax.f32 %v930_v3, 0.0  ;;  %v4837_v59 = vmul.f32 0.0052083335, %v345_v42  ;;  %3104 = vmatprep.mubr.msk.f32.mxu1 %vm277_vm0, %v4827_v57  ;;  %v1187_v3 = vsub.f32 %v3546_v20, %v4771_v60  ;;  %v1188_v29 = vsub.f32 %v3547_v47, %v4771_v60  ;;  %v3549_v42 = vld [vmem:[%s3638_s22 + $0xe8] sm:$0xff] }
 0x124   : > { %v1052_v27 = vadd.f32 1e-05, %v1003_v33  ;;  %3080 = vmatprep.mubr.msk.f32.mxu0 %vm277_vm0, %v4833_v63  ;;  %1917 = vmatmul.mubr.f32.gmra.mrb[24].mxu1 %v4829_v10  ;;  %v906_v28 = vmul.f32 %v4831_v35, %v4831_v35  ;;  %v1139_v33 = vsub.f32 %v3548_v16, %v4777_v48 }
 0x125   : > { %v1028_v14 = vadd.f32 1e-05, %v979_v51  ;;  %1773 = vmatmul.mubr.f32.gmra.mrb[26].mxu0 %v4835_v56  ;;  %v735_v12 = vpop.xlane.xlu1 %734  ;;  %v882_v1 = vmul.f32 %v4837_v59, %v4837_v59  ;;  %v1140_v51 = vsub.f32 %v3549_v42, %v4777_v48 }
 0x126   : > { %3452 = vrsqrt.f32 %v1052_v27  ;;  %v857_v9 = vmul.f32 0.0052083335, %v735_v12  ;;  %v639_v39 = vpop.xlane.xlu0 %638 }
 0x127   : > { %3454 = vrsqrt.f32 %v1028_v14  ;;  %v833_v21 = vmul.f32 0.0052083335, %v639_v39 }
 0x128   : > { %v3449_v19 = vpop.eup %3448  ;;  %v955_v27 = vsub.f32 %v857_v9, %v906_v28 }
 0x129   : > { %v3451_v20 = vpop.eup %3450  ;;  %v931_v10 = vsub.f32 %v833_v21, %v882_v1  ;;  %v445_v12 = vpop.xlane.xlu1 %444  ;;  %v4857_v57 = vmul.f32 %v3449_v19, %v1188_v29  ;;  %v4859_v60 = vmul.f32 %v3449_v19, %v1187_v3  ;;  %v3550_v29 = vld [vmem:[%s3638_s22 + $0x270] sm:$0xff] }
 0x12a   : > { %v1004_v14 = vmax.f32 %v955_v27, 0.0  ;;  %v4861_v47 = vmul.f32 0.0052083335, %v445_v12  ;;  %v349_v39 = vpop.xlane.xlu0 %348  ;;  %v4863_v38 = vmul.f32 %v3451_v20, %v1140_v51  ;;  %v4865_v34 = vmul.f32 %v3451_v20, %v1139_v33  ;;  %v3551_v33 = vld [vmem:[%s3638_s22 + $0x278] sm:$0xff]  ;;  %v3552_v12 = vld [vmem:[%s3638_s22 + $0xf0] sm:$0xff] }
 0x12b   : > { %6201 = vst [vmem:[#allocation28_spill] sm:$0xff] %v4857_v57  ;;  %6202 = vst [vmem:[#allocation29_spill] sm:$0xff] %v4859_v60  ;;  %v980_v16 = vmax.f32 %v931_v10, 0.0  ;;  %v4867_v48 = vmul.f32 0.0052083335, %v349_v39  ;;  %3105 = vmatprep.mubr.msk.f32.mxu1 %vm277_vm0, %v4857_v57  ;;  %v1189_v10 = vsub.f32 %v3550_v29, %v4801_v46  ;;  %v1190_v42 = vsub.f32 %v3551_v33, %v4801_v46  ;;  %v3553_v39 = vld [vmem:[%s3638_s22 + $0xf8] sm:$0xff] }
 0x12c   : > { %v1053_v28 = vadd.f32 1e-05, %v1004_v14  ;;  %3081 = vmatprep.mubr.msk.f32.mxu0 %vm277_vm0, %v4863_v38  ;;  %1923 = vmatmul.mubr.f32.gmra.mrb[26].mxu1 %v4859_v60  ;;  %v907_v1 = vmul.f32 %v4861_v47, %v4861_v47  ;;  %v1141_v14 = vsub.f32 %v3552_v12, %v4807_v58 }
 0x12d   : > { %v1029_v3 = vadd.f32 1e-05, %v980_v16  ;;  %1779 = vmatmul.mubr.f32.gmra.mrb[28].mxu0 %v4865_v34  ;;  %v739_v9 = vpop.xlane.xlu1 %738  ;;  %v883_v51 = vmul.f32 %v4867_v48, %v4867_v48  ;;  %v1142_v16 = vsub.f32 %v3553_v39, %v4807_v58 }
 0x12e   : > { %3456 = vrsqrt.f32 %v1053_v28  ;;  %v858_v21 = vmul.f32 0.0052083335, %v739_v9  ;;  %v643_v19 = vpop.xlane.xlu0 %642 }
 0x12f   : > { %3458 = vrsqrt.f32 %v1029_v3  ;;  %v834_v27 = vmul.f32 0.0052083335, %v643_v19 }
 0x130   : > { %v3453_v20 = vpop.eup %3452  ;;  %v956_v28 = vsub.f32 %v858_v21, %v907_v1 }
 0x131   : > { %v3455_v29 = vpop.eup %3454  ;;  %v932_v60 = vsub.f32 %v834_v27, %v883_v51  ;;  %v449_v9 = vpop.xlane.xlu1 %448  ;;  %v4887_v57 = vmul.f32 %v3453_v20, %v1190_v42  ;;  %v4889_v46 = vmul.f32 %v3453_v20, %v1189_v10  ;;  %v3554_v42 = vld [vmem:[%s3638_s22 + $0x280] sm:$0xff] }
 0x132   : > { %v1005_v3 = vmax.f32 %v956_v28, 0.0  ;;  %v4891_v33 = vmul.f32 0.0052083335, %v449_v9  ;;  %v353_v19 = vpop.xlane.xlu0 %352  ;;  %v4893_v11 = vmul.f32 %v3455_v29, %v1142_v16  ;;  %v4895_v61 = vmul.f32 %v3455_v29, %v1141_v14  ;;  %v3555_v14 = vld [vmem:[%s3638_s22 + $0x288] sm:$0xff]  ;;  %v3556_v9 = vld [vmem:[%s3638_s22 + $0x100] sm:$0xff] }
 0x133   : > { %6203 = vst [vmem:[#allocation30_spill] sm:$0xff] %v4887_v57  ;;  %6204 = vst [vmem:[#allocation31_spill] sm:$0xff] %v4889_v46  ;;  %v981_v12 = vmax.f32 %v932_v60, 0.0  ;;  %v4897_v58 = vmul.f32 0.0052083335, %v353_v19  ;;  %3106 = vmatprep.mubr.msk.f32.mxu1 %vm277_vm0, %v4887_v57  ;;  %v1191_v60 = vsub.f32 %v3554_v42, %v4831_v35  ;;  %v1192_v39 = vsub.f32 %v3555_v14, %v4831_v35  ;;  %v3557_v19 = vld [vmem:[%s3638_s22 + $0x108] sm:$0xff] }
 0x134   : > { %v1054_v1 = vadd.f32 1e-05, %v1005_v3  ;;  %3082 = vmatprep.mubr.msk.f32.mxu0 %vm277_vm0, %v4893_v11  ;;  %1929 = vmatmul.mubr.f32.gmra.mrb[28].mxu1 %v4889_v46  ;;  %v908_v51 = vmul.f32 %v4891_v33, %v4891_v33  ;;  %v1143_v3 = vsub.f32 %v3556_v9, %v4837_v59 }
 0x135   : > { %v1030_v10 = vadd.f32 1e-05, %v981_v12  ;;  %1785 = vmatmul.mubr.f32.gmra.mrb[30].mxu0 %v4895_v61  ;;  %v743_v21 = vpop.xlane.xlu1 %742  ;;  %v884_v16 = vmul.f32 %v4897_v58, %v4897_v58  ;;  %v1144_v12 = vsub.f32 %v3557_v19, %v4837_v59 }
 0x136   : > { %3460 = vrsqrt.f32 %v1054_v1  ;;  %v859_v27 = vmul.f32 0.0052083335, %v743_v21  ;;  %v647_v20 = vpop.xlane.xlu0 %646 }
 0x137   : > { %3462 = vrsqrt.f32 %v1030_v10  ;;  %v835_v28 = vmul.f32 0.0052083335, %v647_v20 }
 0x138   : > { %v3457_v29 = vpop.eup %3456  ;;  %v957_v1 = vsub.f32 %v859_v27, %v908_v51 }
 0x139   : > { %v3459_v42 = vpop.eup %3458  ;;  %v933_v46 = vsub.f32 %v835_v28, %v884_v16  ;;  %v453_v21 = vpop.xlane.xlu1 %452  ;;  %v4917_v57 = vmul.f32 %v3457_v29, %v1192_v39  ;;  %v4919_v35 = vmul.f32 %v3457_v29, %v1191_v60  ;;  %v3558_v39 = vld [vmem:[%s3638_s22 + $0x290] sm:$0xff] }
 0x13a   : > { %v1006_v10 = vmax.f32 %v957_v1, 0.0  ;;  %v4921_v14 = vmul.f32 0.0052083335, %v453_v21  ;;  %v357_v20 = vpop.xlane.xlu0 %356  ;;  %v4923_v62 = vmul.f32 %v3459_v42, %v1144_v12  ;;  %v4925_v45 = vmul.f32 %v3459_v42, %v1143_v3  ;;  %v3559_v3 = vld [vmem:[%s3638_s22 + $0x298] sm:$0xff]  ;;  %v3560_v21 = vld [vmem:[%s3638_s22 + $0x110] sm:$0xff] }
 0x13b   : > { %6205 = vst [vmem:[#allocation32_spill] sm:$0xff] %v4917_v57  ;;  %6206 = vst [vmem:[#allocation33_spill] sm:$0xff] %v4919_v35  ;;  %v982_v9 = vmax.f32 %v933_v46, 0.0  ;;  %v4927_v59 = vmul.f32 0.0052083335, %v357_v20  ;;  %3107 = vmatprep.mubr.msk.f32.mxu1 %vm277_vm0, %v4917_v57  ;;  %v1193_v46 = vsub.f32 %v3558_v39, %v4861_v47  ;;  %v1194_v19 = vsub.f32 %v3559_v3, %v4861_v47  ;;  %v3561_v20 = vld [vmem:[%s3638_s22 + $0x118] sm:$0xff] }
 0x13c   : > { %v1055_v51 = vadd.f32 1e-05, %v1006_v10  ;;  %3083 = vmatprep.mubr.msk.f32.mxu0 %vm277_vm0, %v4923_v62  ;;  %1935 = vmatmul.mubr.f32.gmra.mrb[30].mxu1 %v4919_v35  ;;  %v909_v16 = vmul.f32 %v4921_v14, %v4921_v14  ;;  %v1145_v10 = vsub.f32 %v3560_v21, %v4867_v48 }
 0x13d   : > { %v1031_v60 = vadd.f32 1e-05, %v982_v9  ;;  %1791 = vmatmul.mubr.f32.gmra.mrb[32].mxu0 %v4925_v45  ;;  %v747_v27 = vpop.xlane.xlu1 %746  ;;  %v885_v12 = vmul.f32 %v4927_v59, %v4927_v59  ;;  %v1146_v9 = vsub.f32 %v3561_v20, %v4867_v48 }
 0x13e   : > { %3464 = vrsqrt.f32 %v1055_v51  ;;  %v860_v28 = vmul.f32 0.0052083335, %v747_v27  ;;  %v651_v29 = vpop.xlane.xlu0 %650 }
 0x13f   : > { %3466 = vrsqrt.f32 %v1031_v60  ;;  %v836_v1 = vmul.f32 0.0052083335, %v651_v29 }
 0x140   : > { %v3461_v42 = vpop.eup %3460  ;;  %v958_v51 = vsub.f32 %v860_v28, %v909_v16 }
 0x141   : > { %v3463_v39 = vpop.eup %3462  ;;  %v934_v35 = vsub.f32 %v836_v1, %v885_v12  ;;  %v457_v27 = vpop.xlane.xlu1 %456  ;;  %v4947_v57 = vmul.f32 %v3461_v42, %v1194_v19  ;;  %v4949_v47 = vmul.f32 %v3461_v42, %v1193_v46  ;;  %v3562_v19 = vld [vmem:[%s3638_s22 + $0x2a0] sm:$0xff] }
 0x142   : > { %v1007_v60 = vmax.f32 %v958_v51, 0.0  ;;  %v4951_v3 = vmul.f32 0.0052083335, %v457_v27  ;;  %v361_v29 = vpop.xlane.xlu0 %360  ;;  %v4953_v0 = vmul.f32 %v3463_v39, %v1146_v9  ;;  %v4955_v44 = vmul.f32 %v3463_v39, %v1145_v10  ;;  %v3563_v10 = vld [vmem:[%s3638_s22 + $0x2a8] sm:$0xff]  ;;  %v3564_v27 = vld [vmem:[%s3638_s22 + $0x120] sm:$0xff] }
 0x143   : > { %6207 = vst [vmem:[#allocation34_spill] sm:$0xff] %v4947_v57  ;;  %6208 = vst [vmem:[#allocation35_spill] sm:$0xff] %v4949_v47  ;;  %v983_v21 = vmax.f32 %v934_v35, 0.0  ;;  %v4957_v48 = vmul.f32 0.0052083335, %v361_v29  ;;  %3108 = vmatprep.mubr.msk.f32.mxu1 %vm277_vm0, %v4947_v57  ;;  %v1195_v35 = vsub.f32 %v3562_v19, %v4891_v33  ;;  %v1196_v20 = vsub.f32 %v3563_v10, %v4891_v33  ;;  %v3565_v29 = vld [vmem:[%s3638_s22 + $0x128] sm:$0xff] }
 0x144   : > { %v1056_v16 = vadd.f32 1e-05, %v1007_v60  ;;  %3084 = vmatprep.mubr.msk.f32.mxu0 %vm277_vm0, %v4953_v0  ;;  %1941 = vmatmul.mubr.f32.gmra.mrb[32].mxu1 %v4949_v47  ;;  %v910_v12 = vmul.f32 %v4951_v3, %v4951_v3  ;;  %v1147_v60 = vsub.f32 %v3564_v27, %v4897_v58 }
 0x145   : > { %v1032_v46 = vadd.f32 1e-05, %v983_v21  ;;  %1797 = vmatmul.mubr.f32.gmra.mrb[34].mxu0 %v4955_v44  ;;  %v751_v28 = vpop.xlane.xlu1 %750  ;;  %v886_v9 = vmul.f32 %v4957_v48, %v4957_v48  ;;  %v1148_v21 = vsub.f32 %v3565_v29, %v4897_v58 }
 0x146   : > { %3468 = vrsqrt.f32 %v1056_v16  ;;  %v861_v1 = vmul.f32 0.0052083335, %v751_v28  ;;  %v655_v42 = vpop.xlane.xlu0 %654 }
 0x147   : > { %3470 = vrsqrt.f32 %v1032_v46  ;;  %v837_v51 = vmul.f32 0.0052083335, %v655_v42 }
 0x148   : > { %v3465_v39 = vpop.eup %3464  ;;  %v959_v16 = vsub.f32 %v861_v1, %v910_v12 }
 0x149   : > { %v3467_v19 = vpop.eup %3466  ;;  %v935_v47 = vsub.f32 %v837_v51, %v886_v9  ;;  %v461_v28 = vpop.xlane.xlu1 %460  ;;  %v4977_v57 = vmul.f32 %v3465_v39, %v1196_v20  ;;  %v4979_v33 = vmul.f32 %v3465_v39, %v1195_v35  ;;  %v3566_v20 = vld [vmem:[%s3638_s22 + $0x2b0] sm:$0xff] }
 0x14a   : > { %v1008_v46 = vmax.f32 %v959_v16, 0.0  ;;  %v4981_v10 = vmul.f32 0.0052083335, %v461_v28  ;;  %v365_v42 = vpop.xlane.xlu0 %364  ;;  %v4983_v53 = vmul.f32 %v3467_v19, %v1148_v21  ;;  %v4985_v23 = vmul.f32 %v3467_v19, %v1147_v60  ;;  %v3567_v60 = vld [vmem:[%s3638_s22 + $0x2b8] sm:$0xff]  ;;  %v3568_v28 = vld [vmem:[%s3638_s22 + $0x130] sm:$0xff] }
 0x14b   : > { %6209 = vst [vmem:[#allocation36_spill] sm:$0xff] %v4977_v57  ;;  %6210 = vst [vmem:[#allocation37_spill] sm:$0xff] %v4979_v33  ;;  %v984_v27 = vmax.f32 %v935_v47, 0.0  ;;  %v4987_v58 = vmul.f32 0.0052083335, %v365_v42  ;;  %3109 = vmatprep.mubr.msk.f32.mxu1 %vm277_vm0, %v4977_v57  ;;  %v1197_v47 = vsub.f32 %v3566_v20, %v4921_v14  ;;  %v1198_v29 = vsub.f32 %v3567_v60, %v4921_v14  ;;  %v3569_v42 = vld [vmem:[%s3638_s22 + $0x138] sm:$0xff] }
 0x14c   : > { %6211 = vst [vmem:[#allocation38_spill] sm:$0xff] %v4985_v23  ;;  %v1057_v12 = vadd.f32 1e-05, %v1008_v46  ;;  %3085 = vmatprep.mubr.msk.f32.mxu0 %vm277_vm0, %v4983_v53  ;;  %1947 = vmatmul.mubr.f32.gmra.mrb[34].mxu1 %v4979_v33  ;;  %v911_v9 = vmul.f32 %v4981_v10, %v4981_v10  ;;  %v1149_v46 = vsub.f32 %v3568_v28, %v4927_v59 }
 0x14d   : > { %v1033_v35 = vadd.f32 1e-05, %v984_v27  ;;  %1803 = vmatmul.mubr.f32.gmra.mrb[36].mxu0 %v4985_v23  ;;  %v755_v1 = vpop.xlane.xlu1 %754  ;;  %v887_v21 = vmul.f32 %v4987_v58, %v4987_v58  ;;  %v1150_v27 = vsub.f32 %v3569_v42, %v4927_v59 }
 0x14e   : > { %3472 = vrsqrt.f32 %v1057_v12  ;;  %v862_v51 = vmul.f32 0.0052083335, %v755_v1  ;;  %v659_v39 = vpop.xlane.xlu0 %658 }
 0x14f   : > { %3474 = vrsqrt.f32 %v1033_v35  ;;  %v838_v16 = vmul.f32 0.0052083335, %v659_v39 }
 0x150   : > { %v3469_v19 = vpop.eup %3468  ;;  %v960_v12 = vsub.f32 %v862_v51, %v911_v9  ;;  %v3570_v51 = vld [vmem:[%s3638_s22 + $0x2c0] sm:$0xff] }
 0x151   : > { %v3471_v20 = vpop.eup %3470  ;;  %v936_v33 = vsub.f32 %v838_v16, %v887_v21  ;;  %v465_v1 = vpop.xlane.xlu1 %464  ;;  %v5007_v57 = vmul.f32 %v3469_v19, %v1198_v29  ;;  %v5009_v14 = vmul.f32 %v3469_v19, %v1197_v47  ;;  %v3571_v21 = vld [vmem:[%s3638_s22 + $0x2c8] sm:$0xff] }
 0x152   : > { %v1009_v35 = vmax.f32 %v960_v12, 0.0  ;;  %v369_v60 = vpop.xlane.xlu0 %368  ;;  %v5011_v39 = vmul.f32 %v3471_v20, %v1150_v27  ;;  %v5013_v15 = vmul.f32 %v3471_v20, %v1149_v46  ;;  %v5015_v23 = vmul.f32 0.0052083335, %v465_v1  ;;  %v3572_v12 = vld [vmem:[%s3638_s22 + $0x140] sm:$0xff]  ;;  %v3573_v1 = vld [vmem:[%s3638_s22 + $0x148] sm:$0xff] }
 0x153   : > { %6212 = vst [vmem:[#allocation39_spill] sm:$0xff] %v5007_v57  ;;  %6213 = vst [vmem:[#allocation40_spill] sm:$0xff] %v5009_v14  ;;  %v985_v28 = vmax.f32 %v936_v33, 0.0  ;;  %3110 = vmatprep.mubr.msk.f32.mxu1 %vm277_vm0, %v5007_v57  ;;  %v5019_v9 = vmul.f32 0.0052083335, %v369_v60  ;;  %v1199_v33 = vsub.f32 %v3570_v51, %v4951_v3  ;;  %v1200_v16 = vsub.f32 %v3571_v21, %v4951_v3 }
 0x154   : > { %6214 = vst [vmem:[#allocation41_spill] sm:$0xff] %v5013_v15  ;;  %v1058_v59 = vadd.f32 1e-05, %v1009_v35  ;;  %3086 = vmatprep.mubr.msk.f32.mxu0 %vm277_vm0, %v5011_v39  ;;  %1953 = vmatmul.mubr.f32.gmra.mrb[36].mxu1 %v5009_v14  ;;  %v912_v19 = vmul.f32 %v5015_v23, %v5015_v23  ;;  %v1151_v20 = vsub.f32 %v3572_v12, %v4957_v48 }
 0x155   : > { %v1034_v47 = vadd.f32 1e-05, %v985_v28  ;;  %1809 = vmatmul.mubr.f32.gmra.mrb[38].mxu0 %v5013_v15  ;;  %v759_v29 = vpop.xlane.xlu1 %758  ;;  %v1152_v35 = vsub.f32 %v3573_v1, %v4957_v48  ;;  %v888_v60 = vmul.f32 %v5019_v9, %v5019_v9 }
 0x156   : > { %3476 = vrsqrt.f32 %v1058_v59  ;;  %v863_v46 = vmul.f32 0.0052083335, %v759_v29  ;;  %v663_v42 = vpop.xlane.xlu0 %662 }
 0x157   : > { %3478 = vrsqrt.f32 %v1034_v47  ;;  %v839_v28 = vmul.f32 0.0052083335, %v663_v42 }
 0x158   : > { %v3473_v27 = vpop.eup %3472  ;;  %v961_v51 = vsub.f32 %v863_v46, %v912_v19  ;;  %v3574_v46 = vld [vmem:[%s3638_s22 + $0x2d0] sm:$0xff] }
 0x159   : > { %v3475_v59 = vpop.eup %3474  ;;  %v5037_v3 = vmul.f32 %v3473_v27, %v1200_v16  ;;  %v5039_v47 = vmul.f32 %v3473_v27, %v1199_v33  ;;  %v937_v29 = vsub.f32 %v839_v28, %v888_v60  ;;  %v1201_v42 = vsub.f32 %v3574_v46, %v4981_v10  ;;  %v3575_v27 = vld [vmem:[%s3638_s22 + $0x2d8] sm:$0xff]  ;;  %v3576_v28 = vld [vmem:[%s3638_s22 + $0x150] sm:$0xff] }
 0x15a   : > { %v469_v21 = vpop.xlane.xlu1 %468  ;;  %v5041_v14 = vmul.f32 %v3475_v59, %v1152_v35  ;;  %v5043_v12 = vmul.f32 %v3475_v59, %v1151_v20  ;;  %v1010_v57 = vmax.f32 %v961_v51, 0.0  ;;  %v1202_v20 = vsub.f32 %v3575_v27, %v4981_v10 }
 0x15b   : > { %6215 = vst [vmem:[#allocation42_spill] sm:$0xff] %v5037_v3  ;;  %6216 = vst [vmem:[#allocation43_spill] sm:$0xff] %v5039_v47  ;;  %v5045_v48 = vmul.f32 0.0052083335, %v469_v21  ;;  %v373_v1 = vpop.xlane.xlu0 %372  ;;  %3111 = vmatprep.mubr.msk.f32.mxu1 %vm277_vm0, %v5037_v3  ;;  %v986_v16 = vmax.f32 %v937_v29, 0.0  ;;  %v1153_v59 = vsub.f32 %v3576_v28, %v4987_v58 }
 0x15c   : > { %6217 = vst [vmem:[#allocation44_spill] sm:$0xff] %v5041_v14  ;;  %6218 = vst [vmem:[#allocation45_spill] sm:$0xff] %v5043_v12  ;;  %v5049_v19 = vmul.f32 0.0052083335, %v373_v1  ;;  %3087 = vmatprep.mubr.msk.f32.mxu0 %vm277_vm0, %v5041_v14  ;;  %1959 = vmatmul.mubr.f32.gmra.mrb[38].mxu1 %v5039_v47  ;;  %v1059_v33 = vadd.f32 1e-05, %v1010_v57 }
 0x15d   : > { %1815 = vmatmul.mubr.f32.gmra.mrb[40].mxu0 %v5043_v12  ;;  %v1035_v35 = vadd.f32 1e-05, %v986_v16  ;;  %v913_v51 = vmul.f32 %v5045_v48, %v5045_v48  ;;  %v3577_v1 = vld [vmem:[%s3638_s22 + $0x158] sm:$0xff] }
 0x15e   : > { %v763_v60 = vpop.xlane.xlu1 %762  ;;  %3480 = vrsqrt.f32 %v1059_v33  ;;  %v1154_v47 = vsub.f32 %v3577_v1, %v4987_v58  ;;  %v889_v46 = vmul.f32 %v5049_v19, %v5049_v19 }
 0x15f   : > { %v864_v29 = vmul.f32 0.0052083335, %v763_v60  ;;  %v667_v21 = vpop.xlane.xlu0 %666  ;;  %3482 = vrsqrt.f32 %v1035_v35 }
 0x160   : > { %v3477_v57 = vpop.eup %3476  ;;  %v840_v10 = vmul.f32 0.0052083335, %v667_v21 }
 0x161   : > { %v3479_v16 = vpop.eup %3478  ;;  %v962_v27 = vsub.f32 %v864_v29, %v913_v51  ;;  %v5067_v3 = vmul.f32 %v3477_v57, %v1202_v20  ;;  %v5069_v28 = vmul.f32 %v3477_v57, %v1201_v42 }
 0x162   : > { %v938_v33 = vsub.f32 %v840_v10, %v889_v46  ;;  %v473_v12 = vpop.xlane.xlu1 %472  ;;  %v5071_v60 = vmul.f32 %v3479_v16, %v1154_v47  ;;  %v5073_v14 = vmul.f32 %v3479_v16, %v1153_v59  ;;  %v3578_v59 = vld [vmem:[%s3638_s22 + $0x2e0] sm:$0xff]  ;;  %v3579_v46 = vld [vmem:[%s3638_s22 + $0x2e8] sm:$0xff] }
 0x163   : > { %6219 = vst [vmem:[#allocation46_spill] sm:$0xff] %v5067_v3  ;;  %6220 = vst [vmem:[#allocation47_spill] sm:$0xff] %v5069_v28  ;;  %v1011_v15 = vmax.f32 %v962_v27, 0.0  ;;  %v5075_v58 = vmul.f32 0.0052083335, %v473_v12  ;;  %v377_v35 = vpop.xlane.xlu0 %376  ;;  %3112 = vmatprep.mubr.msk.f32.mxu1 %vm277_vm0, %v5067_v3  ;;  %v1203_v29 = vsub.f32 %v3578_v59, %v5015_v23  ;;  %v1204_v10 = vsub.f32 %v3579_v46, %v5015_v23 }
 0x164   : > { %6221 = vst [vmem:[#allocation48_spill] sm:$0xff] %v5073_v14  ;;  %v987_v51 = vmax.f32 %v938_v33, 0.0  ;;  %v5079_v20 = vmul.f32 0.0052083335, %v377_v35  ;;  %3088 = vmatprep.mubr.msk.f32.mxu0 %vm277_vm0, %v5071_v60  ;;  %1965 = vmatmul.mubr.f32.gmra.mrb[40].mxu1 %v5069_v28  ;;  %v3580_v33 = vld [vmem:[%s3638_s22 + $0x160] sm:$0xff] }
 0x165   : > { %v1060_v47 = vadd.f32 1e-05, %v1011_v15  ;;  %1821 = vmatmul.mubr.f32.gmra.mrb[42].mxu0 %v5073_v14  ;;  %v914_v21 = vmul.f32 %v5075_v58, %v5075_v58  ;;  %v1155_v35 = vsub.f32 %v3580_v33, %v5019_v9  ;;  %v3585_v33 = vld [vmem:[%s3638_s22 + $0x178] sm:$0xff] }
 0x166   : > { %v1036_v42 = vadd.f32 1e-05, %v987_v51  ;;  %v767_v12 = vpop.xlane.xlu1 %766  ;;  %v890_v15 = vmul.f32 %v5079_v20, %v5079_v20  ;;  %v3581_v51 = vld [vmem:[%s3638_s22 + $0x168] sm:$0xff] }
 0x167   : > { %3484 = vrsqrt.f32 %v1060_v47  ;;  %v865_v57 = vmul.f32 0.0052083335, %v767_v12  ;;  %v671_v1 = vpop.xlane.xlu0 %670  ;;  %v1156_v47 = vsub.f32 %v3581_v51, %v5019_v9 }
 0x168   : > { %3486 = vrsqrt.f32 %v1036_v42  ;;  %v841_v16 = vmul.f32 0.0052083335, %v671_v1  ;;  %v3481_v27 = vpop.eup %3480 }
 0x169   : > { %v963_v59 = vsub.f32 %v865_v57, %v914_v21  ;;  %v3483_v28 = vpop.eup %3482  ;;  %v5097_v3 = vmul.f32 %v3481_v27, %v1204_v10  ;;  %v5099_v23 = vmul.f32 %v3481_v27, %v1203_v29  ;;  %v3582_v29 = vld [vmem:[%s3638_s22 + $0x2f0] sm:$0xff] }
 0x16a   : > { %v939_v12 = vsub.f32 %v841_v16, %v890_v15  ;;  %v5101_v46 = vmul.f32 %v3483_v28, %v1156_v47  ;;  %v5103_v1 = vmul.f32 %v3483_v28, %v1155_v35  ;;  %v1205_v57 = vsub.f32 %v3582_v29, %v5045_v48  ;;  %v3583_v28 = vld [vmem:[%s3638_s22 + $0x2f8] sm:$0xff]  ;;  %v3584_v16 = vld [vmem:[%s3638_s22 + $0x170] sm:$0xff]  ;;  %v3588_v29 = vld [vmem:[%s3638_s22 + $0x180] sm:$0xff] }
 0x16b   : > { %v1012_v42 = vmax.f32 %v963_v59, 0.0  ;;  %3113 = vmatprep.mubr.msk.f32.mxu1 %vm277_vm0, %v5097_v3  ;;  %v1206_v10 = vsub.f32 %v3583_v28, %v5045_v48  ;;  %v1157_v27 = vsub.f32 %v3584_v16, %v5049_v19  ;;  %v3589_v28 = vld [vmem:[%s3638_s22 + $0x188] sm:$0xff] }
 0x16c   : > { %v988_v14 = vmax.f32 %v939_v12, 0.0  ;;  %3089 = vmatprep.mubr.msk.f32.mxu0 %vm277_vm0, %v5101_v46  ;;  %1971 = vmatmul.mubr.f32.gmra.mrb[42].mxu1 %v5099_v23 }
 0x16d   : > { %v1061_v9 = vadd.f32 1e-05, %v1012_v42  ;;  %1827 = vmatmul.mubr.f32.gmra.mrb[44].mxu0 %v5103_v1  ;;  %v3587_v42 = vld [vmem:[%s3638_s22 + $0x308] sm:$0xff] }
 0x16e   : > { %v1037_v21 = vadd.f32 1e-05, %v988_v14  ;;  %v1158_v14 = vsub.f32 %v3585_v33, %v5049_v19  ;;  %v3586_v19 = vld [vmem:[%s3638_s22 + $0x300] sm:$0xff] }
 0x16f   : > { %3488 = vrsqrt.f32 %v1061_v9  ;;  %v1207_v12 = vsub.f32 %v3586_v19, %v5075_v58  ;;  %v1208_v9 = vsub.f32 %v3587_v42, %v5075_v58 }
 0x170   : > { %3490 = vrsqrt.f32 %v1037_v21 }
 0x171   : > { %v3485_v15 = vpop.eup %3484 }
 0x172   : > { %v3487_v35 = vpop.eup %3486  ;;  %v5119_v51 = vmul.f32 %v3485_v15, %v1206_v10  ;;  %v5121_v47 = vmul.f32 %v3485_v15, %v1205_v57  ;;  %v1159_v57 = vsub.f32 %v3588_v29, %v5079_v20  ;;  %v1160_v10 = vsub.f32 %v3589_v28, %v5079_v20 }
 0x173   : > { %v5123_v59 = vmul.f32 %v3487_v35, %v1158_v14  ;;  %v5125_v48 = vmul.f32 %v3487_v35, %v1157_v27 }
 0x174   : > { %3114 = vmatprep.mubr.msk.f32.mxu1 %vm277_vm0, %v5119_v51 }
 0x175   : > { %3090 = vmatprep.mubr.msk.f32.mxu0 %vm277_vm0, %v5123_v59  ;;  %1977 = vmatmul.mubr.f32.gmra.mrb[44].mxu1 %v5121_v47 }
 0x176   : > { %1833 = vmatmul.mubr.f32.gmra.mrb[46].mxu0 %v5125_v48 }
 0x179   : > { %v3489_v21 = vpop.eup %3488 }
 0x17a   : > { %v3491_v15 = vpop.eup %3490  ;;  %v5141_v16 = vmul.f32 %v3489_v21, %v1208_v9  ;;  %v5143_v27 = vmul.f32 %v3489_v21, %v1207_v12 }
 0x17b   : > { %v5145_v33 = vmul.f32 %v3491_v15, %v1160_v10  ;;  %v5147_v14 = vmul.f32 %v3491_v15, %v1159_v57 }
 0x17c   : > { %3115 = vmatprep.mubr.msk.f32.mxu1 %vm277_vm0, %v5141_v16 }
 0x17d   : > { %3091 = vmatprep.mubr.msk.f32.mxu0 %vm277_vm0, %v5145_v33  ;;  %1983 = vmatmul.mubr.f32.gmra.mrb[46].mxu1 %v5143_v27 }
 0x17e   : > { %1839 = vmatmul.mubr.f32.gmra.mrb[48].mxu0 %v5147_v14  ;;  %3116 = vmatprep.mubr.msk.f32.mxu1 %vm277_vm0, %v4105_v40 }
 0x17f   : > { %3165 = vmatprep.mubr.msk.f32.mxu0 %vm277_vm0, %v4105_v40  ;;  %v1453_v40 = vlaneseq }
 0x181   : > { %2054 = vmatmul.mubr.f32.vlgmr.msra.gmra.mrb[48].mxu1 %v4107_v41 }
 0x182   : > { %2413 = vmatmul.mubr.f32.vlgmr.msra.gmra.mrb[50].mxu0 %v4107_v41  ;;  %3117 = vmatprep.mubr.msk.f32.mxu1 %vm277_vm0, %v4136_v13  ;;  %v5178_v41 = vshrl.u32 %v1453_v40, 7 }
 0x183   : > { %3166 = vmatprep.mubr.msk.f32.mxu0 %vm277_vm0, %v4136_v13 }
 0x184   : > { %v1455_v13 = vsub.s32 0, %v5178_v41 }
 0x185   : > { %2060 = vmatmul.mubr.f32.gmra.mrb[50].mxu1 %v4152_v24 }
 0x186   : > { %2419 = vmatmul.mubr.f32.gmra.mrb[52].mxu0 %v4152_v24  ;;  %3118 = vmatprep.mubr.msk.f32.mxu1 %vm277_vm0, %v4213_v55  ;;  %v5193_v24 = vld [vmem:[%s6079_s2] sm:$0x3f] }
 0x187   : > { %3167 = vmatprep.mubr.msk.f32.mxu0 %vm277_vm0, %v4213_v55  ;;  %v1459_v55 = vsub.s32 1, %v5178_v41 }
 0x189   : > { %2066 = vmatmul.mubr.f32.gmra.mrb[52].mxu1 %v4215_v43 }
 0x18a   : > { %2425 = vmatmul.mubr.f32.gmra.mrb[54].mxu0 %v4215_v43  ;;  %3119 = vmatprep.mubr.msk.f32.mxu1 %vm277_vm0, %v4303_v2  ;;  %v5201_v43 = vrot.slane %v5193_v24, %v1455_v13 }
 0x18b   : > { %3168 = vmatprep.mubr.msk.f32.mxu0 %vm277_vm0, %v4303_v2  ;;  %v5207_v2 = vrot.slane %v5193_v24, %v1459_v55 }
 0x18d   : > { %2072 = vmatmul.mubr.f32.gmra.mrb[54].mxu1 %v4305_v54 }
 0x18e   : > { %2431 = vmatmul.mubr.f32.gmra.mrb[56].mxu0 %v4305_v54  ;;  %3120 = vmatprep.mubr.msk.f32.mxu1 %vm277_vm0, %v4415_v4 }
 0x18f   : > { %3169 = vmatprep.mubr.msk.f32.mxu0 %vm277_vm0, %v4415_v4 }
 0x191   : > { %2078 = vmatmul.mubr.f32.gmra.mrb[56].mxu1 %v4417_v8 }
 0x192   : > { %2437 = vmatmul.mubr.f32.gmra.mrb[58].mxu0 %v4417_v8  ;;  %3121 = vmatprep.mubr.msk.f32.mxu1 %vm277_vm0, %v4491_v25 }
 0x193   : > { %3170 = vmatprep.mubr.msk.f32.mxu0 %vm277_vm0, %v4491_v25 }
 0x195   : > { %2084 = vmatmul.mubr.f32.gmra.mrb[58].mxu1 %v4493_v26 }
 0x196   : > { %2443 = vmatmul.mubr.f32.gmra.mrb[60].mxu0 %v4493_v26  ;;  %3122 = vmatprep.mubr.msk.f32.mxu1 %vm277_vm0, %v4545_v5 }
 0x197   : > { %3171 = vmatprep.mubr.msk.f32.mxu0 %vm277_vm0, %v4545_v5 }
 0x198   : > { %v1696_v54 = vpop.f32.mrb[0].mxu0 }
 0x199   : > { %v1697_v4 = vadd.f32 %v1696_v54, %v5201_v43  ;;  %v1698_v8 = vpop.f32.mrb[1].mxu0  ;;  %2090 = vmatmul.mubr.f32.gmra.mrb[60].mxu1 %v4547_v36 }
 0x19a   : > { %v1699_v25 = vadd.f32 %v1698_v8, %v5207_v2  ;;  %2449 = vmatmul.mubr.f32.gmra.mrb[62].mxu0 %v4547_v36  ;;  %3123 = vmatprep.mubr.msk.f32.mxu1 %vm277_vm0, %v4599_v6 }
 0x19b   : > { %2707 = vst [vmem:[%s5214_s14] sm:$0xff] %v1697_v4  ;;  %3172 = vmatprep.mubr.msk.f32.mxu0 %vm277_vm0, %v4599_v6 }
 0x19c   : > { %2708 = vst [vmem:[%s5214_s14 + $0x8] sm:$0xff] %v1699_v25  ;;  %v1846_v26 = vpop.f32.mrb[0].mxu1 }
 0x19d   : > { %v1702_v5 = vpop.f32.mrb[2].mxu0  ;;  %v1847_v58 = vadd.f32 %v1846_v26, %v5201_v43  ;;  %v1848_v20 = vpop.f32.mrb[1].mxu1  ;;  %2096 = vmatmul.mubr.f32.gmra.mrb[62].mxu1 %v4601_v52 }
 0x19e   : > { %v1703_v36 = vadd.f32 %v1702_v5, %v5201_v43  ;;  %v1704_v35 = vpop.f32.mrb[3].mxu0  ;;  %v1849_v19 = vadd.f32 %v1848_v20, %v5207_v2  ;;  %2455 = vmatmul.mubr.f32.gmra.mrb[64].mxu0 %v4601_v52  ;;  %3124 = vmatprep.mubr.msk.f32.mxu1 %vm277_vm0, %v4677_v22 }
 0x19f   : > { %2857 = vst [vmem:[%s5214_s14 + $0x4b0] sm:$0xff] %v1847_v58  ;;  %v1705_v6 = vadd.f32 %v1704_v35, %v5207_v2  ;;  %3173 = vmatprep.mubr.msk.f32.mxu0 %vm277_vm0, %v4677_v22 }
 0x1a0   : > { %2713 = vst [vmem:[%s5214_s14 + $0x30] sm:$0xff] %v1703_v36  ;;  %2858 = vst [vmem:[%s5214_s14 + $0x4b8] sm:$0xff] %v1849_v19  ;;  %v1852_v12 = vpop.f32.mrb[2].mxu1 }
 0x1a1   : > { %2714 = vst [vmem:[%s5214_s14 + $0x38] sm:$0xff] %v1705_v6  ;;  %v1708_v42 = vpop.f32.mrb[4].mxu0  ;;  %v1853_v52 = vadd.f32 %v1852_v12, %v5201_v43  ;;  %v1854_v9 = vpop.f32.mrb[3].mxu1  ;;  %2102 = vmatmul.mubr.f32.gmra.mrb[64].mxu1 %v4679_v31 }
 0x1a2   : > { %v1709_v21 = vadd.f32 %v1708_v42, %v5201_v43  ;;  %v1710_v29 = vpop.f32.mrb[5].mxu0  ;;  %v1855_v57 = vadd.f32 %v1854_v9, %v5207_v2  ;;  %2461 = vmatmul.mubr.f32.gmra.mrb[66].mxu0 %v4679_v31  ;;  %3125 = vmatprep.mubr.msk.f32.mxu1 %vm277_vm0, %v4713_v30  ;;  %v6222_v9 = vld [vmem:[#allocation38_spill] sm:$0xff] }
 0x1a3   : > { %2863 = vst [vmem:[%s5214_s14 + $0x4e0] sm:$0xff] %v1853_v52  ;;  %v1711_v22 = vadd.f32 %v1710_v29, %v5207_v2  ;;  %3174 = vmatprep.mubr.msk.f32.mxu0 %vm277_vm0, %v4713_v30 }
 0x1a4   : > { %2719 = vst [vmem:[%s5214_s14 + $0x60] sm:$0xff] %v1709_v21  ;;  %2864 = vst [vmem:[%s5214_s14 + $0x4e8] sm:$0xff] %v1855_v57  ;;  %v6224_v21 = vld [vmem:[#allocation44_spill] sm:$0xff] }
 0x1a5   : > { %2720 = vst [vmem:[%s5214_s14 + $0x68] sm:$0xff] %v1711_v22  ;;  %2108 = vmatmul.mubr.f32.gmra.mrb[66].mxu1 %v4715_v50 }
 0x1a6   : > { %2467 = vmatmul.mubr.f32.gmra.mrb[68].mxu0 %v4715_v50  ;;  %3126 = vmatprep.mubr.msk.f32.mxu1 %vm277_vm0, %v4743_v49 }
 0x1a7   : > { %3175 = vmatprep.mubr.msk.f32.mxu0 %vm277_vm0, %v4743_v49  ;;  %v1858_v31 = vpop.f32.mrb[4].mxu1 }
 0x1a8   : > { %v1714_v28 = vpop.f32.mrb[6].mxu0  ;;  %v1859_v30 = vadd.f32 %v1858_v31, %v5201_v43  ;;  %v1860_v10 = vpop.f32.mrb[5].mxu1 }
 0x1a9   : > { %v1715_v15 = vadd.f32 %v1714_v28, %v5201_v43  ;;  %v1716_v40 = vpop.f32.mrb[7].mxu0  ;;  %v1861_v13 = vadd.f32 %v1860_v10, %v5207_v2  ;;  %2114 = vmatmul.mubr.f32.gmra.mrb[68].mxu1 %v4745_v7  ;;  %v6225_v10 = vld [vmem:[#allocation45_spill] sm:$0xff] }
 0x1aa   : > { %2869 = vst [vmem:[%s5214_s14 + $0x510] sm:$0xff] %v1859_v30  ;;  %v1717_v50 = vadd.f32 %v1716_v40, %v5207_v2  ;;  %2473 = vmatmul.mubr.f32.gmra.mrb[70].mxu0 %v4745_v7  ;;  %3127 = vmatprep.mubr.msk.f32.mxu1 %vm277_vm0, %v4773_v37  ;;  %v6226_v40 = vld [vmem:[#allocation48_spill] sm:$0xff] }
 0x1ab   : > { %2725 = vst [vmem:[%s5214_s14 + $0x90] sm:$0xff] %v1715_v15  ;;  %2870 = vst [vmem:[%s5214_s14 + $0x518] sm:$0xff] %v1861_v13  ;;  %3176 = vmatprep.mubr.msk.f32.mxu0 %vm277_vm0, %v4773_v37 }
 0x1ac   : > { %2726 = vst [vmem:[%s5214_s14 + $0x98] sm:$0xff] %v1717_v50 }
 0x1ad   : > { %2120 = vmatmul.mubr.f32.gmra.mrb[70].mxu1 %v4775_v32 }
 0x1ae   : > { %2479 = vmatmul.mubr.f32.gmra.mrb[72].mxu0 %v4775_v32  ;;  %3128 = vmatprep.mubr.msk.f32.mxu1 %vm277_vm0, %v4803_v17 }
 0x1af   : > { %3177 = vmatprep.mubr.msk.f32.mxu0 %vm277_vm0, %v4803_v17  ;;  %v1864_v7 = vpop.f32.mrb[6].mxu1 }
 0x1b0   : > { %v1720_v49 = vpop.f32.mrb[8].mxu0  ;;  %v1865_v55 = vadd.f32 %v1864_v7, %v5201_v43  ;;  %v1866_v54 = vpop.f32.mrb[7].mxu1 }
 0x1b1   : > { %v1721_v37 = vadd.f32 %v1720_v49, %v5201_v43  ;;  %v1722_v4 = vpop.f32.mrb[9].mxu0  ;;  %v1867_v8 = vadd.f32 %v1866_v54, %v5207_v2  ;;  %2126 = vmatmul.mubr.f32.gmra.mrb[72].mxu1 %v4805_v18 }
 0x1b2   : > { %2875 = vst [vmem:[%s5214_s14 + $0x540] sm:$0xff] %v1865_v55  ;;  %v1723_v32 = vadd.f32 %v1722_v4, %v5207_v2  ;;  %2485 = vmatmul.mubr.f32.gmra.mrb[74].mxu0 %v4805_v18  ;;  %3129 = vmatprep.mubr.msk.f32.mxu1 %vm277_vm0, %v4833_v63 }
 0x1b3   : > { %2731 = vst [vmem:[%s5214_s14 + $0xc0] sm:$0xff] %v1721_v37  ;;  %2876 = vst [vmem:[%s5214_s14 + $0x548] sm:$0xff] %v1867_v8  ;;  %3178 = vmatprep.mubr.msk.f32.mxu0 %vm277_vm0, %v4833_v63 }
 0x1b4   : > { %2732 = vst [vmem:[%s5214_s14 + $0xc8] sm:$0xff] %v1723_v32 }
 0x1b5   : > { %2132 = vmatmul.mubr.f32.gmra.mrb[74].mxu1 %v4835_v56 }
 0x1b6   : > { %2491 = vmatmul.mubr.f32.gmra.mrb[76].mxu0 %v4835_v56  ;;  %3130 = vmatprep.mubr.msk.f32.mxu1 %vm277_vm0, %v4863_v38 }
 0x1b7   : > { %3179 = vmatprep.mubr.msk.f32.mxu0 %vm277_vm0, %v4863_v38  ;;  %v1870_v18 = vpop.f32.mrb[8].mxu1 }
 0x1b8   : > { %v1726_v17 = vpop.f32.mrb[10].mxu0  ;;  %v1871_v25 = vadd.f32 %v1870_v18, %v5201_v43  ;;  %v1872_v26 = vpop.f32.mrb[9].mxu1 }
 0x1b9   : > { %v1727_v63 = vadd.f32 %v1726_v17, %v5201_v43  ;;  %v1728_v5 = vpop.f32.mrb[11].mxu0  ;;  %v1873_v58 = vadd.f32 %v1872_v26, %v5207_v2  ;;  %2138 = vmatmul.mubr.f32.gmra.mrb[76].mxu1 %v4865_v34  ;;  %v6227_v17 = vld [vmem:[#allocation2_spill] sm:$0xff] }
 0x1ba   : > { %2881 = vst [vmem:[%s5214_s14 + $0x570] sm:$0xff] %v1871_v25  ;;  %v1729_v56 = vadd.f32 %v1728_v5, %v5207_v2  ;;  %2497 = vmatmul.mubr.f32.gmra.mrb[78].mxu0 %v4865_v34  ;;  %3131 = vmatprep.mubr.msk.f32.mxu1 %vm277_vm0, %v4893_v11  ;;  %v6229_v25 = vld [vmem:[#allocation4_spill] sm:$0xff] }
 0x1bb   : > { %2737 = vst [vmem:[%s5214_s14 + $0xf0] sm:$0xff] %v1727_v63  ;;  %2882 = vst [vmem:[%s5214_s14 + $0x578] sm:$0xff] %v1873_v58  ;;  %3180 = vmatprep.mubr.msk.f32.mxu0 %vm277_vm0, %v4893_v11 }
 0x1bc   : > { %2738 = vst [vmem:[%s5214_s14 + $0xf8] sm:$0xff] %v1729_v56 }
 0x1bd   : > { %2144 = vmatmul.mubr.f32.gmra.mrb[78].mxu1 %v4895_v61 }
 0x1be   : > { %2503 = vmatmul.mubr.f32.gmra.mrb[80].mxu0 %v4895_v61  ;;  %3132 = vmatprep.mubr.msk.f32.mxu1 %vm277_vm0, %v4923_v62 }
 0x1bf   : > { %3181 = vmatprep.mubr.msk.f32.mxu0 %vm277_vm0, %v4923_v62  ;;  %v1876_v34 = vpop.f32.mrb[10].mxu1 }
 0x1c0   : > { %v1732_v38 = vpop.f32.mrb[12].mxu0  ;;  %v1877_v20 = vadd.f32 %v1876_v34, %v5201_v43  ;;  %v1878_v36 = vpop.f32.mrb[11].mxu1 }
 0x1c1   : > { %v1733_v11 = vadd.f32 %v1732_v38, %v5201_v43  ;;  %v1734_v35 = vpop.f32.mrb[13].mxu0  ;;  %v1879_v19 = vadd.f32 %v1878_v36, %v5207_v2  ;;  %2150 = vmatmul.mubr.f32.gmra.mrb[80].mxu1 %v4925_v45  ;;  %v6230_v38 = vld [vmem:[#allocation5_spill] sm:$0xff]  ;;  %v6231_v36 = vld [vmem:[#allocation6_spill] sm:$0xff] }
 0x1c2   : > { %2887 = vst [vmem:[%s5214_s14 + $0x5a0] sm:$0xff] %v1877_v20  ;;  %v1735_v61 = vadd.f32 %v1734_v35, %v5207_v2  ;;  %2509 = vmatmul.mubr.f32.gmra.mrb[82].mxu0 %v4925_v45  ;;  %3133 = vmatprep.mubr.msk.f32.mxu1 %vm277_vm0, %v4953_v0  ;;  %v6233_v35 = vld [vmem:[#allocation8_spill] sm:$0xff] }
 0x1c3   : > { %2743 = vst [vmem:[%s5214_s14 + $0x120] sm:$0xff] %v1733_v11  ;;  %2888 = vst [vmem:[%s5214_s14 + $0x5a8] sm:$0xff] %v1879_v19  ;;  %3182 = vmatprep.mubr.msk.f32.mxu0 %vm277_vm0, %v4953_v0  ;;  %v6232_v11 = vld [vmem:[#allocation7_spill] sm:$0xff] }
 0x1c4   : > { %2744 = vst [vmem:[%s5214_s14 + $0x128] sm:$0xff] %v1735_v61 }
 0x1c5   : > { %2156 = vmatmul.mubr.f32.gmra.mrb[82].mxu1 %v4955_v44 }
 0x1c6   : > { %2515 = vmatmul.mubr.f32.gmra.mrb[84].mxu0 %v4955_v44  ;;  %3134 = vmatprep.mubr.msk.f32.mxu1 %vm277_vm0, %v4983_v53 }
 0x1c7   : > { %3183 = vmatprep.mubr.msk.f32.mxu0 %vm277_vm0, %v4983_v53  ;;  %v1882_v45 = vpop.f32.mrb[12].mxu1  ;;  %v6223_v53 = vld [vmem:[#allocation41_spill] sm:$0xff] }
 0x1c8   : > { %v1738_v62 = vpop.f32.mrb[14].mxu0  ;;  %v1883_v6 = vadd.f32 %v1882_v45, %v5201_v43  ;;  %v1884_v12 = vpop.f32.mrb[13].mxu1 }
 0x1c9   : > { %v1739_v0 = vadd.f32 %v1738_v62, %v5201_v43  ;;  %v1740_v42 = vpop.f32.mrb[15].mxu0  ;;  %v1885_v52 = vadd.f32 %v1884_v12, %v5207_v2  ;;  %2162 = vmatmul.mubr.f32.gmra.mrb[84].mxu1 %v6222_v9 }
 0x1ca   : > { %2893 = vst [vmem:[%s5214_s14 + $0x5d0] sm:$0xff] %v1883_v6  ;;  %v1741_v44 = vadd.f32 %v1740_v42, %v5207_v2  ;;  %2521 = vmatmul.mubr.f32.gmra.mrb[86].mxu0 %v6222_v9  ;;  %3135 = vmatprep.mubr.msk.f32.mxu1 %vm277_vm0, %v5011_v39  ;;  %v6234_v42 = vld [vmem:[#allocation9_spill] sm:$0xff]  ;;  %v6235_v9 = vld [vmem:[#allocation10_spill] sm:$0xff] }
 0x1cb   : > { %2749 = vst [vmem:[%s5214_s14 + $0x150] sm:$0xff] %v1739_v0  ;;  %2894 = vst [vmem:[%s5214_s14 + $0x5d8] sm:$0xff] %v1885_v52  ;;  %3184 = vmatprep.mubr.msk.f32.mxu0 %vm277_vm0, %v5011_v39 }
 0x1cc   : > { %2750 = vst [vmem:[%s5214_s14 + $0x158] sm:$0xff] %v1741_v44  ;;  %v6236_v44 = vld [vmem:[#allocation11_spill] sm:$0xff] }
 0x1cd   : > { %2168 = vmatmul.mubr.f32.gmra.mrb[86].mxu1 %v6223_v53 }
 0x1ce   : > { %2527 = vmatmul.mubr.f32.gmra.mrb[88].mxu0 %v6223_v53  ;;  %3136 = vmatprep.mubr.msk.f32.mxu1 %vm277_vm0, %v6224_v21  ;;  %v6237_v53 = vld [vmem:[#allocation12_spill] sm:$0xff] }
 0x1cf   : > { %3185 = vmatprep.mubr.msk.f32.mxu0 %vm277_vm0, %v6224_v21  ;;  %v1888_v29 = vpop.f32.mrb[14].mxu1 }
 0x1d0   : > { %v1744_v57 = vpop.f32.mrb[16].mxu0  ;;  %v1889_v22 = vadd.f32 %v1888_v29, %v5201_v43  ;;  %v1890_v31 = vpop.f32.mrb[15].mxu1 }
 0x1d1   : > { %v1745_v39 = vadd.f32 %v1744_v57, %v5201_v43  ;;  %v1746_v28 = vpop.f32.mrb[17].mxu0  ;;  %v1891_v30 = vadd.f32 %v1890_v31, %v5207_v2  ;;  %2174 = vmatmul.mubr.f32.gmra.mrb[88].mxu1 %v6225_v10 }
 0x1d2   : > { %2899 = vst [vmem:[%s5214_s14 + $0x600] sm:$0xff] %v1889_v22  ;;  %v1747_v15 = vadd.f32 %v1746_v28, %v5207_v2  ;;  %2533 = vmatmul.mubr.f32.gmra.mrb[90].mxu0 %v6225_v10  ;;  %3137 = vmatprep.mubr.msk.f32.mxu1 %vm277_vm0, %v5071_v60 }
 0x1d3   : > { %2755 = vst [vmem:[%s5214_s14 + $0x180] sm:$0xff] %v1745_v39  ;;  %2900 = vst [vmem:[%s5214_s14 + $0x608] sm:$0xff] %v1891_v30  ;;  %3186 = vmatprep.mubr.msk.f32.mxu0 %vm277_vm0, %v5071_v60  ;;  %v6238_v30 = vld [vmem:[#allocation13_spill] sm:$0xff] }
 0x1d4   : > { %2756 = vst [vmem:[%s5214_s14 + $0x188] sm:$0xff] %v1747_v15  ;;  %v6239_v15 = vld [vmem:[#allocation14_spill] sm:$0xff] }
 0x1d5   : > { %2180 = vmatmul.mubr.f32.gmra.mrb[90].mxu1 %v6226_v40 }
 0x1d6   : > { %2539 = vmatmul.mubr.f32.gmra.mrb[92].mxu0 %v6226_v40  ;;  %3138 = vmatprep.mubr.msk.f32.mxu1 %vm277_vm0, %v5101_v46  ;;  %v6240_v40 = vld [vmem:[#allocation15_spill] sm:$0xff] }
 0x1d7   : > { %3187 = vmatprep.mubr.msk.f32.mxu0 %vm277_vm0, %v5101_v46  ;;  %v1894_v13 = vpop.f32.mrb[16].mxu1 }
 0x1d8   : > { %v1750_v50 = vpop.f32.mrb[18].mxu0  ;;  %v1895_v7 = vadd.f32 %v1894_v13, %v5201_v43  ;;  %v1896_v49 = vpop.f32.mrb[17].mxu1  ;;  %v6241_v13 = vld [vmem:[#allocation16_spill] sm:$0xff] }
 0x1d9   : > { %v1751_v60 = vadd.f32 %v1750_v50, %v5201_v43  ;;  %v1752_v55 = vpop.f32.mrb[19].mxu0  ;;  %v1897_v54 = vadd.f32 %v1896_v49, %v5207_v2  ;;  %2186 = vmatmul.mubr.f32.gmra.mrb[92].mxu1 %v5103_v1 }
 0x1da   : > { %2905 = vst [vmem:[%s5214_s14 + $0x630] sm:$0xff] %v1895_v7  ;;  %v1753_v37 = vadd.f32 %v1752_v55, %v5207_v2  ;;  %2545 = vmatmul.mubr.f32.gmra.mrb[94].mxu0 %v5103_v1  ;;  %3139 = vmatprep.mubr.msk.f32.mxu1 %vm277_vm0, %v5123_v59 }
 0x1db   : > { %2761 = vst [vmem:[%s5214_s14 + $0x1b0] sm:$0xff] %v1751_v60  ;;  %2906 = vst [vmem:[%s5214_s14 + $0x638] sm:$0xff] %v1897_v54  ;;  %3188 = vmatprep.mubr.msk.f32.mxu0 %vm277_vm0, %v5123_v59 }
 0x1dc   : > { %2762 = vst [vmem:[%s5214_s14 + $0x1b8] sm:$0xff] %v1753_v37 }
 0x1dd   : > { %2192 = vmatmul.mubr.f32.gmra.mrb[94].mxu1 %v5125_v48 }
 0x1de   : > { %2551 = vmatmul.mubr.f32.gmra.mrb[96].mxu0 %v5125_v48  ;;  %3140 = vmatprep.mubr.msk.f32.mxu1 %vm277_vm0, %v5145_v33 }
 0x1df   : > { %3189 = vmatprep.mubr.msk.f32.mxu0 %vm277_vm0, %v5145_v33  ;;  %v1900_v46 = vpop.f32.mrb[18].mxu1  ;;  %v6228_v33 = vld [vmem:[#allocation3_spill] sm:$0xff] }
 0x1e0   : > { %v1756_v1 = vpop.f32.mrb[20].mxu0  ;;  %v1901_v4 = vadd.f32 %v1900_v46, %v5201_v43  ;;  %v1902_v8 = vpop.f32.mrb[19].mxu1  ;;  %v6242_v46 = vld [vmem:[#allocation17_spill] sm:$0xff] }
 0x1e1   : > { %v1757_v59 = vadd.f32 %v1756_v1, %v5201_v43  ;;  %v1758_v32 = vpop.f32.mrb[21].mxu0  ;;  %v1903_v18 = vadd.f32 %v1902_v8, %v5207_v2  ;;  %2198 = vmatmul.mubr.f32.gmra.mrb[96].mxu1 %v5147_v14  ;;  %v6244_v8 = vld [vmem:[#allocation19_spill] sm:$0xff] }
 0x1e2   : > { %2911 = vst [vmem:[%s5214_s14 + $0x660] sm:$0xff] %v1901_v4  ;;  %v1759_v48 = vadd.f32 %v1758_v32, %v5207_v2  ;;  %2557 = vmatmul.mubr.f32.gmra.mrb[98].mxu0 %v5147_v14  ;;  %3141 = vmatprep.mubr.msk.f32.mxu1 %vm277_vm0, %v6227_v17  ;;  %v6243_v4 = vld [vmem:[#allocation18_spill] sm:$0xff] }
 0x1e3   : > { %2767 = vst [vmem:[%s5214_s14 + $0x1e0] sm:$0xff] %v1757_v59  ;;  %2912 = vst [vmem:[%s5214_s14 + $0x668] sm:$0xff] %v1903_v18  ;;  %3190 = vmatprep.mubr.msk.f32.mxu0 %vm277_vm0, %v6227_v17  ;;  %v6245_v59 = vld [vmem:[#allocation20_spill] sm:$0xff] }
 0x1e4   : > { %2768 = vst [vmem:[%s5214_s14 + $0x1e8] sm:$0xff] %v1759_v48 }
 0x1e5   : > { %2204 = vmatmul.mubr.f32.gmra.mrb[98].mxu1 %v6228_v33 }
 0x1e6   : > { %2563 = vmatmul.mubr.f32.gmra.mrb[100].mxu0 %v6228_v33  ;;  %3142 = vmatprep.mubr.msk.f32.mxu1 %vm277_vm0, %v6229_v25 }
 0x1e7   : > { %3191 = vmatprep.mubr.msk.f32.mxu0 %vm277_vm0, %v6229_v25  ;;  %v1906_v14 = vpop.f32.mrb[20].mxu1 }
 0x1e8   : > { %v1762_v26 = vpop.f32.mrb[22].mxu0  ;;  %v1907_v63 = vadd.f32 %v1906_v14, %v5201_v43  ;;  %v1908_v5 = vpop.f32.mrb[21].mxu1 }
 0x1e9   : > { %v1763_v58 = vadd.f32 %v1762_v26, %v5201_v43  ;;  %v1764_v56 = vpop.f32.mrb[23].mxu0  ;;  %v1909_v34 = vadd.f32 %v1908_v5, %v5207_v2  ;;  %2210 = vmatmul.mubr.f32.gmra.mrb[100].mxu1 %v6230_v38  ;;  %v6246_v26 = vld [vmem:[#allocation21_spill] sm:$0xff]  ;;  %v6247_v5 = vld [vmem:[#allocation22_spill] sm:$0xff] }
 0x1ea   : > { %2917 = vst [vmem:[%s5214_s14 + $0x690] sm:$0xff] %v1907_v63  ;;  %v1765_v20 = vadd.f32 %v1764_v56, %v5207_v2  ;;  %2569 = vmatmul.mubr.f32.gmra.mrb[102].mxu0 %v6230_v38  ;;  %3143 = vmatprep.mubr.msk.f32.mxu1 %vm277_vm0, %v6231_v36  ;;  %v6249_v56 = vld [vmem:[#allocation24_spill] sm:$0xff] }
 0x1eb   : > { %2773 = vst [vmem:[%s5214_s14 + $0x210] sm:$0xff] %v1763_v58  ;;  %2918 = vst [vmem:[%s5214_s14 + $0x698] sm:$0xff] %v1909_v34  ;;  %3192 = vmatprep.mubr.msk.f32.mxu0 %vm277_vm0, %v6231_v36  ;;  %v6248_v58 = vld [vmem:[#allocation23_spill] sm:$0xff] }
 0x1ec   : > { %2774 = vst [vmem:[%s5214_s14 + $0x218] sm:$0xff] %v1765_v20 }
 0x1ed   : > { %2216 = vmatmul.mubr.f32.gmra.mrb[102].mxu1 %v6232_v11 }
 0x1ee   : > { %2575 = vmatmul.mubr.f32.gmra.mrb[104].mxu0 %v6232_v11  ;;  %3144 = vmatprep.mubr.msk.f32.mxu1 %vm277_vm0, %v6233_v35 }
 0x1ef   : > { %3193 = vmatprep.mubr.msk.f32.mxu0 %vm277_vm0, %v6233_v35  ;;  %v1912_v19 = vpop.f32.mrb[22].mxu1 }
 0x1f0   : > { %v1768_v61 = vpop.f32.mrb[24].mxu0  ;;  %v1913_v45 = vadd.f32 %v1912_v19, %v5201_v43  ;;  %v1914_v62 = vpop.f32.mrb[23].mxu1 }
 0x1f1   : > { %v1769_v6 = vadd.f32 %v1768_v61, %v5201_v43  ;;  %v1770_v12 = vpop.f32.mrb[25].mxu0  ;;  %v1915_v0 = vadd.f32 %v1914_v62, %v5207_v2  ;;  %2222 = vmatmul.mubr.f32.gmra.mrb[104].mxu1 %v6234_v42  ;;  %v6250_v61 = vld [vmem:[#allocation25_spill] sm:$0xff]  ;;  %v6251_v62 = vld [vmem:[#allocation26_spill] sm:$0xff] }
 0x1f2   : > { %2923 = vst [vmem:[%s5214_s14 + $0x6c0] sm:$0xff] %v1913_v45  ;;  %v1771_v52 = vadd.f32 %v1770_v12, %v5207_v2  ;;  %2581 = vmatmul.mubr.f32.gmra.mrb[106].mxu0 %v6234_v42  ;;  %3145 = vmatprep.mubr.msk.f32.mxu1 %vm277_vm0, %v6235_v9  ;;  %v6253_v12 = vld [vmem:[#allocation28_spill] sm:$0xff] }
 0x1f3   : > { %2779 = vst [vmem:[%s5214_s14 + $0x240] sm:$0xff] %v1769_v6  ;;  %2924 = vst [vmem:[%s5214_s14 + $0x6c8] sm:$0xff] %v1915_v0  ;;  %3194 = vmatprep.mubr.msk.f32.mxu0 %vm277_vm0, %v6235_v9  ;;  %v6252_v6 = vld [vmem:[#allocation27_spill] sm:$0xff] }
 0x1f4   : > { %2780 = vst [vmem:[%s5214_s14 + $0x248] sm:$0xff] %v1771_v52 }
 0x1f5   : > { %2228 = vmatmul.mubr.f32.gmra.mrb[106].mxu1 %v6236_v44 }
 0x1f6   : > { %2587 = vmatmul.mubr.f32.gmra.mrb[108].mxu0 %v6236_v44  ;;  %3146 = vmatprep.mubr.msk.f32.mxu1 %vm277_vm0, %v6237_v53 }
 0x1f7   : > { %3195 = vmatprep.mubr.msk.f32.mxu0 %vm277_vm0, %v6237_v53  ;;  %v1918_v21 = vpop.f32.mrb[24].mxu1 }
 0x1f8   : > { %v1774_v29 = vpop.f32.mrb[26].mxu0  ;;  %v1919_v57 = vadd.f32 %v1918_v21, %v5201_v43  ;;  %v1920_v22 = vpop.f32.mrb[25].mxu1 }
 0x1f9   : > { %v1775_v31 = vadd.f32 %v1774_v29, %v5201_v43  ;;  %v1776_v39 = vpop.f32.mrb[27].mxu0  ;;  %v1921_v28 = vadd.f32 %v1920_v22, %v5207_v2  ;;  %2234 = vmatmul.mubr.f32.gmra.mrb[108].mxu1 %v6238_v30  ;;  %v6254_v29 = vld [vmem:[#allocation29_spill] sm:$0xff]  ;;  %v6255_v22 = vld [vmem:[#allocation30_spill] sm:$0xff] }
 0x1fa   : > { %2929 = vst [vmem:[%s5214_s14 + $0x6f0] sm:$0xff] %v1919_v57  ;;  %v1777_v10 = vadd.f32 %v1776_v39, %v5207_v2  ;;  %2593 = vmatmul.mubr.f32.gmra.mrb[110].mxu0 %v6238_v30  ;;  %3147 = vmatprep.mubr.msk.f32.mxu1 %vm277_vm0, %v6239_v15  ;;  %v6257_v39 = vld [vmem:[#allocation32_spill] sm:$0xff] }
 0x1fb   : > { %2785 = vst [vmem:[%s5214_s14 + $0x270] sm:$0xff] %v1775_v31  ;;  %2930 = vst [vmem:[%s5214_s14 + $0x6f8] sm:$0xff] %v1921_v28  ;;  %3196 = vmatprep.mubr.msk.f32.mxu0 %vm277_vm0, %v6239_v15  ;;  %v6256_v31 = vld [vmem:[#allocation31_spill] sm:$0xff] }
 0x1fc   : > { %2786 = vst [vmem:[%s5214_s14 + $0x278] sm:$0xff] %v1777_v10 }
 0x1fd   : > { %2240 = vmatmul.mubr.f32.gmra.mrb[110].mxu1 %v6240_v40 }
 0x1fe   : > { %2599 = vmatmul.mubr.f32.gmra.mrb[112].mxu0 %v6240_v40  ;;  %3148 = vmatprep.mubr.msk.f32.mxu1 %vm277_vm0, %v6241_v13 }
 0x1ff   : > { %3197 = vmatprep.mubr.msk.f32.mxu0 %vm277_vm0, %v6241_v13  ;;  %v1924_v50 = vpop.f32.mrb[26].mxu1 }
 0x200   : > { %v1780_v7 = vpop.f32.mrb[28].mxu0  ;;  %v1925_v49 = vadd.f32 %v1924_v50, %v5201_v43  ;;  %v1926_v60 = vpop.f32.mrb[27].mxu1 }
 0x201   : > { %v1781_v55 = vadd.f32 %v1780_v7, %v5201_v43  ;;  %v1782_v54 = vpop.f32.mrb[29].mxu0  ;;  %v1927_v37 = vadd.f32 %v1926_v60, %v5207_v2  ;;  %2246 = vmatmul.mubr.f32.gmra.mrb[112].mxu1 %v6242_v46  ;;  %v6258_v7 = vld [vmem:[#allocation33_spill] sm:$0xff]  ;;  %v6259_v60 = vld [vmem:[#allocation34_spill] sm:$0xff] }
 0x202   : > { %2935 = vst [vmem:[%s5214_s14 + $0x720] sm:$0xff] %v1925_v49  ;;  %v1783_v1 = vadd.f32 %v1782_v54, %v5207_v2  ;;  %2605 = vmatmul.mubr.f32.gmra.mrb[114].mxu0 %v6242_v46  ;;  %3149 = vmatprep.mubr.msk.f32.mxu1 %vm277_vm0, %v6243_v4  ;;  %v6261_v54 = vld [vmem:[#allocation36_spill] sm:$0xff] }
 0x203   : > { %2791 = vst [vmem:[%s5214_s14 + $0x2a0] sm:$0xff] %v1781_v55  ;;  %2936 = vst [vmem:[%s5214_s14 + $0x728] sm:$0xff] %v1927_v37  ;;  %3198 = vmatprep.mubr.msk.f32.mxu0 %vm277_vm0, %v6243_v4  ;;  %v6260_v55 = vld [vmem:[#allocation35_spill] sm:$0xff] }
 0x204   : > { %2792 = vst [vmem:[%s5214_s14 + $0x2a8] sm:$0xff] %v1783_v1 }
 0x205   : > { %2252 = vmatmul.mubr.f32.gmra.mrb[114].mxu1 %v6244_v8 }
 0x206   : > { %2611 = vmatmul.mubr.f32.gmra.mrb[116].mxu0 %v6244_v8  ;;  %3150 = vmatprep.mubr.msk.f32.mxu1 %vm277_vm0, %v6245_v59 }
 0x207   : > { %3199 = vmatprep.mubr.msk.f32.mxu0 %vm277_vm0, %v6245_v59  ;;  %v1930_v32 = vpop.f32.mrb[28].mxu1 }
 0x208   : > { %v1786_v18 = vpop.f32.mrb[30].mxu0  ;;  %v1931_v48 = vadd.f32 %v1930_v32, %v5201_v43  ;;  %v1932_v17 = vpop.f32.mrb[29].mxu1 }
 0x209   : > { %v1787_v33 = vadd.f32 %v1786_v18, %v5201_v43  ;;  %v1788_v25 = vpop.f32.mrb[31].mxu0  ;;  %v1933_v14 = vadd.f32 %v1932_v17, %v5207_v2  ;;  %2258 = vmatmul.mubr.f32.gmra.mrb[116].mxu1 %v6246_v26  ;;  %v6262_v18 = vld [vmem:[#allocation37_spill] sm:$0xff]  ;;  %v6263_v17 = vld [vmem:[#allocation39_spill] sm:$0xff] }
 0x20a   : > { %2941 = vst [vmem:[%s5214_s14 + $0x750] sm:$0xff] %v1931_v48  ;;  %v1789_v63 = vadd.f32 %v1788_v25, %v5207_v2  ;;  %2617 = vmatmul.mubr.f32.gmra.mrb[118].mxu0 %v6246_v26  ;;  %3151 = vmatprep.mubr.msk.f32.mxu1 %vm277_vm0, %v6247_v5  ;;  %v6265_v25 = vld [vmem:[#allocation42_spill] sm:$0xff] }
 0x20b   : > { %2797 = vst [vmem:[%s5214_s14 + $0x2d0] sm:$0xff] %v1787_v33  ;;  %2942 = vst [vmem:[%s5214_s14 + $0x758] sm:$0xff] %v1933_v14  ;;  %3200 = vmatprep.mubr.msk.f32.mxu0 %vm277_vm0, %v6247_v5  ;;  %v6264_v33 = vld [vmem:[#allocation40_spill] sm:$0xff] }
 0x20c   : > { %2798 = vst [vmem:[%s5214_s14 + $0x2d8] sm:$0xff] %v1789_v63 }
 0x20d   : > { %2264 = vmatmul.mubr.f32.gmra.mrb[118].mxu1 %v6248_v58 }
 0x20e   : > { %2623 = vmatmul.mubr.f32.gmra.mrb[120].mxu0 %v6248_v58  ;;  %3152 = vmatprep.mubr.msk.f32.mxu1 %vm277_vm0, %v6249_v56 }
 0x20f   : > { %3201 = vmatprep.mubr.msk.f32.mxu0 %vm277_vm0, %v6249_v56  ;;  %v1936_v34 = vpop.f32.mrb[30].mxu1 }
 0x210   : > { %v1792_v38 = vpop.f32.mrb[32].mxu0  ;;  %v1937_v20 = vadd.f32 %v1936_v34, %v5201_v43  ;;  %v1938_v36 = vpop.f32.mrb[31].mxu1 }
 0x211   : > { %v1793_v11 = vadd.f32 %v1792_v38, %v5201_v43  ;;  %v1794_v35 = vpop.f32.mrb[33].mxu0  ;;  %v1939_v19 = vadd.f32 %v1938_v36, %v5207_v2  ;;  %2270 = vmatmul.mubr.f32.gmra.mrb[120].mxu1 %v6250_v61  ;;  %v6266_v38 = vld [vmem:[#allocation43_spill] sm:$0xff]  ;;  %v6267_v36 = vld [vmem:[#allocation46_spill] sm:$0xff] }
 0x212   : > { %2947 = vst [vmem:[%s5214_s14 + $0x780] sm:$0xff] %v1937_v20  ;;  %v1795_v45 = vadd.f32 %v1794_v35, %v5207_v2  ;;  %2629 = vmatmul.mubr.f32.gmra.mrb[122].mxu0 %v6250_v61  ;;  %3153 = vmatprep.mubr.msk.f32.mxu1 %vm277_vm0, %v6251_v62 }
 0x213   : > { %2803 = vst [vmem:[%s5214_s14 + $0x300] sm:$0xff] %v1793_v11  ;;  %2948 = vst [vmem:[%s5214_s14 + $0x788] sm:$0xff] %v1939_v19  ;;  %3202 = vmatprep.mubr.msk.f32.mxu0 %vm277_vm0, %v6251_v62  ;;  %v6268_v11 = vld [vmem:[#allocation47_spill] sm:$0xff] }
 0x214   : > { %2804 = vst [vmem:[%s5214_s14 + $0x308] sm:$0xff] %v1795_v45 }
 0x215   : > { %2276 = vmatmul.mubr.f32.gmra.mrb[122].mxu1 %v6252_v6 }
 0x216   : > { %2635 = vmatmul.mubr.f32.gmra.mrb[124].mxu0 %v6252_v6  ;;  %3154 = vmatprep.mubr.msk.f32.mxu1 %vm277_vm0, %v6253_v12 }
 0x217   : > { %3203 = vmatprep.mubr.msk.f32.mxu0 %vm277_vm0, %v6253_v12  ;;  %v1942_v0 = vpop.f32.mrb[32].mxu1 }
 0x218   : > { %v1798_v42 = vpop.f32.mrb[34].mxu0  ;;  %v1943_v52 = vadd.f32 %v1942_v0, %v5201_v43  ;;  %v1944_v9 = vpop.f32.mrb[33].mxu1 }
 0x219   : > { %v1799_v44 = vadd.f32 %v1798_v42, %v5201_v43  ;;  %v1800_v53 = vpop.f32.mrb[35].mxu0  ;;  %v1945_v21 = vadd.f32 %v1944_v9, %v5207_v2  ;;  %2282 = vmatmul.mubr.f32.gmra.mrb[124].mxu1 %v6254_v29 }
 0x21a   : > { %2953 = vst [vmem:[%s5214_s14 + $0x7b0] sm:$0xff] %v1943_v52  ;;  %v1801_v57 = vadd.f32 %v1800_v53, %v5207_v2  ;;  %2641 = vmatmul.mubr.f32.gmra.mrb[126].mxu0 %v6254_v29  ;;  %3155 = vmatprep.mubr.msk.f32.mxu1 %vm277_vm0, %v6255_v22 }
 0x21b   : > { %2809 = vst [vmem:[%s5214_s14 + $0x330] sm:$0xff] %v1799_v44  ;;  %2954 = vst [vmem:[%s5214_s14 + $0x7b8] sm:$0xff] %v1945_v21  ;;  %3204 = vmatprep.mubr.msk.f32.mxu0 %vm277_vm0, %v6255_v22 }
 0x21c   : > { %2810 = vst [vmem:[%s5214_s14 + $0x338] sm:$0xff] %v1801_v57 }
 0x21d   : > { %2288 = vmatmul.mubr.f32.gmra.mrb[126].mxu1 %v6256_v31 }
 0x21e   : > { %2647 = vmatmul.mubr.f32.gmra.mrb[128].mxu0 %v6256_v31  ;;  %3156 = vmatprep.mubr.msk.f32.mxu1 %vm277_vm0, %v6257_v39 }
 0x21f   : > { %3205 = vmatprep.mubr.msk.f32.mxu0 %vm277_vm0, %v6257_v39  ;;  %v1948_v28 = vpop.f32.mrb[34].mxu1  ;;  %v1463_v39 = vsub.s32 2, %v5178_v41 }
 0x220   : > { %v1804_v30 = vpop.f32.mrb[36].mxu0  ;;  %v1949_v10 = vadd.f32 %v1948_v28, %v5201_v43  ;;  %v1950_v15 = vpop.f32.mrb[35].mxu1  ;;  %v1471_v28 = vsub.s32 4, %v5178_v41 }
 0x221   : > { %v1805_v40 = vadd.f32 %v1804_v30, %v5201_v43  ;;  %v1806_v13 = vpop.f32.mrb[37].mxu0  ;;  %v1951_v50 = vadd.f32 %v1950_v15, %v5207_v2  ;;  %2294 = vmatmul.mubr.f32.gmra.mrb[128].mxu1 %v6258_v7  ;;  %v1467_v30 = vsub.s32 3, %v5178_v41 }
 0x222   : > { %2959 = vst [vmem:[%s5214_s14 + $0x7e0] sm:$0xff] %v1949_v10  ;;  %v1807_v49 = vadd.f32 %v1806_v13, %v5207_v2  ;;  %2653 = vmatmul.mubr.f32.gmra.mrb[130].mxu0 %v6258_v7  ;;  %3157 = vmatprep.mubr.msk.f32.mxu1 %vm277_vm0, %v6259_v60  ;;  %v1475_v10 = vsub.s32 5, %v5178_v41  ;;  %v5664_v7 = vrot.slane %v5193_v24, %v1463_v39 }
 0x223   : > { %2815 = vst [vmem:[%s5214_s14 + $0x360] sm:$0xff] %v1805_v40  ;;  %2960 = vst [vmem:[%s5214_s14 + $0x7e8] sm:$0xff] %v1951_v50  ;;  %3206 = vmatprep.mubr.msk.f32.mxu0 %vm277_vm0, %v6259_v60  ;;  %v5672_v41 = vrot.slane %v5193_v24, %v1467_v30 }
 0x224   : > { %2816 = vst [vmem:[%s5214_s14 + $0x368] sm:$0xff] %v1807_v49 }
 0x225   : > { %2300 = vmatmul.mubr.f32.gmra.mrb[130].mxu1 %v6260_v55 }
 0x226   : > { %2659 = vmatmul.mubr.f32.gmra.mrb[132].mxu0 %v6260_v55  ;;  %3158 = vmatprep.mubr.msk.f32.mxu1 %vm277_vm0, %v6261_v54 }
 0x227   : > { %3207 = vmatprep.mubr.msk.f32.mxu0 %vm277_vm0, %v6261_v54  ;;  %v1954_v37 = vpop.f32.mrb[36].mxu1  ;;  %v5669_v54 = vrot.slane %v5193_v24, %v1471_v28 }
 0x228   : > { %v1810_v46 = vpop.f32.mrb[38].mxu0  ;;  %v1955_v1 = vadd.f32 %v1954_v37, %v5201_v43  ;;  %v1956_v4 = vpop.f32.mrb[37].mxu1 }
 0x229   : > { %v1811_v8 = vadd.f32 %v1810_v46, %v5201_v43  ;;  %v1812_v59 = vpop.f32.mrb[39].mxu0  ;;  %v1957_v32 = vadd.f32 %v1956_v4, %v5207_v2  ;;  %2306 = vmatmul.mubr.f32.gmra.mrb[132].mxu1 %v6262_v18  ;;  %v5677_v46 = vrot.slane %v5193_v24, %v1475_v10 }
 0x22a   : > { %2965 = vst [vmem:[%s5214_s14 + $0x810] sm:$0xff] %v1955_v1  ;;  %v1813_v48 = vadd.f32 %v1812_v59, %v5207_v2  ;;  %2665 = vmatmul.mubr.f32.gmra.mrb[134].mxu0 %v6262_v18  ;;  %3159 = vmatprep.mubr.msk.f32.mxu1 %vm277_vm0, %v6263_v17 }
 0x22b   : > { %2821 = vst [vmem:[%s5214_s14 + $0x390] sm:$0xff] %v1811_v8  ;;  %2966 = vst [vmem:[%s5214_s14 + $0x818] sm:$0xff] %v1957_v32  ;;  %3208 = vmatprep.mubr.msk.f32.mxu0 %vm277_vm0, %v6263_v17 }
 0x22c   : > { %2822 = vst [vmem:[%s5214_s14 + $0x398] sm:$0xff] %v1813_v48 }
 0x22d   : > { %2312 = vmatmul.mubr.f32.gmra.mrb[134].mxu1 %v6264_v33 }
 0x22e   : > { %2671 = vmatmul.mubr.f32.gmra.mrb[136].mxu0 %v6264_v33  ;;  %3160 = vmatprep.mubr.msk.f32.mxu1 %vm277_vm0, %v6265_v25 }
 0x22f   : > { %3209 = vmatprep.mubr.msk.f32.mxu0 %vm277_vm0, %v6265_v25  ;;  %v1960_v14 = vpop.f32.mrb[38].mxu1 }
 0x230   : > { %v1816_v26 = vpop.f32.mrb[40].mxu0  ;;  %v1961_v63 = vadd.f32 %v1960_v14, %v5201_v43  ;;  %v1962_v5 = vpop.f32.mrb[39].mxu1 }
 0x231   : > { %v1817_v58 = vadd.f32 %v1816_v26, %v5201_v43  ;;  %v1818_v56 = vpop.f32.mrb[41].mxu0  ;;  %v1963_v34 = vadd.f32 %v1962_v5, %v5207_v2  ;;  %2318 = vmatmul.mubr.f32.gmra.mrb[136].mxu1 %v6266_v38 }
 0x232   : > { %2971 = vst [vmem:[%s5214_s14 + $0x840] sm:$0xff] %v1961_v63  ;;  %v1819_v20 = vadd.f32 %v1818_v56, %v5207_v2  ;;  %2677 = vmatmul.mubr.f32.gmra.mrb[138].mxu0 %v6266_v38  ;;  %3161 = vmatprep.mubr.msk.f32.mxu1 %vm277_vm0, %v6267_v36 }
 0x233   : > { %2827 = vst [vmem:[%s5214_s14 + $0x3c0] sm:$0xff] %v1817_v58  ;;  %2972 = vst [vmem:[%s5214_s14 + $0x848] sm:$0xff] %v1963_v34  ;;  %3210 = vmatprep.mubr.msk.f32.mxu0 %vm277_vm0, %v6267_v36 }
 0x234   : > { %2828 = vst [vmem:[%s5214_s14 + $0x3c8] sm:$0xff] %v1819_v20 }
 0x235   : > { %2324 = vmatmul.mubr.f32.gmra.mrb[138].mxu1 %v6268_v11 }
 0x236   : > { %2683 = vmatmul.mubr.f32.gmra.mrb[140].mxu0 %v6268_v11  ;;  %3162 = vmatprep.mubr.msk.f32.mxu1 %vm277_vm0, %v5097_v3 }
 0x237   : > { %3211 = vmatprep.mubr.msk.f32.mxu0 %vm277_vm0, %v5097_v3  ;;  %v1966_v35 = vpop.f32.mrb[40].mxu1 }
 0x238   : > { %v1822_v19 = vpop.f32.mrb[42].mxu0  ;;  %v1967_v61 = vadd.f32 %v1966_v35, %v5201_v43  ;;  %v1968_v45 = vpop.f32.mrb[41].mxu1 }
 0x239   : > { %v1823_v62 = vadd.f32 %v1822_v19, %v5201_v43  ;;  %v1824_v6 = vpop.f32.mrb[43].mxu0  ;;  %v1969_v12 = vadd.f32 %v1968_v45, %v5207_v2  ;;  %2330 = vmatmul.mubr.f32.gmra.mrb[140].mxu1 %v5099_v23 }
 0x23a   : > { %2977 = vst [vmem:[%s5214_s14 + $0x870] sm:$0xff] %v1967_v61  ;;  %v1825_v0 = vadd.f32 %v1824_v6, %v5207_v2  ;;  %2689 = vmatmul.mubr.f32.gmra.mrb[142].mxu0 %v5099_v23  ;;  %3163 = vmatprep.mubr.msk.f32.mxu1 %vm277_vm0, %v5119_v51 }
 0x23b   : > { %2833 = vst [vmem:[%s5214_s14 + $0x3f0] sm:$0xff] %v1823_v62  ;;  %2978 = vst [vmem:[%s5214_s14 + $0x878] sm:$0xff] %v1969_v12  ;;  %3212 = vmatprep.mubr.msk.f32.mxu0 %vm277_vm0, %v5119_v51 }
 0x23c   : > { %2834 = vst [vmem:[%s5214_s14 + $0x3f8] sm:$0xff] %v1825_v0 }
 0x23d   : > { %2336 = vmatmul.mubr.f32.gmra.mrb[142].mxu1 %v5121_v47 }
 0x23e   : > { %2695 = vmatmul.mubr.f32.gmra.mrb[144].mxu0 %v5121_v47  ;;  %3164 = vmatprep.mubr.msk.f32.mxu1 %vm277_vm0, %v5141_v16 }
 0x23f   : > { %3213 = vmatprep.mubr.msk.f32.mxu0 %vm277_vm0, %v5141_v16  ;;  %v1972_v3 = vpop.f32.mrb[42].mxu1 }
 0x240   : > { %v1828_v23 = vpop.f32.mrb[44].mxu0  ;;  %v1973_v42 = vadd.f32 %v1972_v3, %v5201_v43  ;;  %v1974_v52 = vpop.f32.mrb[43].mxu1 }
 0x241   : > { %2342 = vmatmul.mubr.f32.gmra.mrb[144].mxu1 %v5143_v27  ;;  %v1829_v51 = vadd.f32 %v1828_v23, %v5201_v43  ;;  %v1830_v9 = vpop.f32.mrb[45].mxu0  ;;  %v1975_v47 = vadd.f32 %v1974_v52, %v5207_v2 }
 0x242   : > { %2701 = vmatmul.mubr.f32.gmra.mrb[146].mxu0 %v5143_v27  ;;  %2983 = vst [vmem:[%s5214_s14 + $0x8a0] sm:$0xff] %v1973_v42  ;;  %v1831_v16 = vadd.f32 %v1830_v9, %v5207_v2 }
 0x243   : > { %2839 = vst [vmem:[%s5214_s14 + $0x420] sm:$0xff] %v1829_v51  ;;  %2984 = vst [vmem:[%s5214_s14 + $0x8a8] sm:$0xff] %v1975_v47 }
 0x244   : > { %2840 = vst [vmem:[%s5214_s14 + $0x428] sm:$0xff] %v1831_v16 }
 0x248   : > { %v1978_v44 = vpop.f32.mrb[44].mxu1 }
 0x249   : > { %v1834_v53 = vpop.f32.mrb[46].mxu0  ;;  %v1979_v21 = vadd.f32 %v1978_v44, %v5201_v43  ;;  %v1980_v29 = vpop.f32.mrb[45].mxu1 }
 0x24a   : > { %v1835_v57 = vadd.f32 %v1834_v53, %v5201_v43  ;;  %v1836_v22 = vpop.f32.mrb[47].mxu0  ;;  %v1981_v31 = vadd.f32 %v1980_v29, %v5207_v2 }
 0x24b   : > { %2989 = vst [vmem:[%s5214_s14 + $0x8d0] sm:$0xff] %v1979_v21  ;;  %v1837_v27 = vadd.f32 %v1836_v22, %v5207_v2 }
 0x24c   : > { %2845 = vst [vmem:[%s5214_s14 + $0x450] sm:$0xff] %v1835_v57  ;;  %2990 = vst [vmem:[%s5214_s14 + $0x8d8] sm:$0xff] %v1981_v31 }
 0x24d   : > { %2846 = vst [vmem:[%s5214_s14 + $0x458] sm:$0xff] %v1837_v27 }
 0x250   : > { %v1984_v15 = vpop.f32.mrb[46].mxu1 }
 0x251   : > { %v1840_v40 = vpop.f32.mrb[48].mxu0  ;;  %v1985_v13 = vadd.f32 %v1984_v15, %v5201_v43  ;;  %v1986_v50 = vpop.f32.mrb[47].mxu1 }
 0x252   : > { %v1841_v49 = vadd.f32 %v1840_v40, %v5201_v43  ;;  %v1842_v60 = vpop.f32.mrb[49].mxu0  ;;  %v1987_v55 = vadd.f32 %v1986_v50, %v5207_v2 }
 0x253   : > { %2995 = vst [vmem:[%s5214_s14 + $0x900] sm:$0xff] %v1985_v13  ;;  %v1843_v37 = vadd.f32 %v1842_v60, %v5207_v2 }
 0x254   : > { %2851 = vst [vmem:[%s5214_s14 + $0x480] sm:$0xff] %v1841_v49  ;;  %2996 = vst [vmem:[%s5214_s14 + $0x908] sm:$0xff] %v1987_v55  ;;  %v2055_v43 = vpop.f32.mrb[48].mxu1 }
 0x255   : > { %2852 = vst [vmem:[%s5214_s14 + $0x488] sm:$0xff] %v1843_v37  ;;  %v2056_v1 = vadd.f32 %v2055_v43, %v5664_v7  ;;  %v2414_v4 = vpop.f32.mrb[50].mxu0  ;;  %v2057_v8 = vpop.f32.mrb[49].mxu1 }
 0x256   : > { %v2415_v59 = vadd.f32 %v2414_v4, %v5669_v54  ;;  %v2058_v32 = vadd.f32 %v2057_v8, %v5672_v41  ;;  %v2416_v18 = vpop.f32.mrb[51].mxu0 }
 0x257   : > { %2709 = vst [vmem:[%s5214_s14 + $0x10] sm:$0xff] %v2056_v1  ;;  %v2417_v24 = vadd.f32 %v2416_v18, %v5677_v46 }
 0x258   : > { %2711 = vst [vmem:[%s5214_s14 + $0x20] sm:$0xff] %v2415_v59  ;;  %2710 = vst [vmem:[%s5214_s14 + $0x18] sm:$0xff] %v2058_v32  ;;  %v2061_v2 = vpop.f32.mrb[50].mxu1 }
 0x259   : > { %2712 = vst [vmem:[%s5214_s14 + $0x28] sm:$0xff] %v2417_v24  ;;  %v2062_v48 = vadd.f32 %v2061_v2, %v5664_v7  ;;  %v2420_v17 = vpop.f32.mrb[52].mxu0  ;;  %v2063_v33 = vpop.f32.mrb[51].mxu1 }
 0x25a   : > { %v2421_v25 = vadd.f32 %v2420_v17, %v5669_v54  ;;  %v2064_v14 = vadd.f32 %v2063_v33, %v5672_v41  ;;  %v2422_v26 = vpop.f32.mrb[53].mxu0 }
 0x25b   : > { %2715 = vst [vmem:[%s5214_s14 + $0x40] sm:$0xff] %v2062_v48  ;;  %v2423_v63 = vadd.f32 %v2422_v26, %v5677_v46 }
 0x25c   : > { %2717 = vst [vmem:[%s5214_s14 + $0x50] sm:$0xff] %v2421_v25  ;;  %2716 = vst [vmem:[%s5214_s14 + $0x48] sm:$0xff] %v2064_v14  ;;  %v2067_v5 = vpop.f32.mrb[52].mxu1 }
 0x25d   : > { %2718 = vst [vmem:[%s5214_s14 + $0x58] sm:$0xff] %v2423_v63  ;;  %v2068_v58 = vadd.f32 %v2067_v5, %v5664_v7  ;;  %v2426_v56 = vpop.f32.mrb[54].mxu0  ;;  %v2069_v34 = vpop.f32.mrb[53].mxu1 }
 0x25e   : > { %v2427_v38 = vadd.f32 %v2426_v56, %v5669_v54  ;;  %v2070_v20 = vadd.f32 %v2069_v34, %v5672_v41  ;;  %v2428_v36 = vpop.f32.mrb[55].mxu0 }
 0x25f   : > { %2721 = vst [vmem:[%s5214_s14 + $0x70] sm:$0xff] %v2068_v58  ;;  %v2429_v11 = vadd.f32 %v2428_v36, %v5677_v46 }
 0x260   : > { %2723 = vst [vmem:[%s5214_s14 + $0x80] sm:$0xff] %v2427_v38  ;;  %2722 = vst [vmem:[%s5214_s14 + $0x78] sm:$0xff] %v2070_v20  ;;  %v2073_v35 = vpop.f32.mrb[54].mxu1 }
 0x261   : > { %2724 = vst [vmem:[%s5214_s14 + $0x88] sm:$0xff] %v2429_v11  ;;  %v2074_v19 = vadd.f32 %v2073_v35, %v5664_v7  ;;  %v2432_v61 = vpop.f32.mrb[56].mxu0  ;;  %v2075_v45 = vpop.f32.mrb[55].mxu1 }
 0x262   : > { %v2433_v62 = vadd.f32 %v2432_v61, %v5669_v54  ;;  %v2076_v6 = vadd.f32 %v2075_v45, %v5672_v41  ;;  %v2434_v12 = vpop.f32.mrb[57].mxu0 }
 0x263   : > { %2727 = vst [vmem:[%s5214_s14 + $0xa0] sm:$0xff] %v2074_v19  ;;  %v2435_v0 = vadd.f32 %v2434_v12, %v5677_v46 }
 0x264   : > { %2729 = vst [vmem:[%s5214_s14 + $0xb0] sm:$0xff] %v2433_v62  ;;  %2728 = vst [vmem:[%s5214_s14 + $0xa8] sm:$0xff] %v2076_v6  ;;  %v2079_v3 = vpop.f32.mrb[56].mxu1 }
 0x265   : > { %2730 = vst [vmem:[%s5214_s14 + $0xb8] sm:$0xff] %v2435_v0  ;;  %v2080_v23 = vadd.f32 %v2079_v3, %v5664_v7  ;;  %v2438_v42 = vpop.f32.mrb[58].mxu0  ;;  %v2081_v52 = vpop.f32.mrb[57].mxu1 }
 0x266   : > { %v2439_v51 = vadd.f32 %v2438_v42, %v5669_v54  ;;  %v2082_v9 = vadd.f32 %v2081_v52, %v5672_v41  ;;  %v2440_v47 = vpop.f32.mrb[59].mxu0 }
 0x267   : > { %2733 = vst [vmem:[%s5214_s14 + $0xd0] sm:$0xff] %v2080_v23  ;;  %v2441_v16 = vadd.f32 %v2440_v47, %v5677_v46 }
 0x268   : > { %2735 = vst [vmem:[%s5214_s14 + $0xe0] sm:$0xff] %v2439_v51  ;;  %2734 = vst [vmem:[%s5214_s14 + $0xd8] sm:$0xff] %v2082_v9  ;;  %v2085_v44 = vpop.f32.mrb[58].mxu1 }
 0x269   : > { %2736 = vst [vmem:[%s5214_s14 + $0xe8] sm:$0xff] %v2441_v16  ;;  %v2086_v53 = vadd.f32 %v2085_v44, %v5664_v7  ;;  %v2444_v21 = vpop.f32.mrb[60].mxu0  ;;  %v2087_v29 = vpop.f32.mrb[59].mxu1 }
 0x26a   : > { %v2445_v57 = vadd.f32 %v2444_v21, %v5669_v54  ;;  %v2088_v22 = vadd.f32 %v2087_v29, %v5672_v41  ;;  %v2446_v31 = vpop.f32.mrb[61].mxu0 }
 0x26b   : > { %2739 = vst [vmem:[%s5214_s14 + $0x100] sm:$0xff] %v2086_v53  ;;  %v2447_v27 = vadd.f32 %v2446_v31, %v5677_v46 }
 0x26c   : > { %2741 = vst [vmem:[%s5214_s14 + $0x110] sm:$0xff] %v2445_v57  ;;  %2740 = vst [vmem:[%s5214_s14 + $0x108] sm:$0xff] %v2088_v22  ;;  %v2091_v39 = vpop.f32.mrb[60].mxu1 }
 0x26d   : > { %2742 = vst [vmem:[%s5214_s14 + $0x118] sm:$0xff] %v2447_v27  ;;  %v2092_v28 = vadd.f32 %v2091_v39, %v5664_v7  ;;  %v2450_v30 = vpop.f32.mrb[62].mxu0  ;;  %v2093_v10 = vpop.f32.mrb[61].mxu1 }
 0x26e   : > { %v2451_v15 = vadd.f32 %v2450_v30, %v5669_v54  ;;  %v2094_v40 = vadd.f32 %v2093_v10, %v5672_v41  ;;  %v2452_v13 = vpop.f32.mrb[63].mxu0 }
 0x26f   : > { %2745 = vst [vmem:[%s5214_s14 + $0x130] sm:$0xff] %v2092_v28  ;;  %v2453_v50 = vadd.f32 %v2452_v13, %v5677_v46 }
 0x270   : > { %2747 = vst [vmem:[%s5214_s14 + $0x140] sm:$0xff] %v2451_v15  ;;  %2746 = vst [vmem:[%s5214_s14 + $0x138] sm:$0xff] %v2094_v40  ;;  %v2097_v49 = vpop.f32.mrb[62].mxu1 }
 0x271   : > { %2748 = vst [vmem:[%s5214_s14 + $0x148] sm:$0xff] %v2453_v50  ;;  %v2098_v60 = vadd.f32 %v2097_v49, %v5664_v7  ;;  %v2456_v55 = vpop.f32.mrb[64].mxu0  ;;  %v2099_v37 = vpop.f32.mrb[63].mxu1 }
 0x272   : > { %v2457_v43 = vadd.f32 %v2456_v55, %v5669_v54  ;;  %v2100_v1 = vadd.f32 %v2099_v37, %v5672_v41  ;;  %v2458_v4 = vpop.f32.mrb[65].mxu0 }
 0x273   : > { %2751 = vst [vmem:[%s5214_s14 + $0x160] sm:$0xff] %v2098_v60  ;;  %v2459_v8 = vadd.f32 %v2458_v4, %v5677_v46 }
 0x274   : > { %2753 = vst [vmem:[%s5214_s14 + $0x170] sm:$0xff] %v2457_v43  ;;  %2752 = vst [vmem:[%s5214_s14 + $0x168] sm:$0xff] %v2100_v1  ;;  %v2103_v59 = vpop.f32.mrb[64].mxu1 }
 0x275   : > { %2754 = vst [vmem:[%s5214_s14 + $0x178] sm:$0xff] %v2459_v8  ;;  %v2104_v32 = vadd.f32 %v2103_v59, %v5664_v7  ;;  %v2462_v18 = vpop.f32.mrb[66].mxu0  ;;  %v2105_v24 = vpop.f32.mrb[65].mxu1 }
 0x276   : > { %v2463_v2 = vadd.f32 %v2462_v18, %v5669_v54  ;;  %v2106_v48 = vadd.f32 %v2105_v24, %v5672_v41  ;;  %v2464_v17 = vpop.f32.mrb[67].mxu0 }
 0x277   : > { %2757 = vst [vmem:[%s5214_s14 + $0x190] sm:$0xff] %v2104_v32  ;;  %v2465_v33 = vadd.f32 %v2464_v17, %v5677_v46 }
 0x278   : > { %2759 = vst [vmem:[%s5214_s14 + $0x1a0] sm:$0xff] %v2463_v2  ;;  %2758 = vst [vmem:[%s5214_s14 + $0x198] sm:$0xff] %v2106_v48  ;;  %v2109_v25 = vpop.f32.mrb[66].mxu1 }
 0x279   : > { %2760 = vst [vmem:[%s5214_s14 + $0x1a8] sm:$0xff] %v2465_v33  ;;  %v2110_v14 = vadd.f32 %v2109_v25, %v5664_v7  ;;  %v2468_v26 = vpop.f32.mrb[68].mxu0  ;;  %v2111_v63 = vpop.f32.mrb[67].mxu1 }
 0x27a   : > { %v2469_v5 = vadd.f32 %v2468_v26, %v5669_v54  ;;  %v2112_v58 = vadd.f32 %v2111_v63, %v5672_v41  ;;  %v2470_v56 = vpop.f32.mrb[69].mxu0 }
 0x27b   : > { %2763 = vst [vmem:[%s5214_s14 + $0x1c0] sm:$0xff] %v2110_v14  ;;  %v2471_v34 = vadd.f32 %v2470_v56, %v5677_v46 }
 0x27c   : > { %2765 = vst [vmem:[%s5214_s14 + $0x1d0] sm:$0xff] %v2469_v5  ;;  %2764 = vst [vmem:[%s5214_s14 + $0x1c8] sm:$0xff] %v2112_v58  ;;  %v2115_v38 = vpop.f32.mrb[68].mxu1 }
 0x27d   : > { %2766 = vst [vmem:[%s5214_s14 + $0x1d8] sm:$0xff] %v2471_v34  ;;  %v2116_v20 = vadd.f32 %v2115_v38, %v5664_v7  ;;  %v2474_v36 = vpop.f32.mrb[70].mxu0  ;;  %v2117_v11 = vpop.f32.mrb[69].mxu1 }
 0x27e   : > { %v2475_v35 = vadd.f32 %v2474_v36, %v5669_v54  ;;  %v2118_v19 = vadd.f32 %v2117_v11, %v5672_v41  ;;  %v2476_v61 = vpop.f32.mrb[71].mxu0 }
 0x27f   : > { %2769 = vst [vmem:[%s5214_s14 + $0x1f0] sm:$0xff] %v2116_v20  ;;  %v2477_v45 = vadd.f32 %v2476_v61, %v5677_v46 }
 0x280   : > { %2771 = vst [vmem:[%s5214_s14 + $0x200] sm:$0xff] %v2475_v35  ;;  %2770 = vst [vmem:[%s5214_s14 + $0x1f8] sm:$0xff] %v2118_v19  ;;  %v2121_v62 = vpop.f32.mrb[70].mxu1 }
 0x281   : > { %2772 = vst [vmem:[%s5214_s14 + $0x208] sm:$0xff] %v2477_v45  ;;  %v2122_v6 = vadd.f32 %v2121_v62, %v5664_v7  ;;  %v2480_v12 = vpop.f32.mrb[72].mxu0  ;;  %v2123_v0 = vpop.f32.mrb[71].mxu1 }
 0x282   : > { %v2481_v3 = vadd.f32 %v2480_v12, %v5669_v54  ;;  %v2124_v23 = vadd.f32 %v2123_v0, %v5672_v41  ;;  %v2482_v42 = vpop.f32.mrb[73].mxu0 }
 0x283   : > { %2775 = vst [vmem:[%s5214_s14 + $0x220] sm:$0xff] %v2122_v6  ;;  %v2483_v52 = vadd.f32 %v2482_v42, %v5677_v46 }
 0x284   : > { %2777 = vst [vmem:[%s5214_s14 + $0x230] sm:$0xff] %v2481_v3  ;;  %2776 = vst [vmem:[%s5214_s14 + $0x228] sm:$0xff] %v2124_v23  ;;  %v2127_v51 = vpop.f32.mrb[72].mxu1 }
 0x285   : > { %2778 = vst [vmem:[%s5214_s14 + $0x238] sm:$0xff] %v2483_v52  ;;  %v2128_v9 = vadd.f32 %v2127_v51, %v5664_v7  ;;  %v2486_v47 = vpop.f32.mrb[74].mxu0  ;;  %v2129_v16 = vpop.f32.mrb[73].mxu1 }
 0x286   : > { %v2487_v44 = vadd.f32 %v2486_v47, %v5669_v54  ;;  %v2130_v53 = vadd.f32 %v2129_v16, %v5672_v41  ;;  %v2488_v21 = vpop.f32.mrb[75].mxu0 }
 0x287   : > { %2781 = vst [vmem:[%s5214_s14 + $0x250] sm:$0xff] %v2128_v9  ;;  %v2489_v29 = vadd.f32 %v2488_v21, %v5677_v46 }
 0x288   : > { %2783 = vst [vmem:[%s5214_s14 + $0x260] sm:$0xff] %v2487_v44  ;;  %2782 = vst [vmem:[%s5214_s14 + $0x258] sm:$0xff] %v2130_v53  ;;  %v2133_v57 = vpop.f32.mrb[74].mxu1 }
 0x289   : > { %2784 = vst [vmem:[%s5214_s14 + $0x268] sm:$0xff] %v2489_v29  ;;  %v2134_v22 = vadd.f32 %v2133_v57, %v5664_v7  ;;  %v2492_v31 = vpop.f32.mrb[76].mxu0  ;;  %v2135_v27 = vpop.f32.mrb[75].mxu1 }
 0x28a   : > { %v2493_v39 = vadd.f32 %v2492_v31, %v5669_v54  ;;  %v2136_v28 = vadd.f32 %v2135_v27, %v5672_v41  ;;  %v2494_v30 = vpop.f32.mrb[77].mxu0 }
 0x28b   : > { %2787 = vst [vmem:[%s5214_s14 + $0x280] sm:$0xff] %v2134_v22  ;;  %v2495_v10 = vadd.f32 %v2494_v30, %v5677_v46 }
 0x28c   : > { %2789 = vst [vmem:[%s5214_s14 + $0x290] sm:$0xff] %v2493_v39  ;;  %2788 = vst [vmem:[%s5214_s14 + $0x288] sm:$0xff] %v2136_v28  ;;  %v2139_v15 = vpop.f32.mrb[76].mxu1 }
 0x28d   : > { %2790 = vst [vmem:[%s5214_s14 + $0x298] sm:$0xff] %v2495_v10  ;;  %v2140_v40 = vadd.f32 %v2139_v15, %v5664_v7  ;;  %v2498_v13 = vpop.f32.mrb[78].mxu0  ;;  %v2141_v50 = vpop.f32.mrb[77].mxu1 }
 0x28e   : > { %v2499_v49 = vadd.f32 %v2498_v13, %v5669_v54  ;;  %v2142_v60 = vadd.f32 %v2141_v50, %v5672_v41  ;;  %v2500_v55 = vpop.f32.mrb[79].mxu0 }
 0x28f   : > { %2793 = vst [vmem:[%s5214_s14 + $0x2b0] sm:$0xff] %v2140_v40  ;;  %v2501_v37 = vadd.f32 %v2500_v55, %v5677_v46 }
 0x290   : > { %2795 = vst [vmem:[%s5214_s14 + $0x2c0] sm:$0xff] %v2499_v49  ;;  %2794 = vst [vmem:[%s5214_s14 + $0x2b8] sm:$0xff] %v2142_v60  ;;  %v2145_v43 = vpop.f32.mrb[78].mxu1 }
 0x291   : > { %2796 = vst [vmem:[%s5214_s14 + $0x2c8] sm:$0xff] %v2501_v37  ;;  %v2146_v1 = vadd.f32 %v2145_v43, %v5664_v7  ;;  %v2504_v4 = vpop.f32.mrb[80].mxu0  ;;  %v2147_v8 = vpop.f32.mrb[79].mxu1 }
 0x292   : > { %v2505_v59 = vadd.f32 %v2504_v4, %v5669_v54  ;;  %v2148_v32 = vadd.f32 %v2147_v8, %v5672_v41  ;;  %v2506_v18 = vpop.f32.mrb[81].mxu0 }
 0x293   : > { %2799 = vst [vmem:[%s5214_s14 + $0x2e0] sm:$0xff] %v2146_v1  ;;  %v2507_v24 = vadd.f32 %v2506_v18, %v5677_v46 }
 0x294   : > { %2801 = vst [vmem:[%s5214_s14 + $0x2f0] sm:$0xff] %v2505_v59  ;;  %2800 = vst [vmem:[%s5214_s14 + $0x2e8] sm:$0xff] %v2148_v32  ;;  %v2151_v2 = vpop.f32.mrb[80].mxu1 }
 0x295   : > { %2802 = vst [vmem:[%s5214_s14 + $0x2f8] sm:$0xff] %v2507_v24  ;;  %v2152_v48 = vadd.f32 %v2151_v2, %v5664_v7  ;;  %v2510_v17 = vpop.f32.mrb[82].mxu0  ;;  %v2153_v33 = vpop.f32.mrb[81].mxu1 }
 0x296   : > { %v2511_v25 = vadd.f32 %v2510_v17, %v5669_v54  ;;  %v2154_v14 = vadd.f32 %v2153_v33, %v5672_v41  ;;  %v2512_v26 = vpop.f32.mrb[83].mxu0 }
 0x297   : > { %2805 = vst [vmem:[%s5214_s14 + $0x310] sm:$0xff] %v2152_v48  ;;  %v2513_v63 = vadd.f32 %v2512_v26, %v5677_v46 }
 0x298   : > { %2807 = vst [vmem:[%s5214_s14 + $0x320] sm:$0xff] %v2511_v25  ;;  %2806 = vst [vmem:[%s5214_s14 + $0x318] sm:$0xff] %v2154_v14  ;;  %v2157_v5 = vpop.f32.mrb[82].mxu1 }
 0x299   : > { %2808 = vst [vmem:[%s5214_s14 + $0x328] sm:$0xff] %v2513_v63  ;;  %v2158_v58 = vadd.f32 %v2157_v5, %v5664_v7  ;;  %v2516_v56 = vpop.f32.mrb[84].mxu0  ;;  %v2159_v34 = vpop.f32.mrb[83].mxu1 }
 0x29a   : > { %v2517_v38 = vadd.f32 %v2516_v56, %v5669_v54  ;;  %v2160_v20 = vadd.f32 %v2159_v34, %v5672_v41  ;;  %v2518_v36 = vpop.f32.mrb[85].mxu0 }
 0x29b   : > { %2811 = vst [vmem:[%s5214_s14 + $0x340] sm:$0xff] %v2158_v58  ;;  %v2519_v11 = vadd.f32 %v2518_v36, %v5677_v46 }
 0x29c   : > { %2813 = vst [vmem:[%s5214_s14 + $0x350] sm:$0xff] %v2517_v38  ;;  %2812 = vst [vmem:[%s5214_s14 + $0x348] sm:$0xff] %v2160_v20  ;;  %v2163_v35 = vpop.f32.mrb[84].mxu1 }
 0x29d   : > { %2814 = vst [vmem:[%s5214_s14 + $0x358] sm:$0xff] %v2519_v11  ;;  %v2164_v19 = vadd.f32 %v2163_v35, %v5664_v7  ;;  %v2522_v61 = vpop.f32.mrb[86].mxu0  ;;  %v2165_v45 = vpop.f32.mrb[85].mxu1 }
 0x29e   : > { %v2523_v62 = vadd.f32 %v2522_v61, %v5669_v54  ;;  %v2166_v6 = vadd.f32 %v2165_v45, %v5672_v41  ;;  %v2524_v12 = vpop.f32.mrb[87].mxu0 }
 0x29f   : > { %2817 = vst [vmem:[%s5214_s14 + $0x370] sm:$0xff] %v2164_v19  ;;  %v2525_v0 = vadd.f32 %v2524_v12, %v5677_v46 }
 0x2a0   : > { %2819 = vst [vmem:[%s5214_s14 + $0x380] sm:$0xff] %v2523_v62  ;;  %2818 = vst [vmem:[%s5214_s14 + $0x378] sm:$0xff] %v2166_v6  ;;  %v2169_v3 = vpop.f32.mrb[86].mxu1 }
 0x2a1   : > { %2820 = vst [vmem:[%s5214_s14 + $0x388] sm:$0xff] %v2525_v0  ;;  %v2170_v23 = vadd.f32 %v2169_v3, %v5664_v7  ;;  %v2528_v42 = vpop.f32.mrb[88].mxu0  ;;  %v2171_v52 = vpop.f32.mrb[87].mxu1 }
 0x2a2   : > { %v2529_v51 = vadd.f32 %v2528_v42, %v5669_v54  ;;  %v2172_v9 = vadd.f32 %v2171_v52, %v5672_v41  ;;  %v2530_v47 = vpop.f32.mrb[89].mxu0 }
 0x2a3   : > { %2823 = vst [vmem:[%s5214_s14 + $0x3a0] sm:$0xff] %v2170_v23  ;;  %v2531_v16 = vadd.f32 %v2530_v47, %v5677_v46 }
 0x2a4   : > { %2825 = vst [vmem:[%s5214_s14 + $0x3b0] sm:$0xff] %v2529_v51  ;;  %2824 = vst [vmem:[%s5214_s14 + $0x3a8] sm:$0xff] %v2172_v9  ;;  %v2175_v44 = vpop.f32.mrb[88].mxu1 }
 0x2a5   : > { %2826 = vst [vmem:[%s5214_s14 + $0x3b8] sm:$0xff] %v2531_v16  ;;  %v2176_v53 = vadd.f32 %v2175_v44, %v5664_v7  ;;  %v2534_v21 = vpop.f32.mrb[90].mxu0  ;;  %v2177_v29 = vpop.f32.mrb[89].mxu1 }
 0x2a6   : > { %v2535_v57 = vadd.f32 %v2534_v21, %v5669_v54  ;;  %v2178_v22 = vadd.f32 %v2177_v29, %v5672_v41  ;;  %v2536_v31 = vpop.f32.mrb[91].mxu0 }
 0x2a7   : > { %2829 = vst [vmem:[%s5214_s14 + $0x3d0] sm:$0xff] %v2176_v53  ;;  %v2537_v27 = vadd.f32 %v2536_v31, %v5677_v46 }
 0x2a8   : > { %2831 = vst [vmem:[%s5214_s14 + $0x3e0] sm:$0xff] %v2535_v57  ;;  %2830 = vst [vmem:[%s5214_s14 + $0x3d8] sm:$0xff] %v2178_v22  ;;  %v2181_v39 = vpop.f32.mrb[90].mxu1 }
 0x2a9   : > { %2832 = vst [vmem:[%s5214_s14 + $0x3e8] sm:$0xff] %v2537_v27  ;;  %v2182_v28 = vadd.f32 %v2181_v39, %v5664_v7  ;;  %v2540_v30 = vpop.f32.mrb[92].mxu0  ;;  %v2183_v10 = vpop.f32.mrb[91].mxu1 }
 0x2aa   : > { %v2541_v15 = vadd.f32 %v2540_v30, %v5669_v54  ;;  %v2184_v40 = vadd.f32 %v2183_v10, %v5672_v41  ;;  %v2542_v13 = vpop.f32.mrb[93].mxu0 }
 0x2ab   : > { %2835 = vst [vmem:[%s5214_s14 + $0x400] sm:$0xff] %v2182_v28  ;;  %v2543_v50 = vadd.f32 %v2542_v13, %v5677_v46 }
 0x2ac   : > { %2837 = vst [vmem:[%s5214_s14 + $0x410] sm:$0xff] %v2541_v15  ;;  %2836 = vst [vmem:[%s5214_s14 + $0x408] sm:$0xff] %v2184_v40  ;;  %v2187_v49 = vpop.f32.mrb[92].mxu1 }
 0x2ad   : > { %2838 = vst [vmem:[%s5214_s14 + $0x418] sm:$0xff] %v2543_v50  ;;  %v2188_v60 = vadd.f32 %v2187_v49, %v5664_v7  ;;  %v2546_v55 = vpop.f32.mrb[94].mxu0  ;;  %v2189_v37 = vpop.f32.mrb[93].mxu1 }
 0x2ae   : > { %v2547_v43 = vadd.f32 %v2546_v55, %v5669_v54  ;;  %v2190_v1 = vadd.f32 %v2189_v37, %v5672_v41  ;;  %v2548_v4 = vpop.f32.mrb[95].mxu0 }
 0x2af   : > { %2841 = vst [vmem:[%s5214_s14 + $0x430] sm:$0xff] %v2188_v60  ;;  %v2549_v8 = vadd.f32 %v2548_v4, %v5677_v46 }
 0x2b0   : > { %2843 = vst [vmem:[%s5214_s14 + $0x440] sm:$0xff] %v2547_v43  ;;  %2842 = vst [vmem:[%s5214_s14 + $0x438] sm:$0xff] %v2190_v1  ;;  %v2193_v59 = vpop.f32.mrb[94].mxu1 }
 0x2b1   : > { %2844 = vst [vmem:[%s5214_s14 + $0x448] sm:$0xff] %v2549_v8  ;;  %v2194_v32 = vadd.f32 %v2193_v59, %v5664_v7  ;;  %v2552_v18 = vpop.f32.mrb[96].mxu0  ;;  %v2195_v24 = vpop.f32.mrb[95].mxu1 }
 0x2b2   : > { %v2553_v2 = vadd.f32 %v2552_v18, %v5669_v54  ;;  %v2196_v48 = vadd.f32 %v2195_v24, %v5672_v41  ;;  %v2554_v17 = vpop.f32.mrb[97].mxu0 }
 0x2b3   : > { %2847 = vst [vmem:[%s5214_s14 + $0x460] sm:$0xff] %v2194_v32  ;;  %v2555_v33 = vadd.f32 %v2554_v17, %v5677_v46 }
 0x2b4   : > { %2849 = vst [vmem:[%s5214_s14 + $0x470] sm:$0xff] %v2553_v2  ;;  %2848 = vst [vmem:[%s5214_s14 + $0x468] sm:$0xff] %v2196_v48  ;;  %v2199_v25 = vpop.f32.mrb[96].mxu1 }
 0x2b5   : > { %2850 = vst [vmem:[%s5214_s14 + $0x478] sm:$0xff] %v2555_v33  ;;  %v2200_v14 = vadd.f32 %v2199_v25, %v5664_v7  ;;  %v2558_v26 = vpop.f32.mrb[98].mxu0  ;;  %v2201_v63 = vpop.f32.mrb[97].mxu1 }
 0x2b6   : > { %v2559_v5 = vadd.f32 %v2558_v26, %v5669_v54  ;;  %v2202_v58 = vadd.f32 %v2201_v63, %v5672_v41  ;;  %v2560_v56 = vpop.f32.mrb[99].mxu0 }
 0x2b7   : > { %2853 = vst [vmem:[%s5214_s14 + $0x490] sm:$0xff] %v2200_v14  ;;  %v2561_v34 = vadd.f32 %v2560_v56, %v5677_v46 }
 0x2b8   : > { %2855 = vst [vmem:[%s5214_s14 + $0x4a0] sm:$0xff] %v2559_v5  ;;  %2854 = vst [vmem:[%s5214_s14 + $0x498] sm:$0xff] %v2202_v58  ;;  %v2205_v38 = vpop.f32.mrb[98].mxu1 }
 0x2b9   : > { %2856 = vst [vmem:[%s5214_s14 + $0x4a8] sm:$0xff] %v2561_v34  ;;  %v2206_v20 = vadd.f32 %v2205_v38, %v5664_v7  ;;  %v2564_v36 = vpop.f32.mrb[100].mxu0  ;;  %v2207_v11 = vpop.f32.mrb[99].mxu1 }
 0x2ba   : > { %v2565_v35 = vadd.f32 %v2564_v36, %v5669_v54  ;;  %v2208_v19 = vadd.f32 %v2207_v11, %v5672_v41  ;;  %v2566_v61 = vpop.f32.mrb[101].mxu0 }
 0x2bb   : > { %2859 = vst [vmem:[%s5214_s14 + $0x4c0] sm:$0xff] %v2206_v20  ;;  %v2567_v45 = vadd.f32 %v2566_v61, %v5677_v46 }
 0x2bc   : > { %2861 = vst [vmem:[%s5214_s14 + $0x4d0] sm:$0xff] %v2565_v35  ;;  %2860 = vst [vmem:[%s5214_s14 + $0x4c8] sm:$0xff] %v2208_v19  ;;  %v2211_v62 = vpop.f32.mrb[100].mxu1 }
 0x2bd   : > { %2862 = vst [vmem:[%s5214_s14 + $0x4d8] sm:$0xff] %v2567_v45  ;;  %v2212_v6 = vadd.f32 %v2211_v62, %v5664_v7  ;;  %v2570_v12 = vpop.f32.mrb[102].mxu0  ;;  %v2213_v0 = vpop.f32.mrb[101].mxu1 }
 0x2be   : > { %v2571_v3 = vadd.f32 %v2570_v12, %v5669_v54  ;;  %v2214_v23 = vadd.f32 %v2213_v0, %v5672_v41  ;;  %v2572_v42 = vpop.f32.mrb[103].mxu0 }
 0x2bf   : > { %2865 = vst [vmem:[%s5214_s14 + $0x4f0] sm:$0xff] %v2212_v6  ;;  %v2573_v52 = vadd.f32 %v2572_v42, %v5677_v46 }
 0x2c0   : > { %2867 = vst [vmem:[%s5214_s14 + $0x500] sm:$0xff] %v2571_v3  ;;  %2866 = vst [vmem:[%s5214_s14 + $0x4f8] sm:$0xff] %v2214_v23  ;;  %v2217_v51 = vpop.f32.mrb[102].mxu1 }
 0x2c1   : > { %2868 = vst [vmem:[%s5214_s14 + $0x508] sm:$0xff] %v2573_v52  ;;  %v2218_v9 = vadd.f32 %v2217_v51, %v5664_v7  ;;  %v2576_v47 = vpop.f32.mrb[104].mxu0  ;;  %v2219_v16 = vpop.f32.mrb[103].mxu1 }
 0x2c2   : > { %v2577_v44 = vadd.f32 %v2576_v47, %v5669_v54  ;;  %v2220_v53 = vadd.f32 %v2219_v16, %v5672_v41  ;;  %v2578_v21 = vpop.f32.mrb[105].mxu0 }
 0x2c3   : > { %2871 = vst [vmem:[%s5214_s14 + $0x520] sm:$0xff] %v2218_v9  ;;  %v2579_v29 = vadd.f32 %v2578_v21, %v5677_v46 }
 0x2c4   : > { %2873 = vst [vmem:[%s5214_s14 + $0x530] sm:$0xff] %v2577_v44  ;;  %2872 = vst [vmem:[%s5214_s14 + $0x528] sm:$0xff] %v2220_v53  ;;  %v2223_v57 = vpop.f32.mrb[104].mxu1 }
 0x2c5   : > { %2874 = vst [vmem:[%s5214_s14 + $0x538] sm:$0xff] %v2579_v29  ;;  %v2224_v22 = vadd.f32 %v2223_v57, %v5664_v7  ;;  %v2582_v31 = vpop.f32.mrb[106].mxu0  ;;  %v2225_v27 = vpop.f32.mrb[105].mxu1 }
 0x2c6   : > { %v2583_v39 = vadd.f32 %v2582_v31, %v5669_v54  ;;  %v2226_v28 = vadd.f32 %v2225_v27, %v5672_v41  ;;  %v2584_v30 = vpop.f32.mrb[107].mxu0 }
 0x2c7   : > { %2877 = vst [vmem:[%s5214_s14 + $0x550] sm:$0xff] %v2224_v22  ;;  %v2585_v10 = vadd.f32 %v2584_v30, %v5677_v46 }
 0x2c8   : > { %2879 = vst [vmem:[%s5214_s14 + $0x560] sm:$0xff] %v2583_v39  ;;  %2878 = vst [vmem:[%s5214_s14 + $0x558] sm:$0xff] %v2226_v28  ;;  %v2229_v15 = vpop.f32.mrb[106].mxu1 }
 0x2c9   : > { %2880 = vst [vmem:[%s5214_s14 + $0x568] sm:$0xff] %v2585_v10  ;;  %v2230_v40 = vadd.f32 %v2229_v15, %v5664_v7  ;;  %v2588_v13 = vpop.f32.mrb[108].mxu0  ;;  %v2231_v50 = vpop.f32.mrb[107].mxu1 }
 0x2ca   : > { %v2589_v49 = vadd.f32 %v2588_v13, %v5669_v54  ;;  %v2232_v60 = vadd.f32 %v2231_v50, %v5672_v41  ;;  %v2590_v55 = vpop.f32.mrb[109].mxu0 }
 0x2cb   : > { %2883 = vst [vmem:[%s5214_s14 + $0x580] sm:$0xff] %v2230_v40  ;;  %v2591_v37 = vadd.f32 %v2590_v55, %v5677_v46 }
 0x2cc   : > { %2885 = vst [vmem:[%s5214_s14 + $0x590] sm:$0xff] %v2589_v49  ;;  %2884 = vst [vmem:[%s5214_s14 + $0x588] sm:$0xff] %v2232_v60  ;;  %v2235_v43 = vpop.f32.mrb[108].mxu1 }
 0x2cd   : > { %2886 = vst [vmem:[%s5214_s14 + $0x598] sm:$0xff] %v2591_v37  ;;  %v2236_v1 = vadd.f32 %v2235_v43, %v5664_v7  ;;  %v2594_v4 = vpop.f32.mrb[110].mxu0  ;;  %v2237_v8 = vpop.f32.mrb[109].mxu1 }
 0x2ce   : > { %v2595_v59 = vadd.f32 %v2594_v4, %v5669_v54  ;;  %v2238_v32 = vadd.f32 %v2237_v8, %v5672_v41  ;;  %v2596_v18 = vpop.f32.mrb[111].mxu0 }
 0x2cf   : > { %2889 = vst [vmem:[%s5214_s14 + $0x5b0] sm:$0xff] %v2236_v1  ;;  %v2597_v24 = vadd.f32 %v2596_v18, %v5677_v46 }
 0x2d0   : > { %2891 = vst [vmem:[%s5214_s14 + $0x5c0] sm:$0xff] %v2595_v59  ;;  %2890 = vst [vmem:[%s5214_s14 + $0x5b8] sm:$0xff] %v2238_v32  ;;  %v2241_v2 = vpop.f32.mrb[110].mxu1 }
 0x2d1   : > { %2892 = vst [vmem:[%s5214_s14 + $0x5c8] sm:$0xff] %v2597_v24  ;;  %v2242_v48 = vadd.f32 %v2241_v2, %v5664_v7  ;;  %v2600_v17 = vpop.f32.mrb[112].mxu0  ;;  %v2243_v33 = vpop.f32.mrb[111].mxu1 }
 0x2d2   : > { %v2601_v25 = vadd.f32 %v2600_v17, %v5669_v54  ;;  %v2244_v14 = vadd.f32 %v2243_v33, %v5672_v41  ;;  %v2602_v26 = vpop.f32.mrb[113].mxu0 }
 0x2d3   : > { %2895 = vst [vmem:[%s5214_s14 + $0x5e0] sm:$0xff] %v2242_v48  ;;  %v2603_v63 = vadd.f32 %v2602_v26, %v5677_v46 }
 0x2d4   : > { %2897 = vst [vmem:[%s5214_s14 + $0x5f0] sm:$0xff] %v2601_v25  ;;  %2896 = vst [vmem:[%s5214_s14 + $0x5e8] sm:$0xff] %v2244_v14  ;;  %v2247_v5 = vpop.f32.mrb[112].mxu1 }
 0x2d5   : > { %2898 = vst [vmem:[%s5214_s14 + $0x5f8] sm:$0xff] %v2603_v63  ;;  %v2248_v58 = vadd.f32 %v2247_v5, %v5664_v7  ;;  %v2606_v56 = vpop.f32.mrb[114].mxu0  ;;  %v2249_v34 = vpop.f32.mrb[113].mxu1 }
 0x2d6   : > { %v2607_v38 = vadd.f32 %v2606_v56, %v5669_v54  ;;  %v2250_v20 = vadd.f32 %v2249_v34, %v5672_v41  ;;  %v2608_v36 = vpop.f32.mrb[115].mxu0 }
 0x2d7   : > { %2901 = vst [vmem:[%s5214_s14 + $0x610] sm:$0xff] %v2248_v58  ;;  %v2609_v11 = vadd.f32 %v2608_v36, %v5677_v46 }
 0x2d8   : > { %2903 = vst [vmem:[%s5214_s14 + $0x620] sm:$0xff] %v2607_v38  ;;  %2902 = vst [vmem:[%s5214_s14 + $0x618] sm:$0xff] %v2250_v20  ;;  %v2253_v35 = vpop.f32.mrb[114].mxu1 }
 0x2d9   : > { %2904 = vst [vmem:[%s5214_s14 + $0x628] sm:$0xff] %v2609_v11  ;;  %v2254_v19 = vadd.f32 %v2253_v35, %v5664_v7  ;;  %v2612_v61 = vpop.f32.mrb[116].mxu0  ;;  %v2255_v45 = vpop.f32.mrb[115].mxu1 }
 0x2da   : > { %v2613_v62 = vadd.f32 %v2612_v61, %v5669_v54  ;;  %v2256_v6 = vadd.f32 %v2255_v45, %v5672_v41  ;;  %v2614_v12 = vpop.f32.mrb[117].mxu0 }
 0x2db   : > { %2907 = vst [vmem:[%s5214_s14 + $0x640] sm:$0xff] %v2254_v19  ;;  %v2615_v0 = vadd.f32 %v2614_v12, %v5677_v46 }
 0x2dc   : > { %2909 = vst [vmem:[%s5214_s14 + $0x650] sm:$0xff] %v2613_v62  ;;  %2908 = vst [vmem:[%s5214_s14 + $0x648] sm:$0xff] %v2256_v6  ;;  %v2259_v3 = vpop.f32.mrb[116].mxu1 }
 0x2dd   : > { %2910 = vst [vmem:[%s5214_s14 + $0x658] sm:$0xff] %v2615_v0  ;;  %v2260_v23 = vadd.f32 %v2259_v3, %v5664_v7  ;;  %v2618_v42 = vpop.f32.mrb[118].mxu0  ;;  %v2261_v52 = vpop.f32.mrb[117].mxu1 }
 0x2de   : > { %v2619_v51 = vadd.f32 %v2618_v42, %v5669_v54  ;;  %v2262_v9 = vadd.f32 %v2261_v52, %v5672_v41  ;;  %v2620_v47 = vpop.f32.mrb[119].mxu0 }
 0x2df   : > { %2913 = vst [vmem:[%s5214_s14 + $0x670] sm:$0xff] %v2260_v23  ;;  %v2621_v16 = vadd.f32 %v2620_v47, %v5677_v46 }
 0x2e0   : > { %2915 = vst [vmem:[%s5214_s14 + $0x680] sm:$0xff] %v2619_v51  ;;  %2914 = vst [vmem:[%s5214_s14 + $0x678] sm:$0xff] %v2262_v9  ;;  %v2265_v44 = vpop.f32.mrb[118].mxu1 }
 0x2e1   : > { %2916 = vst [vmem:[%s5214_s14 + $0x688] sm:$0xff] %v2621_v16  ;;  %v2266_v53 = vadd.f32 %v2265_v44, %v5664_v7  ;;  %v2624_v21 = vpop.f32.mrb[120].mxu0  ;;  %v2267_v29 = vpop.f32.mrb[119].mxu1 }
 0x2e2   : > { %v2625_v57 = vadd.f32 %v2624_v21, %v5669_v54  ;;  %v2268_v22 = vadd.f32 %v2267_v29, %v5672_v41  ;;  %v2626_v31 = vpop.f32.mrb[121].mxu0 }
 0x2e3   : > { %2919 = vst [vmem:[%s5214_s14 + $0x6a0] sm:$0xff] %v2266_v53  ;;  %v2627_v27 = vadd.f32 %v2626_v31, %v5677_v46 }
 0x2e4   : > { %2921 = vst [vmem:[%s5214_s14 + $0x6b0] sm:$0xff] %v2625_v57  ;;  %2920 = vst [vmem:[%s5214_s14 + $0x6a8] sm:$0xff] %v2268_v22  ;;  %v2271_v39 = vpop.f32.mrb[120].mxu1 }
 0x2e5   : > { %2922 = vst [vmem:[%s5214_s14 + $0x6b8] sm:$0xff] %v2627_v27  ;;  %v2272_v28 = vadd.f32 %v2271_v39, %v5664_v7  ;;  %v2630_v30 = vpop.f32.mrb[122].mxu0  ;;  %v2273_v10 = vpop.f32.mrb[121].mxu1 }
 0x2e6   : > { %v2631_v15 = vadd.f32 %v2630_v30, %v5669_v54  ;;  %v2274_v40 = vadd.f32 %v2273_v10, %v5672_v41  ;;  %v2632_v13 = vpop.f32.mrb[123].mxu0 }
 0x2e7   : > { %2925 = vst [vmem:[%s5214_s14 + $0x6d0] sm:$0xff] %v2272_v28  ;;  %v2633_v50 = vadd.f32 %v2632_v13, %v5677_v46 }
 0x2e8   : > { %2927 = vst [vmem:[%s5214_s14 + $0x6e0] sm:$0xff] %v2631_v15  ;;  %2926 = vst [vmem:[%s5214_s14 + $0x6d8] sm:$0xff] %v2274_v40  ;;  %v2277_v49 = vpop.f32.mrb[122].mxu1 }
 0x2e9   : > { %2928 = vst [vmem:[%s5214_s14 + $0x6e8] sm:$0xff] %v2633_v50  ;;  %v2278_v60 = vadd.f32 %v2277_v49, %v5664_v7  ;;  %v2636_v55 = vpop.f32.mrb[124].mxu0  ;;  %v2279_v37 = vpop.f32.mrb[123].mxu1 }
 0x2ea   : > { %v2637_v43 = vadd.f32 %v2636_v55, %v5669_v54  ;;  %v2280_v1 = vadd.f32 %v2279_v37, %v5672_v41  ;;  %v2638_v4 = vpop.f32.mrb[125].mxu0 }
 0x2eb   : > { %2931 = vst [vmem:[%s5214_s14 + $0x700] sm:$0xff] %v2278_v60  ;;  %v2639_v8 = vadd.f32 %v2638_v4, %v5677_v46 }
 0x2ec   : > { %2933 = vst [vmem:[%s5214_s14 + $0x710] sm:$0xff] %v2637_v43  ;;  %2932 = vst [vmem:[%s5214_s14 + $0x708] sm:$0xff] %v2280_v1  ;;  %v2283_v59 = vpop.f32.mrb[124].mxu1 }
 0x2ed   : > { %2934 = vst [vmem:[%s5214_s14 + $0x718] sm:$0xff] %v2639_v8  ;;  %v2284_v32 = vadd.f32 %v2283_v59, %v5664_v7  ;;  %v2642_v18 = vpop.f32.mrb[126].mxu0  ;;  %v2285_v24 = vpop.f32.mrb[125].mxu1 }
 0x2ee   : > { %v2643_v2 = vadd.f32 %v2642_v18, %v5669_v54  ;;  %v2286_v48 = vadd.f32 %v2285_v24, %v5672_v41  ;;  %v2644_v17 = vpop.f32.mrb[127].mxu0 }
 0x2ef   : > { %2937 = vst [vmem:[%s5214_s14 + $0x730] sm:$0xff] %v2284_v32  ;;  %v2645_v33 = vadd.f32 %v2644_v17, %v5677_v46 }
 0x2f0   : > { %2939 = vst [vmem:[%s5214_s14 + $0x740] sm:$0xff] %v2643_v2  ;;  %2938 = vst [vmem:[%s5214_s14 + $0x738] sm:$0xff] %v2286_v48  ;;  %v2289_v25 = vpop.f32.mrb[126].mxu1 }
 0x2f1   : > { %2940 = vst [vmem:[%s5214_s14 + $0x748] sm:$0xff] %v2645_v33  ;;  %v2290_v14 = vadd.f32 %v2289_v25, %v5664_v7  ;;  %v2648_v26 = vpop.f32.mrb[128].mxu0  ;;  %v2291_v63 = vpop.f32.mrb[127].mxu1 }
 0x2f2   : > { %v2649_v5 = vadd.f32 %v2648_v26, %v5669_v54  ;;  %v2292_v58 = vadd.f32 %v2291_v63, %v5672_v41  ;;  %v2650_v56 = vpop.f32.mrb[129].mxu0 }
 0x2f3   : > { %2943 = vst [vmem:[%s5214_s14 + $0x760] sm:$0xff] %v2290_v14  ;;  %v2651_v34 = vadd.f32 %v2650_v56, %v5677_v46 }
 0x2f4   : > { %2945 = vst [vmem:[%s5214_s14 + $0x770] sm:$0xff] %v2649_v5  ;;  %2944 = vst [vmem:[%s5214_s14 + $0x768] sm:$0xff] %v2292_v58  ;;  %v2295_v38 = vpop.f32.mrb[128].mxu1 }
 0x2f5   : > { %2946 = vst [vmem:[%s5214_s14 + $0x778] sm:$0xff] %v2651_v34  ;;  %v2296_v20 = vadd.f32 %v2295_v38, %v5664_v7  ;;  %v2654_v36 = vpop.f32.mrb[130].mxu0  ;;  %v2297_v11 = vpop.f32.mrb[129].mxu1 }
 0x2f6   : > { %v2655_v35 = vadd.f32 %v2654_v36, %v5669_v54  ;;  %v2298_v19 = vadd.f32 %v2297_v11, %v5672_v41  ;;  %v2656_v61 = vpop.f32.mrb[131].mxu0 }
 0x2f7   : > { %2949 = vst [vmem:[%s5214_s14 + $0x790] sm:$0xff] %v2296_v20  ;;  %v2657_v45 = vadd.f32 %v2656_v61, %v5677_v46 }
 0x2f8   : > { %2951 = vst [vmem:[%s5214_s14 + $0x7a0] sm:$0xff] %v2655_v35  ;;  %2950 = vst [vmem:[%s5214_s14 + $0x798] sm:$0xff] %v2298_v19  ;;  %v2301_v62 = vpop.f32.mrb[130].mxu1 }
 0x2f9   : > { %2952 = vst [vmem:[%s5214_s14 + $0x7a8] sm:$0xff] %v2657_v45  ;;  %v2302_v6 = vadd.f32 %v2301_v62, %v5664_v7  ;;  %v2660_v12 = vpop.f32.mrb[132].mxu0  ;;  %v2303_v0 = vpop.f32.mrb[131].mxu1 }
 0x2fa   : > { %v2661_v3 = vadd.f32 %v2660_v12, %v5669_v54  ;;  %v2304_v23 = vadd.f32 %v2303_v0, %v5672_v41  ;;  %v2662_v42 = vpop.f32.mrb[133].mxu0 }
 0x2fb   : > { %2955 = vst [vmem:[%s5214_s14 + $0x7c0] sm:$0xff] %v2302_v6  ;;  %v2663_v52 = vadd.f32 %v2662_v42, %v5677_v46 }
 0x2fc   : > { %2957 = vst [vmem:[%s5214_s14 + $0x7d0] sm:$0xff] %v2661_v3  ;;  %2956 = vst [vmem:[%s5214_s14 + $0x7c8] sm:$0xff] %v2304_v23  ;;  %v2307_v51 = vpop.f32.mrb[132].mxu1 }
 0x2fd   : > { %2958 = vst [vmem:[%s5214_s14 + $0x7d8] sm:$0xff] %v2663_v52  ;;  %v2308_v9 = vadd.f32 %v2307_v51, %v5664_v7  ;;  %v2666_v47 = vpop.f32.mrb[134].mxu0  ;;  %v2309_v16 = vpop.f32.mrb[133].mxu1 }
 0x2fe   : > { %v2667_v44 = vadd.f32 %v2666_v47, %v5669_v54  ;;  %v2310_v53 = vadd.f32 %v2309_v16, %v5672_v41  ;;  %v2668_v21 = vpop.f32.mrb[135].mxu0 }
 0x2ff   : > { %2961 = vst [vmem:[%s5214_s14 + $0x7f0] sm:$0xff] %v2308_v9  ;;  %v2669_v29 = vadd.f32 %v2668_v21, %v5677_v46 }
 0x300   : > { %2963 = vst [vmem:[%s5214_s14 + $0x800] sm:$0xff] %v2667_v44  ;;  %2962 = vst [vmem:[%s5214_s14 + $0x7f8] sm:$0xff] %v2310_v53  ;;  %v2313_v57 = vpop.f32.mrb[134].mxu1 }
 0x301   : > { %2964 = vst [vmem:[%s5214_s14 + $0x808] sm:$0xff] %v2669_v29  ;;  %v2314_v22 = vadd.f32 %v2313_v57, %v5664_v7  ;;  %v2672_v31 = vpop.f32.mrb[136].mxu0  ;;  %v2315_v27 = vpop.f32.mrb[135].mxu1 }
 0x302   : > { %v2673_v39 = vadd.f32 %v2672_v31, %v5669_v54  ;;  %v2316_v28 = vadd.f32 %v2315_v27, %v5672_v41  ;;  %v2674_v30 = vpop.f32.mrb[137].mxu0 }
 0x303   : > { %2967 = vst [vmem:[%s5214_s14 + $0x820] sm:$0xff] %v2314_v22  ;;  %v2675_v10 = vadd.f32 %v2674_v30, %v5677_v46 }
 0x304   : > { %2969 = vst [vmem:[%s5214_s14 + $0x830] sm:$0xff] %v2673_v39  ;;  %2968 = vst [vmem:[%s5214_s14 + $0x828] sm:$0xff] %v2316_v28  ;;  %v2319_v15 = vpop.f32.mrb[136].mxu1 }
 0x305   : > { %2970 = vst [vmem:[%s5214_s14 + $0x838] sm:$0xff] %v2675_v10  ;;  %v2320_v40 = vadd.f32 %v2319_v15, %v5664_v7  ;;  %v2678_v13 = vpop.f32.mrb[138].mxu0  ;;  %v2321_v50 = vpop.f32.mrb[137].mxu1 }
 0x306   : > { %v2679_v49 = vadd.f32 %v2678_v13, %v5669_v54  ;;  %v2322_v60 = vadd.f32 %v2321_v50, %v5672_v41  ;;  %v2680_v55 = vpop.f32.mrb[139].mxu0 }
 0x307   : > { %2973 = vst [vmem:[%s5214_s14 + $0x850] sm:$0xff] %v2320_v40  ;;  %v2681_v37 = vadd.f32 %v2680_v55, %v5677_v46 }
 0x308   : > { %2975 = vst [vmem:[%s5214_s14 + $0x860] sm:$0xff] %v2679_v49  ;;  %2974 = vst [vmem:[%s5214_s14 + $0x858] sm:$0xff] %v2322_v60  ;;  %v2325_v43 = vpop.f32.mrb[138].mxu1 }
 0x309   : > { %2976 = vst [vmem:[%s5214_s14 + $0x868] sm:$0xff] %v2681_v37  ;;  %v2326_v1 = vadd.f32 %v2325_v43, %v5664_v7  ;;  %v2684_v4 = vpop.f32.mrb[140].mxu0  ;;  %v2327_v8 = vpop.f32.mrb[139].mxu1 }
 0x30a   : > { %v2685_v59 = vadd.f32 %v2684_v4, %v5669_v54  ;;  %v2328_v32 = vadd.f32 %v2327_v8, %v5672_v41  ;;  %v2686_v18 = vpop.f32.mrb[141].mxu0 }
 0x30b   : > { %2979 = vst [vmem:[%s5214_s14 + $0x880] sm:$0xff] %v2326_v1  ;;  %v2687_v24 = vadd.f32 %v2686_v18, %v5677_v46 }
 0x30c   : > { %2981 = vst [vmem:[%s5214_s14 + $0x890] sm:$0xff] %v2685_v59  ;;  %2980 = vst [vmem:[%s5214_s14 + $0x888] sm:$0xff] %v2328_v32  ;;  %v2331_v2 = vpop.f32.mrb[140].mxu1 }
 0x30d   : > { %2982 = vst [vmem:[%s5214_s14 + $0x898] sm:$0xff] %v2687_v24  ;;  %v2332_v48 = vadd.f32 %v2331_v2, %v5664_v7  ;;  %v2690_v17 = vpop.f32.mrb[142].mxu0  ;;  %v2333_v33 = vpop.f32.mrb[141].mxu1 }
 0x30e   : > { %v2691_v25 = vadd.f32 %v2690_v17, %v5669_v54  ;;  %v2334_v14 = vadd.f32 %v2333_v33, %v5672_v41  ;;  %v2692_v26 = vpop.f32.mrb[143].mxu0 }
 0x30f   : > { %2985 = vst [vmem:[%s5214_s14 + $0x8b0] sm:$0xff] %v2332_v48  ;;  %v2693_v63 = vadd.f32 %v2692_v26, %v5677_v46 }
 0x310   : > { %2987 = vst [vmem:[%s5214_s14 + $0x8c0] sm:$0xff] %v2691_v25  ;;  %2986 = vst [vmem:[%s5214_s14 + $0x8b8] sm:$0xff] %v2334_v14  ;;  %v2337_v5 = vpop.f32.mrb[142].mxu1 }
 0x311   : > { %2988 = vst [vmem:[%s5214_s14 + $0x8c8] sm:$0xff] %v2693_v63  ;;  %v2338_v58 = vadd.f32 %v2337_v5, %v5664_v7  ;;  %v2696_v56 = vpop.f32.mrb[144].mxu0  ;;  %v2339_v34 = vpop.f32.mrb[143].mxu1 }
 0x312   : > { %v2697_v38 = vadd.f32 %v2696_v56, %v5669_v54  ;;  %v2340_v20 = vadd.f32 %v2339_v34, %v5672_v41  ;;  %v2698_v36 = vpop.f32.mrb[145].mxu0 }
 0x313   : > { %2991 = vst [vmem:[%s5214_s14 + $0x8e0] sm:$0xff] %v2338_v58  ;;  %v2699_v11 = vadd.f32 %v2698_v36, %v5677_v46 }
 0x314   : > { %2993 = vst [vmem:[%s5214_s14 + $0x8f0] sm:$0xff] %v2697_v38  ;;  %2992 = vst [vmem:[%s5214_s14 + $0x8e8] sm:$0xff] %v2340_v20  ;;  %v2343_v35 = vpop.f32.mrb[144].mxu1 }
 0x315   : > { %2994 = vst [vmem:[%s5214_s14 + $0x8f8] sm:$0xff] %v2699_v11  ;;  %v2344_v19 = vadd.f32 %v2343_v35, %v5664_v7  ;;  %v2702_v61 = vpop.f32.mrb[146].mxu0  ;;  %v2345_v45 = vpop.f32.mrb[145].mxu1 }
 0x316   : > { %v2703_v62 = vadd.f32 %v2702_v61, %v5669_v54  ;;  %v2346_v6 = vadd.f32 %v2345_v45, %v5672_v41  ;;  %v2704_v12 = vpop.f32.mrb[147].mxu0 }
 0x317   : > { %2997 = vst [vmem:[%s5214_s14 + $0x910] sm:$0xff] %v2344_v19  ;;  %v2705_v0 = vadd.f32 %v2704_v12, %v5677_v46 }
 0x318   : > { %2999 = vst [vmem:[%s5214_s14 + $0x920] sm:$0xff] %v2703_v62  ;;  %2998 = vst [vmem:[%s5214_s14 + $0x918] sm:$0xff] %v2346_v6 }
 0x319   : > { %3000 = vst [vmem:[%s5214_s14 + $0x928] sm:$0xff] %v2705_v0 }
 0x31a PF: > { %s13_s12 = sadd.s32 1, %s3596_s12  }
 0x31b   : > { %p10_p4 = scmp.ge.s32.totalorder %s13_s12, 4  }
 0x31d   :  { %12 = sbr.rel (!%p10_p4) target bundleno = 1 (0x1), region = 62 }

</bundles_post_ra>
